<compile_context>
chip_gen: v6e
topology: v6e:2x2x1
jax: 0.10.0
libtpu: 0.0.40
codegen_flags: <defaults>
</compile_context>

<pallas_src>
import math

import jax
import jax.numpy as jnp
import numpy as np
from jax.experimental import pallas as pl
from jax.experimental.pallas import tpu as pltpu

_TWO_PI = 2.0 * math.pi


def _round_up(x, m):
    return ((x + m - 1) // m) * m


# ----------------------------------------------------------------------------
# Pallas kernel: fourier features + channel matmul for one (b, hw-tile) step
# ----------------------------------------------------------------------------
def synthesis_input_kernel(gxy_ref, par_ref, w_ref, out_ref):
    # gxy_ref: (2, T)        sampling-grid tile (row0 = gx, row1 = gy), f32
    # par_ref: (C, 4)        per-batch [2pi*fx, 2pi*fy, 2pi*phase, amp], f32
    # w_ref:   (Cout, Cin)   weight * scale, bf16
    # out_ref: (C, T)        channel-major output tile
    gx = gxy_ref[0:1, :]                         # (1, T) -> sublane broadcast
    gy = gxy_ref[1:2, :]                         # (1, T)
    fx = par_ref[:, 0:1]                         # (C, 1) -> lane broadcast
    fy = par_ref[:, 1:2]
    ph = par_ref[:, 2:3]
    am = par_ref[:, 3:4]
    x = fx * gx + fy * gy                        # (C, T)  VPU broadcast FMAs
    x = jnp.sin(x + ph)                          # 2*pi folded upstream (EUP)
    x = x * am
    # TODO(synk): for small C (VPU/sin-bound on v6e) fold amp into a per-batch
    # weight (B, Cout, Cin) in the wrapper and drop this multiply.
    out = jnp.dot(w_ref[...], x.astype(jnp.bfloat16),
                  preferred_element_type=jnp.float32)     # MXU, f32 acc
    out_ref[...] = out.astype(out_ref.dtype)


def synthesis_input_pallas(gxy, par, w_mat, *, tile_hw, out_dtype):
    B, C_pad, _ = par.shape
    HW_pad = gxy.shape[1]
    assert HW_pad % tile_hw == 0, (HW_pad, tile_hw)
    n_hw = HW_pad // tile_hw
    out_bytes = jnp.dtype(out_dtype).itemsize

    # VMEM budget: double-buffered inputs/outputs + in-kernel intermediates,
    # 2x margin, floor 32 MiB, capped at 3/4 of the chip's physical VMEM
    # (48 MiB on v7x, 96 MiB on v5e/v6e) so compiler scratch always has room.
    vmem_need = (
        2 * (2 * tile_hw * 4)                        # gxy tile
        + 2 * (C_pad * 4 * 4)                        # per-batch params
        + 2 * (C_pad * C_pad * 2)                    # w_mat (bf16)
        + 2 * (C_pad * tile_hw * out_bytes)          # output tile
        + (4 + 2 + 4) * (C_pad * tile_hw)            # x f32 / x bf16 / MXU acc
    )
    try:
        vmem_cap = int(pltpu.get_tpu_info().vmem_capacity_bytes)
    except Exception:  # pragma: no cover - conservative fallback (v7x-sized)
        vmem_cap = 64 * 1024 * 1024
    vmem_limit = int(min(max(2 * vmem_need, 32 * 1024 * 1024),
                         (vmem_cap * 3) // 4))

    return pl.pallas_call(
        synthesis_input_kernel,
        out_shape=jax.ShapeDtypeStruct((B, C_pad, HW_pad), out_dtype),
        grid_spec=pltpu.PrefetchScalarGridSpec(
            num_scalar_prefetch=0,
            grid=(B, n_hw),
            in_specs=[
                pl.BlockSpec((2, tile_hw), lambda b, t: (0, t)),
                pl.BlockSpec((None, C_pad, 4), lambda b, t: (b, 0, 0)),
                # TODO(synk): single-buffer this constant block
                # (pipeline_mode=pl.Buffered(1)) on v7x to reclaim C_pad^2*2
                # bytes of VMEM for a larger spatial tile.
                pl.BlockSpec((C_pad, C_pad), lambda b, t: (0, 0)),
            ],
            out_specs=pl.BlockSpec((None, C_pad, tile_hw),
                                   lambda b, t: (b, 0, t)),
        ),
        # TODO(synk): on v7x, if the profile shows a single TensorCore active,
        # switch the HW axis to pltpu.CORE_PARALLEL.
        compiler_params=pltpu.CompilerParams(
            dimension_semantics=("parallel", "parallel"),
            vmem_limit_bytes=vmem_limit,
        ),
    )(gxy, par, w_mat)


# ----------------------------------------------------------------------------
# Parameter init (deterministic, mirrors SynthesisInput.__init__)
# ----------------------------------------------------------------------------
def init_params(key, style_dim, channels, bandwidth):
    k_f, k_p, k_w = jax.random.split(key, 3)
    freqs = jax.random.normal(k_f, (channels, 2), dtype=jnp.float32)
    radii = jnp.sqrt(jnp.sum(freqs ** 2, axis=1, keepdims=True))
    freqs = freqs / (radii * jnp.exp(radii ** 2) ** 0.25)
    freqs = freqs * bandwidth
    phases = jax.random.uniform(k_p, (channels,), dtype=jnp.float32) - 0.5
    weight = jax.random.normal(k_w, (channels, channels), dtype=jnp.float32)
    # affine Linear(style_dim, 4): weight filled with 0, bias = [1,0,0,0]
    affine_w = jnp.zeros((4, style_dim), dtype=jnp.float32)
    affine_b = jnp.array([1.0, 0.0, 0.0, 0.0], dtype=jnp.float32)
    transform = jnp.eye(3, dtype=jnp.float32)
    return dict(freqs=freqs, phases=phases, weight=weight,
                affine_w=affine_w, affine_b=affine_b, transform=transform)


# ----------------------------------------------------------------------------
# Shared O(B*C) glue (used by both the Pallas forward and the JAX reference)
# ----------------------------------------------------------------------------
def _per_batch_params(w, params, sampling_rate, bandwidth):
    B, style_dim = w.shape
    a_scale = 1.0 / math.sqrt(style_dim)
    # t = affine(w)  (bias_act with act='linear' is just +bias)
    t = w @ (params["affine_w"] * a_scale).T + params["affine_b"]       # (B,4)
    t = t / jnp.linalg.norm(t[:, :2], axis=1, keepdims=True)
    eye3 = jnp.eye(3, dtype=jnp.float32)
    m_r = jnp.tile(eye3[None], (B, 1, 1))
    m_r = (m_r.at[:, 0, 0].set(t[:, 0]).at[:, 0, 1].set(-t[:, 1])
              .at[:, 1, 0].set(t[:, 1]).at[:, 1, 1].set(t[:, 0]))
    m_t = jnp.tile(eye3[None], (B, 1, 1))
    m_t = m_t.at[:, 0, 2].set(-t[:, 2]).at[:, 1, 2].set(-t[:, 3])
    transforms = m_r @ m_t @ params["transform"][None]                  # (B,3,3)
    freqs = params["freqs"]                                             # (C,2)
    phases_b = params["phases"][None, :] + jnp.einsum(
        "cd,bd->bc", freqs, transforms[:, :2, 2])                       # (B,C)
    freqs_b = jnp.einsum("cd,bde->bce", freqs, transforms[:, :2, :2])   # (B,C,2)
    amp = jnp.clip(
        1.0 - (jnp.linalg.norm(freqs_b, axis=2) - bandwidth)
        / (sampling_rate / 2 - bandwidth), 0.0, 1.0)                    # (B,C)
    return freqs_b, phases_b, amp


def _sampling_grid(size0, size1, sampling_rate):
    # F.affine_grid(theta, [1,1,size1,size0], align_corners=False)
    base_x = (2.0 * jnp.arange(size0, dtype=jnp.float32) + 1.0) / size0 - 1.0
    base_y = (2.0 * jnp.arange(size1, dtype=jnp.float32) + 1.0) / size1 - 1.0
    gx = (0.5 * size0 / sampling_rate) * base_x                         # (W,)
    gy = (0.5 * size1 / sampling_rate) * base_y                         # (H,)
    return gx, gy


# ----------------------------------------------------------------------------
# Forward: JAX glue + Pallas kernel for the O(B*HW*C) hot path
# ----------------------------------------------------------------------------
def synthesis_input_forward(w, params, channels, size, sampling_rate,
                            bandwidth, *, tile_hw=512, out_dtype=jnp.float32):
    # out_dtype=jnp.bfloat16 halves output HBM writeback; use it when the
    # downstream synthesis layer runs in bf16.
    B = w.shape[0]
    size0, size1 = int(size[0]), int(size[1])       # [W, H] as in the module
    W_, H_ = size0, size1
    C = channels

    freqs_b, phases_b, amp = _per_batch_params(w, params, sampling_rate,
                                               bandwidth)
    gx, gy = _sampling_grid(size0, size1, sampling_rate)
    gx_flat = jnp.broadcast_to(gx[None, :], (H_, W_)).reshape(-1)       # (HW,)
    gy_flat = jnp.broadcast_to(gy[:, None], (H_, W_)).reshape(-1)       # (HW,)

    HW = H_ * W_
    C_pad = _round_up(max(C, 128), 128)
    tile = max(128, _round_up(min(tile_hw, HW), 128))   # lane-dense spatial tile
    HW_pad = _round_up(HW, tile)

    # gxy packed channel-major-friendly: (2, HW_pad)
    gxy = jnp.zeros((2, HW_pad), jnp.float32)
    gxy = gxy.at[0, :HW].set(gx_flat).at[1, :HW].set(gy_flat)

    # Per-batch params, 2*pi folded into the tiny O(B*C) tensors.
    par = jnp.zeros((B, C_pad, 4), jnp.float32)
    par = par.at[:, :C, 0].set(freqs_b[:, :, 0] * _TWO_PI)
    par = par.at[:, :C, 1].set(freqs_b[:, :, 1] * _TWO_PI)
    par = par.at[:, :C, 2].set(phases_b * _TWO_PI)
    par = par.at[:, :C, 3].set(amp)

    # F.linear(x, W) in channel-major is W @ x -> no transpose of the weight.
    w_scale = 1.0 / math.sqrt(channels)
    w_mat = jnp.zeros((C_pad, C_pad), jnp.float32).at[:C, :C].set(
        params["weight"] * w_scale).astype(jnp.bfloat16)

    out = synthesis_input_pallas(gxy, par, w_mat, tile_hw=tile,
                                 out_dtype=out_dtype)   # (B, C_pad, HW_pad)
    # Channel-major output -> NCHW is a free reshape (no HBM transpose).
    return out[:, :C, :HW].reshape(B, C, H_, W_)


# ----------------------------------------------------------------------------
# Pure-JAX f32 reference (literal translation of the PyTorch forward)
# ----------------------------------------------------------------------------
def synthesis_input_reference(w, params, channels, size, sampling_rate,
                              bandwidth):
    size0, size1 = int(size[0]), int(size[1])
    W_, H_ = size0, size1
    freqs_b, phases_b, amp = _per_batch_params(w, params, sampling_rate,
                                               bandwidth)
    gx, gy = _sampling_grid(size0, size1, sampling_rate)
    gxy = jnp.stack([jnp.broadcast_to(gx[None, :], (H_, W_)),
                     jnp.broadcast_to(gy[:, None], (H_, W_))], axis=-1)  # (H,W,2)
    x = jnp.einsum("hwk,bck->bhwc", gxy, freqs_b)
    x = x + phases_b[:, None, None, :]
    x = jnp.sin(x * _TWO_PI)
    x = x * amp[:, None, None, :]
    x = jnp.einsum("bhwc,oc->bhwo", x,
                   params["weight"] * (1.0 / math.sqrt(channels)))
    return jnp.transpose(x, (0, 3, 1, 2))                                # NCHW


if __name__ == "__main__":
    # Small test configuration consistent with the module.
    B, style_dim = 2, 32
    channels = 16
    size = (16, 16)          # (size0, size1) = (W, H)
    sampling_rate = 16.0
    bandwidth = 2.0

    key = jax.random.PRNGKey(0)
    k_params, k_w, k_aff = jax.random.split(key, 3)
    params = init_params(k_params, style_dim, channels, bandwidth)
    # Perturb the affine weights so each batch element gets a distinct
    # rotation/translation (exercises the per-batch BlockSpec index map).
    params["affine_w"] = 0.1 * jax.random.normal(k_aff, (4, style_dim),
                                                 dtype=jnp.float32)
    w = jax.random.normal(k_w, (B, style_dim), dtype=jnp.float32)

    # tile_hw=128 so the test exercises the (B, HW/tile) = (2, 2) tiled grid.
    out = synthesis_input_forward(w, params, channels, size, sampling_rate,
                                  bandwidth, tile_hw=128,
                                  out_dtype=jnp.float32)
    out = jax.block_until_ready(out)
    assert out.shape == (B, channels, size[1], size[0]), out.shape

    ref = jax.block_until_ready(
        synthesis_input_reference(w, params, channels, size, sampling_rate,
                                  bandwidth))

    # Tolerance reflects the bf16 (f32-accumulated) MXU matmul in the kernel
    # vs the pure-f32 reference.
    np.testing.assert_allclose(np.asarray(out), np.asarray(ref),
                               rtol=2e-2, atol=2e-2)

    # Also exercise the bf16-output path (halved HBM writeback for bf16
    # downstream consumers).
    out_bf16 = synthesis_input_forward(w, params, channels, size,
                                       sampling_rate, bandwidth, tile_hw=128,
                                       out_dtype=jnp.bfloat16)
    out_bf16 = jax.block_until_ready(out_bf16)
    np.testing.assert_allclose(np.asarray(out_bf16, dtype=np.float32),
                               np.asarray(ref), rtol=5e-2, atol=5e-2)

    print("KERNEL_OK")
</pallas_src>

<mosaic_0001>
module attributes {stable_mosaic.version = 11 : i64} {
  func.func @synthesis_input_kernel(%arg0: i32, %arg1: i32, %arg2: memref<2x128xf32, #tpu.memory_space<vmem>>, %arg3: memref<1x128x4xf32, #tpu.memory_space<vmem>>, %arg4: memref<128x128xbf16, #tpu.memory_space<vmem>>, %arg5: memref<1x128x128xf32, #tpu.memory_space<vmem>>) attributes {dimension_semantics = [#tpu.dimension_semantics<parallel>, #tpu.dimension_semantics<parallel>], iteration_bounds = array<i64: 2, 2>, scalar_prefetch = 0 : i64, scratch_operands = 0 : i64, tpu.core_type = #tpu.core_type<tc>, window_params = [{transform_indices = @transform_0, window_bounds = array<i64: 2, 128>}, {transform_indices = @transform_1, window_bounds = array<i64: 1, 128, 4>}, {pipeline_mode = #tpu.pipeline_mode<synchronous>, transform_indices = @transform_2, window_bounds = array<i64: 128, 128>}, {transform_indices = @transform_3, window_bounds = array<i64: 1, 128, 128>}]} {
    %c0 = arith.constant 0 : index
    %c0_0 = arith.constant 0 : index
    %0 = vector.load %arg2[%c0, %c0_0] : memref<2x128xf32, #tpu.memory_space<vmem>>, vector<1x128xf32>
    %c1 = arith.constant 1 : index
    %c0_1 = arith.constant 0 : index
    %1 = vector.load %arg2[%c1, %c0_1] : memref<2x128xf32, #tpu.memory_space<vmem>>, vector<1x128xf32>
    %c0_2 = arith.constant 0 : index
    %c0_3 = arith.constant 0 : index
    %c0_4 = arith.constant 0 : index
    %2 = vector.load %arg3[%c0_2, %c0_3, %c0_4] : memref<1x128x4xf32, #tpu.memory_space<vmem>>, vector<1x128x1xf32>
    %3 = vector.shape_cast %2 : vector<1x128x1xf32> to vector<128x1xf32>
    %c0_5 = arith.constant 0 : index
    %c0_6 = arith.constant 0 : index
    %c1_7 = arith.constant 1 : index
    %4 = vector.load %arg3[%c0_5, %c0_6, %c1_7] : memref<1x128x4xf32, #tpu.memory_space<vmem>>, vector<1x128x1xf32>
    %5 = vector.shape_cast %4 : vector<1x128x1xf32> to vector<128x1xf32>
    %c0_8 = arith.constant 0 : index
    %c0_9 = arith.constant 0 : index
    %c2 = arith.constant 2 : index
    %6 = vector.load %arg3[%c0_8, %c0_9, %c2] : memref<1x128x4xf32, #tpu.memory_space<vmem>>, vector<1x128x1xf32>
    %7 = vector.shape_cast %6 : vector<1x128x1xf32> to vector<128x1xf32>
    %c0_10 = arith.constant 0 : index
    %c0_11 = arith.constant 0 : index
    %c3 = arith.constant 3 : index
    %8 = vector.load %arg3[%c0_10, %c0_11, %c3] : memref<1x128x4xf32, #tpu.memory_space<vmem>>, vector<1x128x1xf32>
    %9 = vector.shape_cast %8 : vector<1x128x1xf32> to vector<128x1xf32>
    %10 = vector.broadcast %3 : vector<128x1xf32> to vector<128x128xf32>
    %11 = vector.broadcast %0 : vector<1x128xf32> to vector<128x128xf32>
    %12 = arith.mulf %10, %11 : vector<128x128xf32>
    %13 = vector.broadcast %5 : vector<128x1xf32> to vector<128x128xf32>
    %14 = vector.broadcast %1 : vector<1x128xf32> to vector<128x128xf32>
    %15 = arith.mulf %13, %14 : vector<128x128xf32>
    %16 = arith.addf %12, %15 : vector<128x128xf32>
    %17 = vector.broadcast %7 : vector<128x1xf32> to vector<128x128xf32>
    %18 = arith.addf %16, %17 : vector<128x128xf32>
    %19 = math.sin %18 : vector<128x128xf32>
    %20 = vector.broadcast %9 : vector<128x1xf32> to vector<128x128xf32>
    %21 = arith.mulf %19, %20 : vector<128x128xf32>
    %c0_12 = arith.constant 0 : index
    %c0_13 = arith.constant 0 : index
    %22 = vector.load %arg4[%c0_12, %c0_13] : memref<128x128xbf16, #tpu.memory_space<vmem>>, vector<128x128xbf16>
    %23 = arith.truncf %21 : vector<128x128xf32> to vector<128x128xbf16>
    %cst = arith.constant dense<0.000000e+00> : vector<128x128xf32>
    %24 = tpu.matmul %22, %23, %cst {dimension_numbers = #tpu.dot_dimension_numbers<[1], [0], [0], [1], [0, 0, 1, 1], [], []>} : vector<128x128xbf16>, vector<128x128xbf16>, vector<128x128xf32> -> vector<128x128xf32>
    %c0_14 = arith.constant 0 : index
    %c0_15 = arith.constant 0 : index
    %c0_16 = arith.constant 0 : index
    %25 = vector.load %arg5[%c0_14, %c0_15, %c0_16] : memref<1x128x128xf32, #tpu.memory_space<vmem>>, vector<1x128x128xf32>
    %26 = vector.shape_cast %25 : vector<1x128x128xf32> to vector<128x128xf32>
    %27 = vector.shape_cast %24 : vector<128x128xf32> to vector<1x128x128xf32>
    tpu.vector_store %arg5[%c0_14, %c0_15, %c0_16], %27 {strides = array<i32>} : memref<1x128x128xf32, #tpu.memory_space<vmem>>, vector<1x128x128xf32>,
    return
  }
  func.func @transform_0(%arg0: i32, %arg1: i32) -> (i32, i32) {
    %c0_i32 = arith.constant 0 : i32
    %c0_i32_0 = arith.constant 0 : i32
    return %c0_i32, %arg1 : i32, i32
  }
  func.func @transform_1(%arg0: i32, %arg1: i32) -> (i32, i32, i32) {
    %c0_i32 = arith.constant 0 : i32
    %c0_i32_0 = arith.constant 0 : i32
    %c0_i32_1 = arith.constant 0 : i32
    return %arg0, %c0_i32, %c0_i32_0 : i32, i32, i32
  }
  func.func @transform_2(%arg0: i32, %arg1: i32) -> (i32, i32) {
    %c0_i32 = arith.constant 0 : i32
    %c0_i32_0 = arith.constant 0 : i32
    %c0_i32_1 = arith.constant 0 : i32
    return %c0_i32, %c0_i32_0 : i32, i32
  }
  func.func @transform_3(%arg0: i32, %arg1: i32) -> (i32, i32, i32) {
    %c0_i32 = arith.constant 0 : i32
    %c0_i32_0 = arith.constant 0 : i32
    return %arg0, %c0_i32, %arg1 : i32, i32, i32
  }
}

</mosaic_0001>

<bundles_post_ra>
// kernel: tpu_custom_call.1
= control target key start
LH: loop header
LB: loop body
LE: loop exit
PB: predicated region body
PF: predicated region fallthrough
CT: control target
= control target key end

     0   :  { %8 = vsyncpa [#allocation3], 0  ;;  %s5458_s0 = inlined_call_operand.vmem [shape: f32[2,256], index: 0, kind: input, shape index: {}]   ;;  %s5459_s1 = inlined_call_operand.vmem [shape: f32[2,128,4], index: 1, kind: input, shape index: {}]   ;;  %s5460_s2 = inlined_call_operand.vmem [shape: bf16[128,128], index: 2, kind: input, shape index: {}]   ;;  %s5461_s3 = inlined_call_operand.hbm [shape: f32[2,128,256], index: 3, kind: output, shape index: {}]  }
   0x1   :  { %10 = vsyncpa [#allocation3 + $0x1], 0  ;;  %s3059_s12 = smov 0   ;;  %s3061_s13 = smov 0  }
   0x2   :  { %s3063_s14 = smov 0   ;;  %s3065_s15 = smov 0  }
   0x3   :  { %s3067_s16 = smov 0   ;;  %s3069_s17 = smov 0  }
   0x4   :  { %s3071_s18 = smov 0   ;;  %s3073_s19 = smov 0  }
   0x5 LB: > { %s2530_s20 = sadd.s32 4294967295, %s3023_s19   ;;  %s2531_s21 = sadd.s32 4294967294, %s3023_s19   ;;  %s3023_s19 = sphi %s3073_s19, %s16_s19   ;;  %s3019_s18 = sphi %s3071_s18, %s5737_s18   ;;  %s3015_s17 = sphi %s3069_s17, %s5736_s17   ;;  %s3011_s16 = sphi %s3067_s16, %s5735_s16   ;;  %s3007_s15 = sphi %s3065_s15, %s5734_s15   ;;  %s3003_s14 = sphi %s3063_s14, %s5733_s14   ;;  %s2999_s13 = sphi %s3061_s13, %s5732_s13   ;;  %s2995_s12 = sphi %s3059_s12, %s5731_s12  }
   0x6   : > { %s25_s22 = sadd.s32 1, %s3015_s17  ;;  %s28_s23 = sadd.s32 1, %s3019_s18 }
   0x7   : > { %p26_p0 = scmp.ge.s32.totalorder %s25_s22, 2  ;;  %p120_p1 = scmp.ne.s32.totalorder %s3003_s14, %s2999_s13 }
   0x8   : > { %p121_p2 = scmp.eq.s32.totalorder %s2530_s20, 3  ;;  %p126_p5 = scmp.ne.s32.totalorder %s2999_s13, %s2995_s12 }
   0x9   : > { %s5739_s22 = smov (%p26_p0, %s25_s22), 0  ;;  %s5741_s23 = smov (!%p26_p0, %s28_s23), %s3019_s18 }
   0xa   : > { %s106_s24 = ssub.s32 %s3015_s17, %s5739_s22  ;;  %p3110_p3 = por %p121_p2, %p120_p1 }
   0xb   : > { %p30_p4 = scmp.ge.s32.totalorder %s5741_s23, 2  ;;  %p127_p6 = scmp.eq.s32.totalorder %s2531_s21, 3 }
   0xc   : > { %p2534_p7 = scmp.ge.s32.totalorder %s3023_s19, 1  ;;  %p163_p9 = scmp.lt.s32.totalorder %s3023_s19, 5 }
   0xd   : > { %s5743_s23 = smov (%p30_p4, %s5741_s23), 0  ;;  %p3119_p8 = por %p127_p6, %p126_p5 }
   0xe   : > { %s105_s27 = ssub.s32 %s3019_s18, %s5743_s23  ;;  %s110_s28 = sadd.s32 1, %s3003_s14 }
   0xf   : > { %s107_s29 = sor.u32 %s106_s24, %s105_s27  ;;  %p164_p10 = pnand %p2534_p7, %p163_p9 }
  0x10   : > { %p108_p11 = scmp.eq.s32.totalorder %s107_s29, 0 }
  0x11   : > { %167 = sbr.rel (%p164_p10) target bundleno = 866 (0x362), region = 32 }
  0x12   : > { %s3128_s30 = scalar_select %p108_p11, %s3003_s14, %s110_s28  }
  0x16   : > { %p195_p12 = scmp.lt.s32.totalorder %s3011_s16, 1  ;;  %v3025_v0 = vmov 1   ;;  %v3026_v1 = vmov 0   ;;  %v3027_v7 = vmov 2   ;;  %v3028_v18 = vmov 3   ;;  %p191_p13 = scmp.lt.s32.totalorder %s3007_s15, 1 }
  0x17   : > { %2832 = vset.pattern.permute.xlu1 %v3025_v0  ;;  %2831 = vset.pattern.permute.xlu0 %v3026_v1  ;;  %v5480_v52 = vmov 2102212464   ;;  %v5472_v54 = vmov 920167782   ;;  %v5470_v56 = vmov 1326507024  }
  0x18   : > { %s196_s4 = scalar_select %p195_p12, %s3011_s16, 1  ;;  %v5464_v60 = vmov 2475754826   ;;  %v5466_v62 = vmov 2131351028  }
  0x19   : > { %s192_s9 = scalar_select %p191_p13, %s3007_s15, 1 }
  0x1a   : > { %s2618_s5 = sshll.u32 %s196_s4, 7  ;;  %s188_s28 = sand.u32 1, %s2999_s13  }
  0x1b   : > { %s3137_s8 = scalar_lea.vmem %s5459_s1, %s2618_s5  ;;  %s2536_s10 = sshll.u32 %s192_s9, 1 }
  0x1c   : > { %v3140_v2 = vld [vmem:[%s3137_s8 + $0x70] sm:$0xff]  ;;  %v3145_v3 = vld [vmem:[%s3137_s8 + $0x78] sm:$0xff]  ;;  %v3150_v4 = vld [vmem:[%s3137_s8 + $0x60] sm:$0xff]  ;;  %s3230_s21 = scalar_lea.vmem %s5458_s0, %s2536_s10  ;;  %s2535_s29 = sshll.u32 %s188_s28, 7 }
  0x1d   : > { %376 = vperm.xlu1 %2832, %v3140_v2   ;;  %291 = vperm.xlu0 %2831, %v3140_v2   ;;  %v216_v5 = vld [vmem:[%s3137_s8 + $0x68] sm:$0xff]  ;;  %v3159_v6 = vld [vmem:[%s3137_s8 + $0x50] sm:$0xff]  ;;  %v3164_v8 = vld [vmem:[%s3137_s8 + $0x40] sm:$0xff]  ;;  %s5377_s4 = scalar_lea.vmem [#allocation2], %s2535_s29  ;;  %s2614_s5 = sshll.u32 %s3011_s16, 5 }
  0x1e   : > { %v3169_v9 = vld [vmem:[%s3137_s8 + $0x30] sm:$0xff]  ;;  %v214_v10 = vld [vmem:[%s3137_s8 + $0x58] sm:$0xff]  ;;  %v3176_v11 = vld [vmem:[%s3137_s8 + $0x20] sm:$0xff]  ;;  %s2440_s6 = sadd.s32 %s3007_s15, %s2614_s5  ;;  %s2443_s7 = sshll.u32 %s5377_s4, 4  ;;  %s5394_s7 = int_to_ptr.vmem [resolvable:$true] %s2443_s7 }
  0x1f   : > { %v3180_v12 = vld [vmem:[%s3137_s8 + $0x10] sm:$0xff]  ;;  %v3185_v13 = vld [vmem:[%s3137_s8] sm:$0xff]  ;;  %v212_v14 = vld [vmem:[%s3137_s8 + $0x48] sm:$0xff]  ;;  %s2615_s16 = sshll.u32 %s2440_s6, 7  ;;  %s5407_s10 = scalar_lea.sflag [#allocation3], %s188_s28 }
  0x20   : > { %v210_v15 = vld [vmem:[%s3137_s8 + $0x38] sm:$0xff]  ;;  %v208_v16 = vld [vmem:[%s3137_s8 + $0x28] sm:$0xff]  ;;  %v3237_v26 = vld [vmem:[%s3230_s21 + $0x1] ss:$0 sm:$0xff]  ;;  %s5399_s9 = scalar_lea.hbm %s5461_s3, %s2615_s16  ;;  %s2931_s11 = scalar_lea.vmem %s5394_s7, 2048 }
  0x21   : > { %380 = vperm.xlu1 %2832, %v3145_v3   ;;  %296 = vperm.xlu0 %2831, %v3145_v3   ;;  %v206_v17 = vld [vmem:[%s3137_s8 + $0x18] sm:$0xff]  ;;  %v204_v19 = vld [vmem:[%s3137_s8 + $0x8] sm:$0xff]  ;;  %v3240_v27 = vld [vmem:[%s3230_s21] ss:$0 sm:$0xff]  ;;  %p2932_p0 = scmp.ne.s32.totalorder %s5394_s7, %s2931_s11  ;;  %s3035_s20 = smov [#allocation2]  }
  0x23   : > { %p2933_p1 = pnand %p2932_p0, %p3110_p3 }
  0x25   : > { %2833 = vset.pattern.permute.xlu1 %v3026_v1  ;;  %281 = vperm.xlu0 %2831, %v3150_v4   ;;  %p2934_p2 = pneg %p2933_p1 }
  0x26   : > { %286 = vperm.xlu1 %2833, %v216_v5  }
  0x29   : > { %2834 = vset.pattern.permute.xlu0 %v3025_v0 }
  0x2a   : > { %2835 = vset.pattern.permute.xlu1 %v3025_v0  ;;  %368 = vperm.xlu0 %2834, %v3150_v4  }
  0x2b   : > { %372 = vperm.xlu1 %2835, %v216_v5  }
  0x2e   : > { %360 = vperm.xlu0 %2834, %v3159_v6  }
  0x2f   : > { %2836 = vset.pattern.permute.xlu1 %v3027_v7 }
  0x30   : > { %476 = vperm.xlu1 %2836, %v3140_v2  }
  0x32   : > { %352 = vperm.xlu0 %2834, %v3164_v8  }
  0x34   : > { %2837 = vset.pattern.permute.xlu1 %v3026_v1 }
  0x35   : > { %271 = vperm.xlu1 %2837, %v3159_v6  }
  0x36   : > { %344 = vperm.xlu0 %2834, %v3169_v9  }
  0x39   : > { %276 = vperm.xlu1 %2837, %v214_v10  }
  0x3a   : > { %336 = vperm.xlu0 %2834, %v3176_v11  }
  0x3d   : > { %2838 = vset.pattern.permute.xlu1 %v3025_v0 }
  0x3e   : > { %364 = vperm.xlu1 %2838, %v214_v10   ;;  %328 = vperm.xlu0 %2834, %v3180_v12  }
  0x42   : > { %2839 = vset.pattern.permute.xlu1 %v3027_v7  ;;  %320 = vperm.xlu0 %2834, %v3185_v13  }
  0x43   : > { %468 = vperm.xlu1 %2839, %v3150_v4  }
  0x46   : > { %2853 = vset.pattern.permute.xlu0 %v3027_v7 }
  0x47   : > { %2840 = vset.pattern.permute.xlu1 %v3026_v1  ;;  %480 = vperm.xlu0 %2853, %v3145_v3  }
  0x48   : > { %261 = vperm.xlu1 %2840, %v3164_v8  }
  0x4b   : > { %472 = vperm.xlu0 %2853, %v216_v5  }
  0x4c   : > { %266 = vperm.xlu1 %2840, %v212_v14  }
  0x4f   : > { %464 = vperm.xlu0 %2853, %v214_v10  }
  0x50   : > { %2841 = vset.pattern.permute.xlu1 %v3025_v0 }
  0x51   : > { %356 = vperm.xlu1 %2841, %v212_v14  }
  0x53   : > { %456 = vperm.xlu0 %2853, %v212_v14  }
  0x55   : > { %2842 = vset.pattern.permute.xlu1 %v3027_v7 }
  0x56   : > { %460 = vperm.xlu1 %2842, %v3159_v6  }
  0x57   : > { %448 = vperm.xlu0 %2853, %v210_v15  }
  0x5a   : > { %2843 = vset.pattern.permute.xlu1 %v3026_v1 }
  0x5b   : > { %251 = vperm.xlu1 %2843, %v3169_v9   ;;  %440 = vperm.xlu0 %2853, %v208_v16  }
  0x5f   : > { %256 = vperm.xlu1 %2843, %v210_v15   ;;  %432 = vperm.xlu0 %2853, %v206_v17  }
  0x63   : > { %2844 = vset.pattern.permute.xlu1 %v3025_v0  ;;  %2856 = vset.pattern.permute.xlu0 %v3028_v18 }
  0x64   : > { %348 = vperm.xlu1 %2844, %v210_v15   ;;  %2220 = vperm.xlu0 %2856, %v3140_v2  }
  0x68   : > { %2845 = vset.pattern.permute.xlu1 %v3027_v7  ;;  %2216 = vperm.xlu0 %2856, %v216_v5  }
  0x69   : > { %452 = vperm.xlu1 %2845, %v3164_v8  }
  0x6c   : > { %2208 = vperm.xlu0 %2856, %v214_v10  }
  0x6d   : > { %2846 = vset.pattern.permute.xlu1 %v3026_v1 }
  0x6e   : > { %241 = vperm.xlu1 %2846, %v3176_v11  }
  0x70   : > { %2200 = vperm.xlu0 %2856, %v212_v14  }
  0x72   : > { %246 = vperm.xlu1 %2846, %v208_v16  }
  0x74   : > { %2192 = vperm.xlu0 %2856, %v210_v15  }
  0x76   : > { %2847 = vset.pattern.permute.xlu1 %v3025_v0 }
  0x77   : > { %340 = vperm.xlu1 %2847, %v208_v16  }
  0x78   : > { %2184 = vperm.xlu0 %2856, %v208_v16  }
  0x7b   : > { %2848 = vset.pattern.permute.xlu1 %v3027_v7 }
  0x7c   : > { %444 = vperm.xlu1 %2848, %v3169_v9   ;;  %2176 = vperm.xlu0 %2856, %v206_v17  }
  0x80   : > { %2849 = vset.pattern.permute.xlu1 %v3026_v1  ;;  %2168 = vperm.xlu0 %2856, %v204_v19  }
  0x81   : > { %231 = vperm.xlu1 %2849, %v3180_v12  }
  0x85   : > { %236 = vperm.xlu1 %2849, %v206_v17  }
  0x89   : > { %2850 = vset.pattern.permute.xlu1 %v3025_v0 }
  0x8a   : > { %332 = vperm.xlu1 %2850, %v206_v17  }
  0x8e   : > { %2851 = vset.pattern.permute.xlu1 %v3027_v7 }
  0x8f   : > { %436 = vperm.xlu1 %2851, %v3176_v11  }
  0x93   : > { %2852 = vset.pattern.permute.xlu1 %v3026_v1 }
  0x94   : > { %221 = vperm.xlu1 %2852, %v3185_v13  }
  0x98   : > { %v377_v20 = vpop.permute.xlu1 %376  ;;  %v292_v21 = vpop.permute.xlu0 %291  ;;  %226 = vperm.xlu1 %2852, %v204_v19  }
  0x99   : > { %v401_v29 = vmul.f32 %v3237_v26, %v377_v20  ;;  %v317_v30 = vmul.f32 %v3240_v27, %v292_v21 }
  0x9b   : > { %v417_v33 = vadd.f32 %v401_v29, %v317_v30 }
  0x9c   : > { %v3222_v22 = vpop.permute.xlu1 %380  ;;  %v3224_v23 = vpop.permute.xlu0 %296  ;;  %2854 = vset.pattern.permute.xlu1 %v3025_v0 }
  0x9d   : > { %324 = vperm.xlu1 %2854, %v204_v19   ;;  %v318_v30 = vmul.f32 %v3240_v27, %v3224_v23 }
  0xa0   : > { %v282_v24 = vpop.permute.xlu0 %281 }
  0xa1   : > { %v3232_v25 = vpop.permute.xlu1 %286  ;;  %2855 = vset.pattern.permute.xlu1 %v3027_v7  ;;  %v315_v1 = vmul.f32 %v3240_v27, %v282_v24 }
  0xa2   : > { %428 = vperm.xlu1 %2855, %v3180_v12  }
  0xa5   : > { %v369_v28 = vpop.permute.xlu0 %368 }
  0xa6   : > { %v3244_v31 = vpop.permute.xlu1 %372  ;;  %420 = vperm.xlu1 %2855, %v3185_v13   ;;  %v399_v2 = vmul.f32 %v3237_v26, %v369_v28  ;;  %v402_v28 = vmul.f32 %v3237_v26, %v3222_v22 }
  0xa7   : > { %v400_v23 = vmul.f32 %v3237_v26, %v3244_v31 }
  0xa9   : > { %v3247_v32 = vpop.permute.xlu0 %360 }
  0xaa   : > { %424 = vperm.xlu1 %2855, %v204_v19   ;;  %v415_v19 = vadd.f32 %v399_v2, %v315_v1 }
  0xab   : > { %v477_v34 = vpop.permute.xlu1 %476 }
  0xac   : > { %v3249_v35 = vadd.f32 %v477_v34, %v417_v33 }
  0xad   : > { %v353_v36 = vpop.permute.xlu0 %352 }
  0xae   : > { %v1958_v37 = vand.u32 2139095040, %v3249_v35  ;;  %2857 = vset.pattern.permute.xlu1 %v3028_v18  ;;  %v5463_v50 = vand.u32 2147483647, %v3249_v35 }
  0xaf   : > { %2224 = vperm.xlu1 %2857, %v3145_v3  }
  0xb0   : > { %v1959_v38 = vshrl.u32 %v1958_v37, 23  ;;  %v3253_v39 = vpop.permute.xlu1 %271  ;;  %v1962_v14 = vand.u32 8388607, %v5463_v50 }
  0xb1   : > { %v3255_v40 = vpop.permute.xlu0 %344 }
  0xb2   : > { %v2597_v41 = vadd.s32 4294967169, %v1959_v38  ;;  %v1963_v33 = vor.u32 8388608, %v1962_v14 }
  0xb3   : > { %2212 = vperm.xlu1 %2857, %v3150_v4  }
  0xb4   : > { %v1965_v42 = vadd.s32 1, %v2597_v41  ;;  %v3258_v43 = vpop.permute.xlu1 %276 }
  0xb5   : > { %v3260_v44 = vpop.permute.xlu0 %336  ;;  %v314_v2 = vmul.f32 %v3240_v27, %v3258_v43 }
  0xb6   : > { %vm1966_vm0 = vcmp.gt.s32.totalorder %v1965_v42, 0 }
  0xb7   : > { %v1967_v45 = vsel %vm1966_vm0, %v1965_v42, 0  ;;  %2204 = vperm.xlu1 %2857, %v3159_v6   ;;  %v5468_v6 = vmov 683565275   ;;  %vm1957_vm0 = vcmp.lt.s32.totalorder %v3249_v35, 0 }
  0xb8   : > { %v1969_v46 = vand.u32 31, %v1967_v45  ;;  %v3271_v51 = vshrl.u32 %v1967_v45, 5 }
  0xb9   : > { %v3263_v47 = vpop.permute.xlu1 %364  ;;  %v3265_v48 = vpop.permute.xlu0 %328 }
  0xba   : > { %v3267_v49 = vsub.s32 32, %v1969_v46  ;;  %v1981_v53 = vshll.u32 %v5480_v52, %v1969_v46  ;;  %v1984_v58 = vshll.u32 %v5472_v54, %v1969_v46  ;;  %v1972_v7 = vshll.u32 %v5468_v6, %v1969_v46 }
  0xbb   : > { %2196 = vperm.xlu1 %2857, %v3164_v8   ;;  %v1975_v8 = vshll.u32 %v5464_v60, %v1969_v46  ;;  %v1978_v10 = vshll.u32 %v5466_v62, %v1969_v46  ;;  %vm1990_vm1 = vcmp.lt.s32.totalorder %v3271_v51, 4  ;;  %vm1987_vm2 = vcmp.lt.s32.totalorder %v3271_v51, 1 }
  0xbc   : > { %v1982_v55 = vshrl.u32 %v5472_v54, %v3267_v49  ;;  %v1985_v57 = vshrl.u32 %v5470_v56, %v3267_v49  ;;  %v1973_v61 = vshrl.u32 %v5464_v60, %v3267_v49  ;;  %v1976_v63 = vshrl.u32 %v5466_v62, %v3267_v49 }
  0xbd   : > { %v3279_v59 = vpop.permute.xlu0 %320  ;;  %v1979_v0 = vshrl.u32 %v5480_v52, %v3267_v49  ;;  %vm1989_vm3 = vcmp.lt.s32.totalorder %v3271_v51, 3  ;;  %vm1988_vm4 = vcmp.lt.s32.totalorder %v3271_v51, 2  ;;  %v316_v46 = vmul.f32 %v3240_v27, %v3232_v25 }
  0xbe   : > { %v1983_v3 = vor.u32 %v1982_v55, %v1981_v53  ;;  %v469_v4 = vpop.permute.xlu1 %468  ;;  %v1986_v5 = vor.u32 %v1985_v57, %v1984_v58  ;;  %v1974_v15 = vor.u32 %v1973_v61, %v1972_v7  ;;  %v1977_v16 = vor.u32 %v1976_v63, %v1975_v8 }
  0xbf   : > { %2188 = vperm.xlu1 %2857, %v3169_v9   ;;  %v1980_v17 = vor.u32 %v1979_v0, %v1978_v10  ;;  %v395_v9 = vmul.f32 %v3237_v26, %v353_v36  ;;  %v2003_v55 = vshll.u32 %v1963_v33, 8  ;;  %v418_v58 = vadd.f32 %v402_v28, %v318_v30 }
  0xc0   : > { %v1996_v18 = vsel %vm1990_vm1, %v1983_v3, 920167782  ;;  %v2000_v21 = vsel %vm1990_vm1, %v1986_v5, 1326507024  ;;  %v1995_v34 = vsel %vm1987_vm2, %v1974_v15, %v1977_v16  ;;  %v398_v31 = vmul.f32 %v3237_v26, %v3263_v47 }
  0xc1   : > { %v1997_v36 = vsel %vm1989_vm3, %v1980_v17, %v1996_v18  ;;  %v1999_v22 = vsel %vm1987_vm2, %v1977_v16, %v1980_v17  ;;  %v2001_v38 = vsel %vm1989_vm3, %v1983_v3, %v2000_v21  ;;  %v1992_v10 = vsel %vm1990_vm1, %v1980_v17, 2102212464 }
  0xc2   : > { %v481_v20 = vpop.permute.xlu0 %480  ;;  %v1998_v45 = vsel %vm1988_vm4, %v1995_v34, %v1997_v36  ;;  %v2002_v53 = vsel %vm1988_vm4, %v1999_v22, %v2001_v38  ;;  %v1971_v14 = vshrl.u32 %v5468_v6, %v3267_v49  ;;  %v1993_v28 = vsel %vm1989_vm3, %v1977_v16, %v1992_v10 }
  0xc3   : > { %v262_v24 = vpop.permute.xlu1 %261  ;;  %2180 = vperm.xlu1 %2857, %v3176_v11   ;;  %v3313_v11 = vadd.f32 %v469_v4, %v415_v19  ;;  %v3335_v61 = vmul.u32.u64.low %v2003_v55, %v1998_v45  ;;  %v3336_v63 = vmul.u32.u64.high %v2003_v55, %v1998_v45, %v3335_v61  ;;  %v3344_v3 = vadd.f32 %v481_v20, %v418_v58 }
  0xc4   : > { %v311_v29 = vmul.f32 %v3240_v27, %v262_v24  ;;  %v3339_v1 = vmul.u32.u64.low %v2003_v55, %v2002_v53  ;;  %v3340_v25 = vmul.u32.u64.high %v2003_v55, %v2002_v53, %v3339_v1  ;;  %v1991_v24 = vsel %vm1987_vm2, %v1971_v14, %v1974_v15 }
  0xc5   : > { %5561 = vst [vmem:[#allocation5_spill] sm:$0xff] %v3313_v11  ;;  %v1750_v57 = vand.u32 2139095040, %v3313_v11  ;;  %5562 = vst [vmem:[#allocation6_spill] sm:$0xff] %v3344_v3  ;;  %v2062_v18 = vand.u32 2139095040, %v3344_v3  ;;  %v2013_v17 = vadd.s32 1, %v3336_v63  ;;  %v1994_v33 = vsel %vm1988_vm4, %v1991_v24, %v1993_v28 }
  0xc6   : > { %v3315_v37 = vadd.f32 %v395_v9, %v311_v29  ;;  %v473_v42 = vpop.permute.xlu0 %472  ;;  %vm2012_vm5 = vc.u32 %v3340_v25, %v3335_v61  ;;  %v2010_v38 = vmul.u32 %v2003_v55, %v1994_v33  ;;  %v313_v58 = vmul.f32 %v3240_v27, %v3253_v39 }
  0xc7   : > { %v267_v41 = vpop.permute.xlu1 %266  ;;  %2172 = vperm.xlu1 %2857, %v3180_v12   ;;  %v416_v12 = vadd.f32 %v400_v23, %v316_v46  ;;  %v1751_v5 = vshrl.u32 %v1750_v57, 23  ;;  %v2063_v49 = vshrl.u32 %v2062_v18, 23  ;;  %v2014_v15 = vsel %vm2012_vm5, %v2013_v17, %v3336_v63 }
  0xc8   : > { %v312_v7 = vmul.f32 %v3240_v27, %v267_v41  ;;  %v2015_v53 = vadd.s32 %v2014_v15, %v2010_v38  ;;  %v397_v57 = vmul.f32 %v3237_v26, %v3247_v32 }
  0xc9   : > { %v3346_v4 = vadd.f32 %v473_v42, %v416_v12  ;;  %v2589_v21 = vadd.s32 4294967169, %v1751_v5  ;;  %v2601_v23 = vadd.s32 4294967169, %v2063_v49  ;;  %v393_v42 = vmul.f32 %v3237_v26, %v3255_v40 }
  0xca   : > { %v465_v47 = vpop.permute.xlu0 %464  ;;  %v2016_v1 = vadd.s32 536870912, %v2015_v53 }
  0xcb   : > { %2164 = vperm.xlu1 %2857, %v3185_v13   ;;  %v414_v13 = vadd.f32 %v398_v31, %v314_v2  ;;  %v1854_v43 = vand.u32 2139095040, %v3346_v4  ;;  %v1757_v34 = vadd.s32 1, %v2589_v21  ;;  %v2069_v31 = vadd.s32 1, %v2601_v23 }
  0xcc   : > { %v357_v0 = vpop.permute.xlu1 %356  ;;  %v3387_v14 = vshrl.u32 %v2016_v1, 30  ;;  %v391_v21 = vmul.f32 %v3237_v26, %v3260_v44  ;;  %v5462_v33 = vand.u32 2147483647, %v3346_v4  ;;  %v3420_v23 = vadd.s32 %v3335_v61, %v3340_v25 }
  0xcd   : > { %v396_v8 = vmul.f32 %v3237_v26, %v357_v0  ;;  %v3356_v9 = vadd.f32 %v465_v47, %v414_v13  ;;  %v1855_v29 = vshrl.u32 %v1854_v43, 23  ;;  %vm1758_vm6 = vcmp.gt.s32.totalorder %v1757_v34, 0 }
  0xce   : > { %v457_v22 = vpop.permute.xlu0 %456  ;;  %v1759_v55 = vsel %vm1758_vm6, %v1757_v34, 0  ;;  %v413_v47 = vadd.f32 %v397_v57, %v313_v58  ;;  %vm2070_vm7 = vcmp.gt.s32.totalorder %v2069_v31, 0  ;;  %v2018_v49 = vshll.u32 %v3387_v14, 30 }
  0xcf   : > { %v412_v19 = vadd.f32 %v396_v8, %v312_v7  ;;  %v1646_v30 = vand.u32 2139095040, %v3356_v9  ;;  %v2593_v16 = vadd.s32 4294967169, %v1855_v29  ;;  %v3381_v5 = vand.u32 31, %v1759_v55 }
  0xd0   : > { %v2071_v43 = vsel %vm2070_vm7, %v2069_v31, 0  ;;  %v3402_v29 = vmul.f32 %v3237_v26, %v3279_v59  ;;  %v3407_v44 = vshrl.u32 %v1759_v55, 5  ;;  %v3434_v31 = vand.u32 8388607, %v5462_v33 }
  0xd1   : > { %v461_v20 = vpop.permute.xlu1 %460  ;;  %v1647_v41 = vshrl.u32 %v1646_v30, 23  ;;  %v3371_v45 = vadd.f32 %v457_v22, %v412_v19  ;;  %v1861_v12 = vadd.s32 1, %v2593_v16  ;;  %5563 = vst [vmem:[#allocation7_spill] sm:$0xff] %v3381_v5  ;;  %v3390_v18 = vsub.s32 32, %v3381_v5 }
  0xd2   : > { %v3385_v8 = vadd.f32 %v461_v20, %v413_v47  ;;  %v3398_v20 = vmul.f32 %v3237_v26, %v3265_v48  ;;  %v3404_v30 = vand.u32 31, %v2071_v43  ;;  %5567 = vst [vmem:[#allocation11_spill] sm:$0xff] %v3407_v44  ;;  %v1773_v48 = vshll.u32 %v5480_v52, %v3381_v5 }
  0xd3   : > { %v2585_v63 = vadd.s32 4294967169, %v1647_v41  ;;  %v1438_v0 = vand.u32 2139095040, %v3371_v45  ;;  %vm1862_vm8 = vcmp.gt.s32.totalorder %v1861_v12, 0  ;;  %5565 = vst [vmem:[#allocation9_spill] sm:$0xff] %v3390_v18  ;;  %v1774_v34 = vshrl.u32 %v5472_v54, %v3390_v18 }
  0xd4   : > { %5564 = vst [vmem:[#allocation8_spill] sm:$0xff] %v3385_v8  ;;  %v1863_v24 = vsel %vm1862_vm8, %v1861_v12, 0  ;;  %v1542_v17 = vand.u32 2139095040, %v3385_v8  ;;  %5566 = vst [vmem:[#allocation10_spill] sm:$0xff] %v3404_v30  ;;  %v1777_v59 = vshrl.u32 %v5470_v56, %v3390_v18  ;;  %v1776_v57 = vshll.u32 %v5472_v54, %v3381_v5 }
  0xd5   : > { %v1653_v39 = vadd.s32 1, %v2585_v63  ;;  %v1439_v13 = vshrl.u32 %v1438_v0, 23  ;;  %v3427_v58 = vshrl.u32 %v2071_v43, 5  ;;  %v3430_v55 = vsub.s32 32, %v3404_v30 }
  0xd6   : > { %v252_v36 = vpop.permute.xlu1 %251  ;;  %v1543_v41 = vshrl.u32 %v1542_v17, 23  ;;  %v3436_v61 = vor.u32 %v1774_v34, %v1773_v48  ;;  %vm1782_vm10 = vcmp.lt.s32.totalorder %v3407_v44, 4  ;;  %v1778_v12 = vor.u32 %v1777_v59, %v1776_v57 }
  0xd7   : > { %v309_v51 = vmul.f32 %v3240_v27, %v252_v36  ;;  %vm1654_vm9 = vcmp.gt.s32.totalorder %v1653_v39, 0  ;;  %v2577_v28 = vadd.s32 4294967169, %v1439_v13  ;;  %v3411_v36 = vand.u32 31, %v1863_v24  ;;  %5568 = vst [vmem:[#allocation12_spill] sm:$0xff] %v3427_v58  ;;  %5569 = vst [vmem:[#allocation13_spill] sm:$0xff] %v3430_v55 }
  0xd8   : > { %v1655_v15 = vsel %vm1654_vm9, %v1653_v39, 0  ;;  %5570 = vst [vmem:[#allocation14_spill] sm:$0xff] %v3436_v61  ;;  %v2085_v47 = vshll.u32 %v5480_v52, %v3404_v30  ;;  %v2086_v39 = vshrl.u32 %v5472_v54, %v3430_v55  ;;  %v2088_v13 = vshll.u32 %v5472_v54, %v3404_v30 }
  0xd9   : > { %v3379_v40 = vadd.f32 %v393_v42, %v309_v51  ;;  %v1445_v16 = vadd.s32 1, %v2577_v28  ;;  %v449_v42 = vpop.permute.xlu0 %448  ;;  %v3423_v51 = vsub.s32 %v2015_v53, %v2018_v49  ;;  %v3440_v25 = vsub.s32 32, %v3411_v36 }
  0xda   : > { %v257_v46 = vpop.permute.xlu1 %256  ;;  %v3442_v53 = vand.u32 31, %v1655_v15  ;;  %vm2094_vm12 = vcmp.lt.s32.totalorder %v3427_v58, 4  ;;  %v3464_v43 = vsel %vm1782_vm10, %v3436_v61, 920167782  ;;  %v3475_v28 = vsel %vm1782_vm10, %v1778_v12, 1326507024 }
  0xdb   : > { %v310_v7 = vmul.f32 %v3240_v27, %v257_v46  ;;  %v2021_v1 = vsub.s32 0, %v3423_v51  ;;  %vm1446_vm11 = vcmp.gt.s32.totalorder %v1445_v16, 0  ;;  %5573 = vst [vmem:[#allocation17_spill] sm:$0xff] %v3464_v43  ;;  %5574 = vst [vmem:[#allocation18_spill] sm:$0xff] %v3475_v28  ;;  %v1877_v48 = vshll.u32 %v5480_v52, %v3411_v36 }
  0xdc   : > { %v1447_v17 = vsel %vm1446_vm11, %v1445_v16, 0  ;;  %v1880_v59 = vshll.u32 %v5472_v54, %v3411_v36  ;;  %v3486_v12 = vshrl.u32 %v1863_v24, 5  ;;  %v3488_v16 = vshrl.u32 %v1655_v15, 5 }
  0xdd   : > { %v2598_v34 = vmin.u32 %v2021_v1, %v3423_v51  ;;  %v3494_v50 = vand.u32 31, %v1447_v17  ;;  %v1669_v24 = vshll.u32 %v5480_v52, %v3442_v53  ;;  %v5585_v43 = vmov 920167782  }
  0xde   : > { %vm1886_vm14 = vcmp.lt.s32.totalorder %v3486_v12, 4  ;;  %vm1678_vm15 = vcmp.lt.s32.totalorder %v3488_v16, 4  ;;  %vm1883_vm6 = vcmp.lt.s32.totalorder %v3486_v12, 1  ;;  %vm1885_vm7 = vcmp.lt.s32.totalorder %v3486_v12, 3 }
  0xdf   : > { %v349_v2 = vpop.permute.xlu1 %348  ;;  %v3571_v44 = vshll.u32 %v5585_v43, %v3494_v50  ;;  %vm1884_vm8 = vcmp.lt.s32.totalorder %v3486_v12, 2 }
  0xe0   : > { %v394_v32 = vmul.f32 %v3237_v26, %v349_v2 }
  0xe2   : > { %v410_v10 = vadd.f32 %v394_v32, %v310_v7  ;;  %v2581_v7 = vadd.s32 4294967169, %v1543_v41 }
  0xe4   : > { %v453_v19 = vpop.permute.xlu1 %452  ;;  %v3444_v63 = vadd.f32 %v449_v42, %v410_v10  ;;  %v2089_v10 = vshrl.u32 %v5470_v56, %v3430_v55 }
  0xe5   : > { %v3452_v32 = vadd.f32 %v453_v19, %v3315_v37  ;;  %v1878_v37 = vshrl.u32 %v5472_v54, %v3440_v25  ;;  %v1881_v19 = vshrl.u32 %v5470_v56, %v3440_v25 }
  0xe6   : > { %5571 = vst [vmem:[#allocation15_spill] sm:$0xff] %v3444_v63  ;;  %v1230_v49 = vand.u32 2139095040, %v3444_v63  ;;  %v2090_v57 = vor.u32 %v2089_v10, %v2088_v13 }
  0xe7   : > { %5572 = vst [vmem:[#allocation16_spill] sm:$0xff] %v3452_v32  ;;  %v1334_v41 = vand.u32 2139095040, %v3452_v32  ;;  %v3490_v22 = vor.u32 %v1878_v37, %v1877_v48  ;;  %v1882_v1 = vor.u32 %v1881_v19, %v1880_v59  ;;  %v5582_v32 = vmov 1326507024  }
  0xe8   : > { %v1231_v60 = vshrl.u32 %v1230_v49, 23  ;;  %v3509_v10 = vsel %vm2094_vm12, %v2090_v57, 1326507024  ;;  %v1672_v49 = vshll.u32 %v5472_v54, %v3442_v53 }
  0xe9   : > { %v242_v38 = vpop.permute.xlu1 %241  ;;  %5577 = vst [vmem:[#allocation21_spill] sm:$0xff] %v3509_v10 }
  0xea   : > { %v307_v46 = vmul.f32 %v3240_v27, %v242_v38  ;;  %v1549_v38 = vadd.s32 1, %v2581_v7 }
  0xec   : > { %v3447_v2 = vadd.f32 %v391_v21, %v307_v46  ;;  %v3471_v21 = vsub.s32 32, %v3442_v53  ;;  %v3484_v46 = vor.u32 %v2086_v39, %v2085_v47  ;;  %v2023_v47 = vclz %v2598_v34 }
  0xed   : > { %v247_v0 = vpop.permute.xlu1 %246  ;;  %vm1550_vm13 = vcmp.gt.s32.totalorder %v1549_v38, 0  ;;  %v1335_v39 = vshrl.u32 %v1334_v41, 23  ;;  %v3517_v34 = vsub.s32 32, %v3494_v50  ;;  %v2569_v41 = vadd.s32 4294967169, %v1231_v60 }
  0xee   : > { %5575 = vst [vmem:[#allocation19_spill] sm:$0xff] %v3484_v46  ;;  %v1670_v33 = vshrl.u32 %v5472_v54, %v3471_v21  ;;  %v308_v7 = vmul.f32 %v3240_v27, %v247_v0  ;;  %v1673_v15 = vshrl.u32 %v5470_v56, %v3471_v21  ;;  %v3505_v13 = vsel %vm2094_vm12, %v3484_v46, 920167782 }
  0xef   : > { %5576 = vst [vmem:[#allocation20_spill] sm:$0xff] %v3505_v13  ;;  %v1551_v59 = vsel %vm1550_vm13, %v1549_v38, 0  ;;  %v5579_v60 = vmov 2131351028   ;;  %v3563_v63 = vshrl.u32 %v5582_v32, %v3517_v34 }
  0xf0   : > { %v3512_v19 = vor.u32 %v1670_v33, %v1669_v24  ;;  %v1896_v33 = vsel %vm1886_vm14, %v1882_v1, 1326507024  ;;  %v1674_v57 = vor.u32 %v1673_v15, %v1672_v49  ;;  %v3530_v24 = vshrl.u32 %v1447_v17, 5 }
  0xf1   : > { %v1872_v38 = vshrl.u32 %v5579_v60, %v3440_v25  ;;  %v1462_v1 = vshrl.u32 %v5472_v54, %v3517_v34  ;;  %v3546_v15 = vand.u32 31, %v1551_v59  ;;  %v5581_v49 = vmov 2475754826  }
  0xf2   : > { %v341_v42 = vpop.permute.xlu1 %340  ;;  %v1874_v56 = vshll.u32 %v5579_v60, %v3411_v36  ;;  %v3559_v54 = vsel %vm1678_vm15, %v1674_v57, 1326507024  ;;  %vm1470_vm2 = vcmp.lt.s32.totalorder %v3530_v24, 4  ;;  %v441_v57 = vpop.permute.xlu0 %440  ;;  %v3583_v13 = vshrl.u32 %v1551_v59, 5 }
  0xf3   : > { %v392_v62 = vmul.f32 %v3237_v26, %v341_v42  ;;  %v2599_v42 = vadd.s32 4294967294, %v2023_v47  ;;  %v3542_v47 = vsel %vm1678_vm15, %v3512_v19, 920167782  ;;  %5580 = vst [vmem:[#allocation23_spill] sm:$0xff] %v3546_v15  ;;  %v3586_v58 = vsub.s32 32, %v3546_v15 }
  0xf4   : > { %vm1574_vm9 = vcmp.lt.s32.totalorder %v3583_v13, 4 }
  0xf5   : > { %v408_v0 = vadd.f32 %v392_v62, %v308_v7  ;;  %v3526_v62 = vsel %vm1886_vm14, %v3490_v22, 920167782  ;;  %v2573_v7 = vadd.s32 4294967169, %v1335_v39  ;;  %v1237_v39 = vadd.s32 1, %v2569_v41  ;;  %5587 = vst [vmem:[#allocation25_spill] sm:$0xff] %v3586_v58 }
  0xf6   : > { %vm2600_vm1 = vcmp.lt.s32.totalorder %v2599_v42, 0  ;;  %v5584_v41 = vmov 2102212464  }
  0xf7   : > { %v445_v37 = vpop.permute.xlu1 %444  ;;  %v1341_v8 = vadd.s32 1, %v2573_v7  ;;  %v1461_v28 = vshll.u32 %v5584_v41, %v3494_v50  ;;  %v3576_v46 = vsel %vm2600_vm1, 0, %v2599_v42  ;;  %v2041_v7 = vsub.s32 4, %v3387_v14 }
  0xf8   : > { %v3520_v48 = vadd.f32 %v445_v37, %v3379_v40  ;;  %v1859_v40 = vor.u32 8388608, %v3434_v31  ;;  %v3535_v37 = vshrl.u32 %v5468_v6, %v3440_v25  ;;  %v1875_v31 = vshrl.u32 %v5480_v52, %v3440_v25 }
  0xf9   : > { %v1871_v6 = vshll.u32 %v5581_v49, %v3411_v36  ;;  %v5583_v52 = vmov 683565275   ;;  %v3581_v10 = vor.u32 %v1462_v1, %v1461_v28  ;;  %vm1238_vm3 = vcmp.gt.s32.totalorder %v1237_v39, 0 }
  0xfa   : > { %5578 = vst [vmem:[#allocation22_spill] sm:$0xff] %v3520_v48  ;;  %v1868_v61 = vshll.u32 %v5583_v52, %v3411_v36  ;;  %v1876_v18 = vor.u32 %v1875_v31, %v1874_v56  ;;  %v1869_v36 = vshrl.u32 %v5581_v49, %v3440_v25  ;;  %v5588_v56 = vand.u32 2147483647, %v3249_v35 }
  0xfb   : > { %v3573_v5 = vor.u32 %v1872_v38, %v1871_v6  ;;  %5586 = vst [vmem:[#allocation24_spill] sm:$0xff] %v3581_v10  ;;  %v1466_v42 = vor.u32 %v3563_v63, %v3571_v44  ;;  %vm1342_vm5 = vcmp.gt.s32.totalorder %v1341_v8, 0  ;;  %v3598_v25 = vadd.f32 %v441_v57, %v408_v0 }
  0xfc   : > { %v3548_v17 = vpop.permute.xlu1 %231  ;;  %vm3590_vm4 = vcmp.le.f32.partialorder %v5588_v56, 0.7853982  ;;  %v2031_v28 = vsub.s32 4294967266, %v3576_v46  ;;  %v1897_v38 = vsel %vm1885_vm7, %v3490_v22, %v1896_v33  ;;  %v1565_v44 = vshll.u32 %v5584_v41, %v3546_v15 }
  0xfd   : > { %5591 = vst [vmem:[#allocation26_spill] sm:$0xff] %v3598_v25  ;;  %v1895_v59 = vsel %vm1883_vm6, %v3573_v5, %v1876_v18  ;;  %v1568_v63 = vshll.u32 %v5585_v43, %v3546_v15  ;;  %v1239_v1 = vsel %vm1238_vm3, %v1237_v39, 0  ;;  %v1870_v31 = vor.u32 %v1869_v36, %v1868_v61 }
  0xfe   : > { %v3614_v0 = vsel %vm1470_vm2, %v3581_v10, 920167782  ;;  %v1566_v57 = vshrl.u32 %v5585_v43, %v3586_v58  ;;  %v1126_v56 = vand.u32 2139095040, %v3520_v48  ;;  %v1569_v22 = vshrl.u32 %v5582_v32, %v3586_v58 }
  0xff   : > { %5592 = vst [vmem:[#allocation27_spill] sm:$0xff] %v3614_v0  ;;  %v1343_v33 = vsel %vm1342_vm5, %v1341_v8, 0  ;;  %v2042_v61 = vsel %vm1957_vm0, %v2041_v7, %v3387_v14  ;;  %v1898_v39 = vsel %vm1884_vm8, %v1895_v59, %v1897_v38  ;;  %v3629_v36 = vand.u32 31, %v1239_v1 }
 0x100   : > { %v237_v11 = vpop.permute.xlu1 %236  ;;  %v1022_v48 = vand.u32 2139095040, %v3598_v25  ;;  %v2032_v15 = vadd.s32 127, %v2031_v28  ;;  %v1899_v30 = vshll.u32 %v1859_v40, 8  ;;  %v1891_v8 = vsel %vm1883_vm6, %v1870_v31, %v3573_v5 }
 0x101   : > { %5593 = vst [vmem:[#allocation28_spill] sm:$0xff] %v3629_v36  ;;  %v306_v55 = vmul.f32 %v3240_v27, %v237_v11  ;;  %v1893_v14 = vsel %vm1885_vm7, %v1876_v18, %v3526_v62  ;;  %v1127_v7 = vshrl.u32 %v1126_v56, 23  ;;  %v2027_v59 = vsub.s32 32, %v3576_v46  ;;  %v433_v62 = vpop.permute.xlu0 %432 }
 0x102   : > { %v3641_v38 = vmul.u32.u64.low %v1899_v30, %v1898_v39  ;;  %v3642_v10 = vmul.u32.u64.high %v1899_v30, %v1898_v39, %v3641_v38  ;;  %v3644_v28 = vor.u32 %v1566_v57, %v1565_v44  ;;  %v2044_v11 = vsel %vm3590_vm4, 0, %v2042_v61 }
 0x103   : > { %v1888_v40 = vsel %vm1886_vm14, %v1876_v18, 2102212464  ;;  %v305_v25 = vmul.f32 %v3240_v27, %v3548_v17  ;;  %v2033_v56 = vshll.u32 %v2032_v15, 23  ;;  %v1894_v44 = vsel %vm1884_vm8, %v1891_v8, %v1893_v14 }
 0x104   : > { %5594 = vst [vmem:[#allocation29_spill] sm:$0xff] %v3644_v28  ;;  %v3658_v57 = vsub.s32 32, %v3629_v36  ;;  %v3660_v61 = vand.u32 31, %v1343_v33  ;;  %v2565_v18 = vadd.s32 4294967169, %v1127_v7  ;;  %v2029_v39 = vshrl.u32 %v3420_v23, %v2027_v59 }
 0x105   : > { %v333_v3 = vpop.permute.xlu1 %332  ;;  %v1887_v15 = vsel %vm1883_vm6, %v3535_v37, %v1870_v31  ;;  %v3673_v17 = vsel %vm1470_vm2, %v1466_v42, 1326507024  ;;  %v1570_v8 = vor.u32 %v1569_v22, %v1568_v63  ;;  %v2028_v23 = vshll.u32 %v3423_v51, %v3576_v46 }
 0x106   : > { %v390_v58 = vmul.f32 %v3237_v26, %v333_v3  ;;  %5596 = vst [vmem:[#allocation31_spill] sm:$0xff] %v3658_v57  ;;  %5597 = vst [vmem:[#allocation32_spill] sm:$0xff] %v3660_v61  ;;  %v2034_v7 = vor.u32 4788187, %v2033_v56  ;;  %v2048_v59 = vadd.s32 3, %v2044_v11  ;;  %v3684_v37 = vadd.f32 %v3398_v20, %v305_v25 }
 0x107   : > { %v3692_v42 = vsub.s32 32, %v3660_v61  ;;  %v1254_v51 = vshrl.u32 %v5585_v43, %v3658_v57  ;;  %v1133_v46 = vadd.s32 1, %v2565_v18  ;;  %v2030_v22 = vor.u32 %v2029_v39, %v2028_v23 }
 0x108   : > { %v406_v26 = vadd.f32 %v390_v58, %v306_v55  ;;  %v1023_v58 = vshrl.u32 %v1022_v48, 23  ;;  %v3675_v14 = vmul.u32.u64.low %v1899_v30, %v1894_v44  ;;  %v3676_v48 = vmul.u32.u64.high %v1899_v30, %v1894_v44, %v3675_v14 }
 0x109   : > { %5599 = vst [vmem:[#allocation34_spill] sm:$0xff] %v3692_v42  ;;  %v3702_v20 = vsel %vm1574_vm9, %v1570_v8, 1326507024  ;;  %v3704_v25 = vshrl.u32 %v1239_v1, 5  ;;  %v3706_v11 = vshrl.u32 %v1343_v33, 5  ;;  %v1253_v12 = vshll.u32 %v5584_v41, %v3629_v36 }
 0x10a   : > { %v437_v3 = vpop.permute.xlu1 %436  ;;  %v3662_v55 = vadd.f32 %v433_v62, %v406_v26  ;;  %v2561_v63 = vadd.s32 4294967169, %v1023_v58  ;;  %vm1908_vm11 = vc.u32 %v3642_v10, %v3675_v14  ;;  %5600 = vst [vmem:[#allocation35_spill] sm:$0xff] %v3702_v20  ;;  %v1909_v26 = vadd.s32 1, %v3676_v48 }
 0x10b   : > { %v3653_v0 = vadd.f32 %v437_v3, %v3447_v2  ;;  %v1889_v2 = vsel %vm1885_vm7, %v3573_v5, %v1888_v40  ;;  %v3689_v5 = vsel %vm1574_vm9, %v3644_v28, 920167782  ;;  %5601 = vst [vmem:[#allocation36_spill] sm:$0xff] %v3704_v25  ;;  %v1257_v3 = vshrl.u32 %v5582_v32, %v3658_v57 }
 0x10c   : > { %5598 = vst [vmem:[#allocation33_spill] sm:$0xff] %v3662_v55  ;;  %v1890_v31 = vsel %vm1884_vm8, %v1887_v15, %v1889_v2  ;;  %v2035_v40 = vand.u32 2147483647, %v2034_v7  ;;  %v1358_v44 = vshrl.u32 %v5585_v43, %v3692_v42  ;;  %v3719_v1 = vshrl.u32 %v5582_v32, %v3692_v42 }
 0x10d   : > { %5595 = vst [vmem:[#allocation30_spill] sm:$0xff] %v3653_v0  ;;  %v1906_v56 = vmul.u32 %v1899_v30, %v1890_v31  ;;  %v1029_v33 = vadd.s32 1, %v2561_v63  ;;  %v1910_v58 = vsel %vm1908_vm11, %v1909_v26, %v3676_v48  ;;  %v3722_v18 = vor.u32 %v1254_v51, %v1253_v12 }
 0x10e   : > { %vm1134_vm13 = vcmp.gt.s32.totalorder %v1133_v46, 0  ;;  %v2037_v39 = vcvt.s32.f32 %v2030_v22  ;;  %v1256_v2 = vshll.u32 %v5585_v43, %v3629_v36  ;;  %vm1262_vm14 = vcmp.lt.s32.totalorder %v3704_v25, 4 }
 0x10f   : > { %v3681_v38 = vpop.permute.xlu1 %221  ;;  %5602 = vst [vmem:[#allocation37_spill] sm:$0xff] %v3722_v18  ;;  %v1911_v15 = vadd.s32 %v1910_v58, %v1906_v56  ;;  %v1357_v30 = vshll.u32 %v5584_v41, %v3660_v61  ;;  %v3729_v8 = vand.u32 3, %v2048_v59  ;;  %v3733_v23 = vshll.u32 %v5585_v43, %v3660_v61 }
 0x110   : > { %vm1366_vm1 = vcmp.lt.s32.totalorder %v3706_v11, 4  ;;  %v2038_v48 = vmul.f32 %v2037_v39, %v2035_v40  ;;  %v1258_v63 = vor.u32 %v1257_v3, %v1256_v2  ;;  %vm1030_vm3 = vcmp.gt.s32.totalorder %v1029_v33, 0 }
 0x111   : > { %v1912_v7 = vadd.s32 536870912, %v1911_v15  ;;  %v3736_v31 = vor.u32 %v1358_v44, %v1357_v30  ;;  %v1135_v51 = vsel %vm1134_vm13, %v1133_v46, 0  ;;  %v3743_v59 = vsel %vm1262_vm14, %v3722_v18, 920167782 }
 0x112   : > { %5603 = vst [vmem:[#allocation38_spill] sm:$0xff] %v3743_v59  ;;  %v918_v3 = vand.u32 2139095040, %v3653_v0  ;;  %v1661_v56 = vshrl.u32 %v5581_v49, %v3471_v21  ;;  %v1664_v46 = vshrl.u32 %v5579_v60, %v3471_v21  ;;  %v1667_v44 = vshrl.u32 %v5584_v41, %v3471_v21 }
 0x113   : > { %v3713_v62 = vpop.permute.xlu1 %226  ;;  %v3747_v12 = vshrl.u32 %v1912_v7, 30  ;;  %v1031_v58 = vsel %vm1030_vm3, %v1029_v33, 0  ;;  %v3757_v39 = vand.u32 31, %v1135_v51  ;;  %v2039_v2 = vxor.u32 2147483648, %v2038_v48 }
 0x114   : > { %v814_v7 = vand.u32 2139095040, %v3662_v55  ;;  %v1660_v26 = vshll.u32 %v5583_v52, %v3442_v53  ;;  %v1663_v40 = vshll.u32 %v5581_v49, %v3442_v53  ;;  %v1666_v0 = vshll.u32 %v5579_v60, %v3442_v53 }
 0x115   : > { %5604 = vst [vmem:[#allocation39_spill] sm:$0xff] %v3757_v39  ;;  %v1914_v30 = vshll.u32 %v3747_v12, 30  ;;  %v3769_v61 = vsel %vm1262_vm14, %v1258_v63, 1326507024  ;;  %v3774_v33 = vsel %vm1366_vm1, %v3736_v31, 920167782 }
 0x116   : > { %5605 = vst [vmem:[#allocation40_spill] sm:$0xff] %v3769_v61  ;;  %5606 = vst [vmem:[#allocation41_spill] sm:$0xff] %v3774_v33  ;;  %v5607_v18 = vand.u32 2147483647, %v3356_v9  ;;  %v919_v36 = vshrl.u32 %v918_v3, 23  ;;  %v1662_v57 = vor.u32 %v1661_v56, %v1660_v26  ;;  %v1665_v28 = vor.u32 %v1664_v46, %v1663_v40 }
 0x117   : > { %v3776_v42 = vsub.s32 %v1911_v15, %v1914_v30  ;;  %v1668_v20 = vor.u32 %v1667_v44, %v1666_v0  ;;  %v3780_v53 = vand.u32 31, %v1031_v58  ;;  %v3782_v25 = vshrl.u32 %v1135_v51, 5 }
 0x118   : > { %v3738_v22 = vpop.permute.xlu1 %324  ;;  %v1650_v59 = vand.u32 8388607, %v5607_v18  ;;  %v3788_v33 = vshrl.u32 %v1031_v58, 5  ;;  %v3791_v15 = vsub.s32 32, %v3757_v39  ;;  %v2040_v18 = vsel %vm1957_vm0, %v2039_v2, %v2038_v48 }
 0x119   : > { %5608 = vst [vmem:[#allocation42_spill] sm:$0xff] %v3782_v25  ;;  %v1917_v63 = vsub.s32 0, %v3776_v42  ;;  %v815_v26 = vshrl.u32 %v814_v7, 23  ;;  %vm1675_vm5 = vcmp.lt.s32.totalorder %v3488_v16, 1  ;;  %vm1677_vm6 = vcmp.lt.s32.totalorder %v3488_v16, 3 }
 0x11a   : > { %5610 = vst [vmem:[#allocation44_spill] sm:$0xff] %v3791_v15  ;;  %v1651_v40 = vor.u32 8388608, %v1650_v59  ;;  %v2557_v51 = vadd.s32 4294967169, %v919_v36  ;;  %v1685_v3 = vsel %vm1677_vm6, %v1668_v20, %v3542_v47  ;;  %v3806_v48 = vsub.s32 32, %v3780_v53 }
 0x11b   : > { %v2594_v0 = vmin.u32 %v1917_v63, %v3776_v42  ;;  %v2043_v59 = vsel %vm3590_vm4, %v3249_v35, %v2040_v18  ;;  %v1687_v36 = vsel %vm1675_vm5, %v1665_v28, %v1668_v20  ;;  %vm1676_vm0 = vcmp.lt.s32.totalorder %v3488_v16, 2 }
 0x11c   : > { %v1680_v46 = vsel %vm1678_vm15, %v1668_v20, 2102212464  ;;  %v1689_v47 = vsel %vm1677_vm6, %v3512_v19, %v3559_v54  ;;  %v1691_v2 = vshll.u32 %v1651_v40, 8  ;;  %2866 = vcosq.f32 %v2043_v59 }
 0x11d   : > { %v429_v55 = vpop.permute.xlu1 %428  ;;  %v1919_v56 = vclz %v2594_v0  ;;  %v1690_v58 = vsel %vm1676_vm0, %v1687_v36, %v1689_v47  ;;  %v925_v30 = vadd.s32 1, %v2557_v51  ;;  %v1681_v0 = vsel %vm1677_vm6, %v1665_v28, %v1680_v46 }
 0x11e   : > { %v3786_v61 = vadd.f32 %v429_v55, %v3684_v37  ;;  %v303_v55 = vmul.f32 %v3240_v27, %v3681_v38  ;;  %v1683_v37 = vsel %vm1675_vm5, %v1662_v57, %v1665_v28  ;;  %v1659_v38 = vshrl.u32 %v5583_v52, %v3471_v21 }
 0x11f   : > { %v2595_v44 = vadd.s32 4294967294, %v1919_v56  ;;  %v1686_v6 = vsel %vm1676_vm0, %v1683_v37, %v1685_v3  ;;  %v2553_v21 = vadd.s32 4294967169, %v815_v26  ;;  %v1150_v26 = vshrl.u32 %v5585_v43, %v3791_v15 }
 0x120   : > { %5609 = vst [vmem:[#allocation43_spill] sm:$0xff] %v3786_v61  ;;  %v403_v7 = vadd.f32 %v3402_v29, %v303_v55  ;;  %v1679_v20 = vsel %vm1675_vm5, %v1659_v38, %v1662_v57  ;;  %v3829_v63 = vmul.u32.u64.low %v1691_v2, %v1690_v58  ;;  %v3830_v18 = vmul.u32.u64.high %v1691_v2, %v1690_v58, %v3829_v63 }
 0x121   : > { %vm2596_vm4 = vcmp.lt.s32.totalorder %v2595_v44, 0  ;;  %v421_v54 = vpop.permute.xlu1 %420  ;;  %v3836_v37 = vmul.u32.u64.low %v1691_v2, %v1686_v6  ;;  %v3837_v40 = vmul.u32.u64.high %v1691_v2, %v1686_v6, %v3836_v37  ;;  %v1149_v29 = vshll.u32 %v5584_v41, %v3757_v39 }
 0x122   : > { %v3832_v19 = vsel %vm2596_vm4, 0, %v2595_v44  ;;  %v1153_v57 = vshrl.u32 %v5582_v32, %v3791_v15  ;;  %2868 = vsinq.f32 %v2043_v59  ;;  %v821_v55 = vadd.s32 1, %v2553_v21 }
 0x123   : > { %v1927_v51 = vsub.s32 4294967266, %v3832_v19  ;;  %v710_v3 = vand.u32 2139095040, %v3786_v61  ;;  %v3848_v28 = vadd.f32 %v421_v54, %v403_v7  ;;  %v1046_v56 = vshrl.u32 %v5585_v43, %v3806_v48 }
 0x124   : > { %v1049_v36 = vshrl.u32 %v5582_v32, %v3806_v48  ;;  %v1152_v38 = vshll.u32 %v5585_v43, %v3757_v39  ;;  %v1682_v46 = vsel %vm1676_vm0, %v1679_v20, %v1681_v0  ;;  %v1045_v59 = vshll.u32 %v5584_v41, %v3780_v53 }
 0x125   : > { %5611 = vst [vmem:[#allocation45_spill] sm:$0xff] %v3848_v28  ;;  %vm926_vm15 = vcmp.gt.s32.totalorder %v925_v30, 0  ;;  %vm1700_vm7 = vc.u32 %v3830_v18, %v3836_v37  ;;  %v1701_v47 = vadd.s32 1, %v3837_v40  ;;  %v1048_v44 = vshll.u32 %v5585_v43, %v3780_v53 }
 0x126   : > { %v3865_v6 = vor.u32 %v1150_v26, %v1149_v29  ;;  %v1154_v58 = vor.u32 %v1153_v57, %v1152_v38  ;;  %v1928_v21 = vadd.s32 127, %v1927_v51  ;;  %vm822_vm8 = vcmp.gt.s32.totalorder %v821_v55, 0 }
 0x127   : > { %v711_v7 = vshrl.u32 %v710_v3, 23  ;;  %v1698_v16 = vmul.u32 %v1691_v2, %v1682_v46  ;;  %v1702_v20 = vsel %vm1700_vm7, %v1701_v47, %v3837_v40  ;;  %v3868_v63 = vor.u32 %v1046_v56, %v1045_v59 }
 0x128   : > { %5612 = vst [vmem:[#allocation46_spill] sm:$0xff] %v3865_v6  ;;  %v1050_v54 = vor.u32 %v1049_v36, %v1048_v44  ;;  %v927_v0 = vsel %vm926_vm15, %v925_v30, 0  ;;  %v1923_v61 = vsub.s32 32, %v3832_v19  ;;  %v5614_v15 = vor.u32 %v3719_v1, %v3733_v23 }
 0x129   : > { %5613 = vst [vmem:[#allocation47_spill] sm:$0xff] %v3868_v63  ;;  %vm1054_vm11 = vcmp.lt.s32.totalorder %v3788_v33, 4  ;;  %vm5534_vm13 = vcmp.lt.s32.totalorder %v3782_v25, 4  ;;  %v1703_v2 = vadd.s32 %v1702_v20, %v1698_v16  ;;  %vm2054_vm3 = vcmp.eq.s32.totalorder %v3729_v8, 2  ;;  %v2867_v3 = vpop.eup %2866 }
 0x12a   : > { %v3876_v29 = vsel %vm1366_vm1, %v5614_v15, 1326507024  ;;  %v3883_v40 = vsel %vm5534_vm13, %v3865_v6, 920167782  ;;  %v3886_v30 = vsel %vm822_vm8, %v821_v55, 0  ;;  %v1907_v1 = vadd.s32 %v3675_v14, %v3642_v10 }
 0x12b   : > { %5615 = vst [vmem:[#allocation48_spill] sm:$0xff] %v3883_v40  ;;  %v1929_v23 = vshll.u32 %v1928_v21, 23  ;;  %v3892_v15 = vsel %vm5534_vm13, %v1154_v58, 1326507024  ;;  %v3894_v26 = vand.u32 31, %v927_v0  ;;  %v2549_v57 = vadd.s32 4294967169, %v711_v7 }
 0x12c   : > { %5616 = vst [vmem:[#allocation49_spill] sm:$0xff] %v3892_v15  ;;  %v1704_v51 = vadd.s32 536870912, %v1703_v2  ;;  %v3899_v56 = vsel %vm1054_vm11, %v3868_v63, 920167782  ;;  %v3903_v55 = vsel %vm1054_vm11, %v1050_v54, 1326507024  ;;  %v3907_v10 = vmul.f32 %v3240_v27, %v3713_v62 }
 0x12d   : > { %5617 = vst [vmem:[#allocation50_spill] sm:$0xff] %v3894_v26  ;;  %v1925_v14 = vshrl.u32 %v1907_v1, %v1923_v61  ;;  %v3910_v36 = vand.u32 31, %v3886_v30  ;;  %v1924_v38 = vshll.u32 %v3776_v42, %v3832_v19  ;;  %vm2051_vm5 = vcmp.eq.s32.totalorder %v3729_v8, 0 }
 0x12e   : > { %v3914_v46 = vshrl.u32 %v1704_v51, 30  ;;  %v1930_v47 = vor.u32 4788187, %v1929_v23  ;;  %v1453_v44 = vshrl.u32 %v5581_v49, %v3517_v34  ;;  %v1456_v27 = vshrl.u32 %v5579_v60, %v3517_v34  ;;  %v2930_v23 = vld [vmem:[%s3230_s21 + $0x1] ss:$0 sm:$0xff]  ;;  %s2935_s21 = sshll.u32 %s3035_s20, 4  ;;  %s2936_s21 = int_to_ptr.vmem [resolvable:$false] %s2935_s21 }
 0x12f   : > { %5618 = vst [vmem:[#allocation51_spill] sm:$0xff] %v3910_v36  ;;  %v1459_v61 = vshrl.u32 %v5584_v41, %v3517_v34  ;;  %v2055_v62 = vxor.u32 2147483648, %v2867_v3  ;;  %v3925_v42 = vsub.s32 32, %v3894_v26  ;;  %v717_v19 = vadd.s32 1, %v2549_v57  ;;  %v2869_v21 = vpop.eup %2868  ;;  %s2937_s24 = scalar_lea.vmem %s2936_s21, 4096  ;;  %p2938_p4 = scmp.lt.s32.totalorder %s5394_s7, %s2936_s21 }
 0x130   : > { %v1706_v58 = vshll.u32 %v3914_v46, 30  ;;  %v1926_v7 = vor.u32 %v1925_v14, %v1924_v38  ;;  %v1452_v16 = vshll.u32 %v5583_v52, %v3494_v50  ;;  %v1455_v20 = vshll.u32 %v5581_v49, %v3494_v50  ;;  %p2939_p5 = scmp.lt.s32.totalorder %s2937_s24, %s2931_s11 }
 0x131   : > { %v1458_v54 = vshll.u32 %v5579_v60, %v3494_v50  ;;  %v3934_v1 = vshrl.u32 %v927_v0, 5  ;;  %v388_v51 = vmul.f32 %v2930_v23, %v3738_v22  ;;  %v5620_v57 = vand.u32 2147483647, %v3371_v45 }
 0x132   : > { %v3938_v59 = vsub.s32 %v1703_v2, %v1706_v58  ;;  %v1931_v14 = vand.u32 2147483647, %v1930_v47  ;;  %v1454_v38 = vor.u32 %v1453_v44, %v1452_v16  ;;  %v1457_v15 = vor.u32 %v1456_v27, %v1455_v20  ;;  %v5621_v58 = vld [vmem:[#allocation27_spill] sm:$0xff]  ;;  %p2940_p6 = por %p2939_p5, %p2938_p4 }
 0x133   : > { %5619 = vst [vmem:[#allocation52_spill] sm:$0xff] %v3934_v1  ;;  %v1442_v6 = vand.u32 8388607, %v5620_v57  ;;  %v1460_v40 = vor.u32 %v1459_v61, %v1458_v54  ;;  %v2052_v25 = vxor.u32 2147483648, %v2869_v21  ;;  %v2056_v39 = vsel %vm2054_vm3, %v2055_v62, %v2869_v21 }
 0x134   : > { %v941_v50 = vshll.u32 %v5584_v41, %v3894_v26  ;;  %v1709_v0 = vsub.s32 0, %v3938_v59  ;;  %vm1853_vm6 = vcmp.lt.s32.totalorder %v3346_v4, 0  ;;  %vm2050_vm0 = vcmp.lt.s32.totalorder %v3729_v8, 2  ;;  %p2941_p7 = pnand %p2940_p6, %p2934_p2 }
 0x135   : > { %v942_v22 = vshrl.u32 %v5585_v43, %v3925_v42  ;;  %v1933_v2 = vcvt.s32.f32 %v1926_v7  ;;  %v1937_v47 = vsub.s32 4, %v3747_v12  ;;  %vm718_vm4 = vcmp.gt.s32.totalorder %v717_v19, 0 }
 0x136   : > { %v2586_v44 = vmin.u32 %v1709_v0, %v3938_v59  ;;  %v1443_v27 = vor.u32 8388608, %v1442_v6  ;;  %vm1467_vm15 = vcmp.lt.s32.totalorder %v3530_v24, 1  ;;  %vm1469_vm7 = vcmp.lt.s32.totalorder %v3530_v24, 3 }
 0x137   : > { %v1934_v61 = vmul.f32 %v1933_v2, %v1931_v14  ;;  %v1475_v62 = vsel %vm1467_vm15, %v1454_v38, %v1457_v15  ;;  %v1477_v21 = vsel %vm1469_vm7, %v1460_v40, %v5621_v58  ;;  %v1479_v7 = vsel %vm1467_vm15, %v1457_v15, %v1460_v40  ;;  %v425_v58 = vpop.permute.xlu1 %424 }
 0x138   : > { %vm2047_vm8 = vweird.f32 %v3249_v35  ;;  %v2053_v6 = vsel %vm2051_vm5, %v2867_v3, %v2052_v25  ;;  %v5622_v16 = vand.u32 2147483647, %v3346_v4  ;;  %v719_v54 = vsel %vm718_vm4, %v717_v19, 0  ;;  %v5625_v25 = vld [vmem:[#allocation24_spill] sm:$0xff] }
 0x139   : > { %v1711_v23 = vclz %v2586_v44  ;;  %v1451_v57 = vshrl.u32 %v5583_v52, %v3517_v34  ;;  %v502_v14 = vand.u32 2139095040, %v3848_v28  ;;  %vm1468_vm13 = vcmp.lt.s32.totalorder %v3530_v24, 2 }
 0x13a   : > { %vm3967_vm3 = vcmp.le.f32.partialorder %v5622_v16, 0.7853982  ;;  %v1472_v0 = vsel %vm1470_vm2, %v1460_v40, 2102212464  ;;  %v1481_v3 = vsel %vm1469_vm7, %v5625_v25, %v3673_v17  ;;  %v1478_v19 = vsel %vm1468_vm13, %v1475_v62, %v1477_v21 }
 0x13b   : > { %v2587_v2 = vadd.s32 4294967294, %v1711_v23  ;;  %v1482_v44 = vsel %vm1468_vm13, %v1479_v7, %v1481_v3  ;;  %v1483_v34 = vshll.u32 %v1443_v27, 8  ;;  %v1935_v16 = vxor.u32 2147483648, %v1934_v61 }
 0x13c   : > { %v3985_v28 = vand.u32 31, %v719_v54  ;;  %v1471_v40 = vsel %vm1467_vm15, %v1451_v57, %v1454_v38  ;;  %v404_v63 = vadd.f32 %v388_v51, %v3907_v10  ;;  %v1473_v17 = vsel %vm1469_vm7, %v1457_v15, %v1472_v0 }
 0x13d   : > { %vm2588_vm2 = vcmp.lt.s32.totalorder %v2587_v2, 0  ;;  %v3992_v23 = vmul.u32.u64.low %v1483_v34, %v1482_v44  ;;  %v3993_v25 = vmul.u32.u64.high %v1483_v34, %v1482_v44, %v3992_v23  ;;  %v2057_v38 = vsel %vm2050_vm0, %v2053_v6, %v2056_v39 }
 0x13e   : > { %5626 = vst [vmem:[#allocation27_spill] sm:$0xff] %v3985_v28  ;;  %v3995_v62 = vsel %vm2588_vm2, 0, %v2587_v2  ;;  %v3997_v21 = vmul.u32.u64.low %v1483_v34, %v1478_v19  ;;  %v3998_v27 = vmul.u32.u64.high %v1483_v34, %v1478_v19, %v3997_v21  ;;  %v4001_v7 = vadd.f32 %v425_v58, %v404_v63 }
 0x13f   : > { %v4007_v10 = vshrl.u32 %v5582_v32, %v3925_v42  ;;  %v1938_v15 = vsel %vm1853_vm6, %v1937_v47, %v3747_v12  ;;  %v503_v51 = vshrl.u32 %v502_v14, 23  ;;  %v4013_v57 = vshrl.u32 %v3886_v30, 5  ;;  %v2221_v30 = vpop.permute.xlu0 %2220 }
 0x140   : > { %5627 = vst [vmem:[#allocation24_spill] sm:$0xff] %v4001_v7  ;;  %v4016_v0 = vsub.s32 32, %v3910_v36  ;;  %v1719_v63 = vsub.s32 4294967266, %v3995_v62  ;;  %v1474_v8 = vsel %vm1468_vm13, %v1471_v40, %v1473_v17  ;;  %v4021_v39 = vor.u32 %v942_v22, %v941_v50 }
 0x141   : > { %5628 = vst [vmem:[#allocation53_spill] sm:$0xff] %v4013_v57  ;;  %v944_v6 = vshll.u32 %v5585_v43, %v3894_v26  ;;  %v1936_v12 = vsel %vm1853_vm6, %v1935_v16, %v1934_v61  ;;  %vm1492_vm5 = vc.u32 %v3993_v25, %v3997_v21  ;;  %v2058_v47 = vsel %vm2047_vm8, nan, %v2057_v38 }
 0x142   : > { %5629 = vst [vmem:[#allocation54_spill] sm:$0xff] %v4016_v0  ;;  %5630 = vst [vmem:[#allocation55_spill] sm:$0xff] %v4021_v39  ;;  %v1940_v14 = vsel %vm3967_vm3, 0, %v1938_v15  ;;  %v4034_v24 = vsub.s32 32, %v3985_v28  ;;  %v1493_v50 = vadd.s32 1, %v3998_v27  ;;  %vm950_vm13 = vcmp.lt.s32.totalorder %v3934_v1, 4 }
 0x143   : > { %v946_v22 = vor.u32 %v4007_v10, %v944_v6  ;;  %v2541_v61 = vadd.s32 4294967169, %v503_v51  ;;  %v1490_v3 = vmul.u32 %v1483_v34, %v1474_v8  ;;  %v1939_v2 = vsel %vm3967_vm3, %v3346_v4, %v1936_v12 }
 0x144   : > { %5631 = vst [vmem:[#allocation56_spill] sm:$0xff] %v4034_v24  ;;  %v1715_v35 = vsub.s32 32, %v3995_v62  ;;  %v1720_v19 = vadd.s32 127, %v1719_v63  ;;  %v1494_v44 = vsel %vm1492_vm5, %v1493_v50, %v3998_v27  ;;  %v4044_v58 = vmul.f32 %v2221_v30, %v2058_v47  ;;  %v5634_v63 = vld [vmem:[#allocation13_spill] sm:$0xff] }
 0x145   : > { %v4049_v16 = vsel %vm950_vm13, %v4021_v39, 920167782  ;;  %v1944_v40 = vadd.s32 3, %v1940_v14  ;;  %v1495_v17 = vadd.s32 %v1494_v44, %v1490_v3  ;;  %vm1645_vm6 = vcmp.lt.s32.totalorder %v3356_v9, 0 }
 0x146   : > { %5632 = vst [vmem:[#allocation57_spill] sm:$0xff] %v4049_v16  ;;  %v4052_v34 = vshrl.u32 %v719_v54, 5  ;;  %v733_v20 = vshll.u32 %v5584_v41, %v3985_v28  ;;  %v734_v23 = vshrl.u32 %v5585_v43, %v4034_v24  ;;  %v1699_v27 = vadd.s32 %v3836_v37, %v3830_v18  ;;  %v5635_v37 = vld [vmem:[#allocation10_spill] sm:$0xff] }
 0x147   : > { %2870 = vcosq.f32 %v1939_v2  ;;  %v4062_v38 = vshll.u32 %v5585_v43, %v3985_v28  ;;  %v509_v10 = vadd.s32 1, %v2541_v61  ;;  %v1496_v15 = vadd.s32 536870912, %v1495_v17 }
 0x148   : > { %5633 = vst [vmem:[#allocation58_spill] sm:$0xff] %v4052_v34  ;;  %2872 = vsinq.f32 %v1939_v2  ;;  %v1717_v51 = vshrl.u32 %v1699_v27, %v1715_v35  ;;  %v1721_v54 = vshll.u32 %v1720_v19, 23  ;;  %v2083_v8 = vshrl.u32 %v5584_v41, %v5634_v63  ;;  %v5640_v27 = vld [vmem:[#allocation6_spill] sm:$0xff] }
 0x149   : > { %v4066_v6 = vshrl.u32 %v1496_v15, 30  ;;  %v2077_v12 = vshrl.u32 %v5581_v49, %v5634_v63  ;;  %v2080_v18 = vshrl.u32 %v5579_v60, %v5634_v63  ;;  %v2082_v30 = vshll.u32 %v5579_v60, %v5635_v37 }
 0x14a   : > { %v4074_v47 = vor.u32 %v734_v23, %v733_v20  ;;  %v737_v14 = vshrl.u32 %v5582_v32, %v4034_v24  ;;  %v5637_v50 = vand.u32 2147483647, %v3356_v9  ;;  %v1716_v3 = vshll.u32 %v3938_v59, %v3995_v62 }
 0x14b   : > { %v1729_v2 = vsub.s32 4, %v3914_v46  ;;  %v1498_v35 = vshll.u32 %v4066_v6, 30  ;;  %v2076_v19 = vshll.u32 %v5583_v52, %v5635_v37  ;;  %v2079_v44 = vshll.u32 %v5581_v49, %v5635_v37 }
 0x14c   : > { %5636 = vst [vmem:[#allocation13_spill] sm:$0xff] %v4074_v47  ;;  %vm4080_vm0 = vcmp.le.f32.partialorder %v5637_v50, 0.7853982  ;;  %v2084_v20 = vor.u32 %v2083_v8, %v2082_v30  ;;  %vm742_vm4 = vcmp.lt.s32.totalorder %v4052_v34, 4  ;;  %v1722_v23 = vor.u32 4788187, %v1721_v54 }
 0x14d   : > { %vm510_vm15 = vcmp.gt.s32.totalorder %v509_v10, 0  ;;  %v5641_v15 = vand.u32 2147483647, %v5640_v27  ;;  %v1718_v24 = vor.u32 %v1717_v51, %v1716_v3  ;;  %v4095_v59 = vsub.s32 %v1495_v17, %v1498_v35 }
 0x14e   : > { %v2078_v62 = vor.u32 %v2077_v12, %v2076_v19  ;;  %v2081_v28 = vor.u32 %v2080_v18, %v2079_v44  ;;  %v4099_v57 = vsel %vm950_vm13, %v946_v22, 1326507024  ;;  %v4101_v36 = vand.u32 3, %v1944_v40  ;;  %v5644_v18 = vld [vmem:[#allocation12_spill] sm:$0xff] }
 0x14f   : > { %v2066_v50 = vand.u32 8388607, %v5641_v15  ;;  %5642 = vst [vmem:[#allocation10_spill] sm:$0xff] %v4099_v57  ;;  %v738_v8 = vor.u32 %v737_v14, %v4062_v38  ;;  %v4107_v54 = vsel %vm742_vm4, %v4074_v47, 920167782  ;;  %v1730_v17 = vsel %vm1645_vm6, %v1729_v2, %v3914_v46  ;;  %v5645_v2 = vld [vmem:[#allocation20_spill] sm:$0xff] }
 0x150   : > { %5643 = vst [vmem:[#allocation6_spill] sm:$0xff] %v4107_v54  ;;  %v511_v51 = vsel %vm510_vm15, %v509_v10, 0  ;;  %v1501_v12 = vsub.s32 0, %v4095_v59  ;;  %v2096_v22 = vsel %vm2094_vm12, %v2084_v20, 2102212464  ;;  %v2075_v38 = vshrl.u32 %v5583_v52, %v5634_v63 }
 0x151   : > { %v1723_v37 = vand.u32 2147483647, %v1722_v23  ;;  %v2067_v40 = vor.u32 8388608, %v2066_v50  ;;  %vm2091_vm7 = vcmp.lt.s32.totalorder %v5644_v18, 1  ;;  %v1725_v30 = vcvt.s32.f32 %v1718_v24 }
 0x152   : > { %v2578_v14 = vmin.u32 %v1501_v12, %v4095_v59  ;;  %vm2093_vm8 = vcmp.lt.s32.totalorder %v5644_v18, 3  ;;  %v2099_v3 = vsel %vm2091_vm7, %v2078_v62, %v2081_v28  ;;  %v2095_v46 = vsel %vm2091_vm7, %v2075_v38, %v2078_v62  ;;  %v5646_v62 = vld [vmem:[#allocation21_spill] sm:$0xff]  ;;  %v5647_v12 = vld [vmem:[#allocation19_spill] sm:$0xff] }
 0x153   : > { %v2097_v10 = vsel %vm2093_vm8, %v2081_v28, %v2096_v22  ;;  %v2101_v35 = vsel %vm2093_vm8, %v2084_v20, %v5645_v2  ;;  %v2103_v19 = vsel %vm2091_vm7, %v2081_v28, %v2084_v20  ;;  %v1732_v44 = vsel %vm4080_vm0, 0, %v1730_v17 }
 0x154   : > { %v1503_v23 = vclz %v2578_v14  ;;  %v606_v15 = vand.u32 2139095040, %v4001_v7  ;;  %vm2092_vm12 = vcmp.lt.s32.totalorder %v5644_v18, 2  ;;  %v2871_v63 = vpop.eup %2870  ;;  %vm1947_vm3 = vcmp.eq.s32.totalorder %v4101_v36, 0  ;;  %v5648_v14 = vld [vmem:[#allocation5_spill] sm:$0xff] }
 0x155   : > { %vm1950_vm2 = vcmp.eq.s32.totalorder %v4101_v36, 2  ;;  %v1726_v24 = vmul.f32 %v1725_v30, %v1723_v37  ;;  %v2102_v50 = vsel %vm2092_vm12, %v2099_v3, %v2101_v35  ;;  %v2105_v22 = vsel %vm2093_vm8, %v5647_v12, %v5646_v62  ;;  %v2873_v28 = vpop.eup %2872  ;;  %v5651_v12 = vld [vmem:[#allocation9_spill] sm:$0xff] }
 0x156   : > { %v2107_v38 = vshll.u32 %v2067_v40, 8  ;;  %v2579_v20 = vadd.s32 4294967294, %v1503_v23  ;;  %v2098_v2 = vsel %vm2092_vm12, %v2095_v46, %v2097_v10  ;;  %v2106_v17 = vsel %vm2092_vm12, %v2103_v19, %v2105_v22 }
 0x157   : > { %v5550_v54 = vand.u32 2147483647, %v5648_v14  ;;  %vm1946_vm5 = vcmp.lt.s32.totalorder %v4101_v36, 2  ;;  %v4140_v37 = vsel %vm742_vm4, %v738_v8, 1326507024  ;;  %v4142_v40 = vshrl.u32 %v511_v51, 5 }
 0x158   : > { %v4130_v7 = vmul.u32.u64.low %v2107_v38, %v2106_v17  ;;  %v4131_v47 = vmul.u32.u64.high %v2107_v38, %v2106_v17, %v4130_v7  ;;  %v4133_v18 = vmul.u32.u64.low %v2107_v38, %v2102_v50  ;;  %v4134_v0 = vmul.u32.u64.high %v2107_v38, %v2102_v50, %v4133_v18  ;;  %5649 = vst [vmem:[#allocation12_spill] sm:$0xff] %v4140_v37  ;;  %v5652_v17 = vld [vmem:[#allocation7_spill] sm:$0xff] }
 0x159   : > { %5650 = vst [vmem:[#allocation20_spill] sm:$0xff] %v4142_v40  ;;  %v4144_v30 = vand.u32 31, %v511_v51  ;;  %vm2580_vm15 = vcmp.lt.s32.totalorder %v2579_v20, 0  ;;  %v1951_v3 = vxor.u32 2147483648, %v2871_v63  ;;  %v1736_v46 = vadd.s32 3, %v1732_v44 }
 0x15a   : > { %v1506_v10 = vsel %vm2580_vm15, 0, %v2579_v20  ;;  %v607_v35 = vshrl.u32 %v606_v15, 23  ;;  %v1948_v7 = vxor.u32 2147483648, %v2873_v28  ;;  %v1727_v19 = vxor.u32 2147483648, %v1726_v24 }
 0x15b   : > { %v1511_v23 = vsub.s32 4294967266, %v1506_v10  ;;  %v2114_v50 = vmul.u32 %v2107_v38, %v2098_v2  ;;  %vm2116_vm7 = vc.u32 %v4131_v47, %v4133_v18  ;;  %v2117_v62 = vadd.s32 1, %v4134_v0 }
 0x15c   : > { %v1754_v8 = vand.u32 8388607, %v5550_v54  ;;  %v1765_v51 = vshrl.u32 %v5581_v49, %v5651_v12  ;;  %v1764_v44 = vshll.u32 %v5583_v52, %v5652_v17  ;;  %v1767_v15 = vshll.u32 %v5581_v49, %v5652_v17 }
 0x15d   : > { %v1512_v22 = vadd.s32 127, %v1511_v23  ;;  %v1768_v38 = vshrl.u32 %v5579_v60, %v5651_v12  ;;  %v1507_v20 = vsub.s32 32, %v1506_v10  ;;  %v2118_v2 = vsel %vm2116_vm7, %v2117_v62, %v4134_v0 }
 0x15e   : > { %v1770_v40 = vshll.u32 %v5579_v60, %v5652_v17  ;;  %v1771_v54 = vshrl.u32 %v5584_v41, %v5651_v12  ;;  %v1949_v23 = vsel %vm1947_vm3, %v2871_v63, %v1948_v7  ;;  %v1952_v37 = vsel %vm1950_vm2, %v1951_v3, %v2873_v28  ;;  %v5653_v7 = vld [vmem:[#allocation11_spill] sm:$0xff] }
 0x15f   : > { %v1491_v34 = vadd.s32 %v3997_v21, %v3993_v25  ;;  %v2119_v16 = vadd.s32 %v2118_v2, %v2114_v50  ;;  %v1513_v39 = vshll.u32 %v1512_v22, 23  ;;  %v1766_v57 = vor.u32 %v1765_v51, %v1764_v44  ;;  %v5654_v51 = vld [vmem:[#allocation17_spill] sm:$0xff] }
 0x160   : > { %v1769_v1 = vor.u32 %v1768_v38, %v1767_v15  ;;  %v1772_v0 = vor.u32 %v1771_v54, %v1770_v40  ;;  %v4171_v62 = vsub.s32 32, %v4144_v30  ;;  %v4175_v17 = vshll.u32 %v5584_v41, %v4144_v30 }
 0x161   : > { %v2545_v26 = vadd.s32 4294967169, %v607_v35  ;;  %v2120_v63 = vadd.s32 536870912, %v2119_v16  ;;  %vm1943_vm8 = vweird.f32 %v3346_v4  ;;  %v1953_v28 = vsel %vm1946_vm5, %v1949_v23, %v1952_v37 }
 0x162   : > { %v1728_v25 = vsel %vm1645_vm6, %v1727_v19, %v1726_v24  ;;  %v1509_v21 = vshrl.u32 %v1491_v34, %v1507_v20  ;;  %v1755_v3 = vor.u32 8388608, %v1754_v8  ;;  %v1508_v54 = vshll.u32 %v4095_v59, %v1506_v10  ;;  %v5656_v8 = vld [vmem:[#allocation14_spill] sm:$0xff] }
 0x163   : > { %v4183_v40 = vshrl.u32 %v2120_v63, 30  ;;  %vm1779_vm12 = vcmp.lt.s32.totalorder %v5653_v7, 1  ;;  %vm1781_vm3 = vcmp.lt.s32.totalorder %v5653_v7, 3  ;;  %v1514_v35 = vor.u32 4788187, %v1513_v39  ;;  %v5655_v39 = vld [vmem:[#allocation18_spill] sm:$0xff] }
 0x164   : > { %v1787_v50 = vsel %vm1779_vm12, %v1766_v57, %v1769_v1  ;;  %v1789_v36 = vsel %vm1781_vm3, %v1772_v0, %v5654_v51  ;;  %v1791_v37 = vsel %vm1779_vm12, %v1769_v1, %v1772_v0  ;;  %v1731_v34 = vsel %vm4080_vm0, %v3356_v9, %v1728_v25  ;;  %v5657_v25 = vld [vmem:[#allocation8_spill] sm:$0xff] }
 0x165   : > { %v2122_v24 = vshll.u32 %v4183_v40, 30  ;;  %v1763_v59 = vshrl.u32 %v5583_v52, %v5651_v12  ;;  %v1784_v10 = vsel %vm1782_vm10, %v1772_v0, 2102212464  ;;  %v1510_v19 = vor.u32 %v1509_v21, %v1508_v54 }
 0x166   : > { %vm1780_vm6 = vcmp.lt.s32.totalorder %v5653_v7, 2  ;;  %v1793_v22 = vsel %vm1781_vm3, %v5656_v8, %v5655_v39  ;;  %v1795_v44 = vshll.u32 %v1755_v3, 8  ;;  %v1515_v20 = vand.u32 2147483647, %v1514_v35 }
 0x167   : > { %v4203_v15 = vsub.s32 %v2119_v16, %v2122_v24  ;;  %v1783_v61 = vsel %vm1779_vm12, %v1763_v59, %v1766_v57  ;;  %v1790_v38 = vsel %vm1780_vm6, %v1787_v50, %v1789_v36  ;;  %v1794_v12 = vsel %vm1780_vm6, %v1791_v37, %v1793_v22  ;;  %v5658_v59 = vld [vmem:[#allocation23_spill] sm:$0xff] }
 0x168   : > { %v1785_v2 = vsel %vm1781_vm3, %v1769_v1, %v1784_v10  ;;  %v4211_v23 = vmul.u32.u64.low %v1795_v44, %v1794_v12  ;;  %v4212_v0 = vmul.u32.u64.high %v1795_v44, %v1794_v12, %v4211_v23  ;;  %v4214_v63 = vand.u32 3, %v1736_v46 }
 0x169   : > { %v4218_v16 = vshrl.u32 %v5585_v43, %v4171_v62  ;;  %v2125_v57 = vsub.s32 0, %v4203_v15  ;;  %v1539_v21 = vand.u32 2147483647, %v5657_v25  ;;  %v1517_v3 = vcvt.s32.f32 %v1510_v19  ;;  %v5659_v19 = vld [vmem:[#allocation25_spill] sm:$0xff] }
 0x16a   : > { %v4222_v54 = vadd.s32 1, %v2545_v26  ;;  %v4224_v35 = vmul.u32.u64.low %v1795_v44, %v1790_v38  ;;  %v4225_v50 = vmul.u32.u64.high %v1795_v44, %v1790_v38, %v4224_v35  ;;  %v4230_v1 = vsel %vm1943_vm8, nan, %v1953_v28 }
 0x16b   : > { %2874 = vcosq.f32 %v1731_v34  ;;  %v2602_v46 = vmin.u32 %v2125_v57, %v4203_v15  ;;  %v1786_v51 = vsel %vm1780_vm6, %v1783_v61, %v1785_v2  ;;  %v4235_v36 = vmul.f32 %v1517_v3, %v1515_v20 }
 0x16c   : > { %2876 = vsinq.f32 %v1731_v34  ;;  %v1521_v26 = vsub.s32 4, %v4066_v6  ;;  %v2115_v37 = vadd.s32 %v4133_v18, %v4131_v47  ;;  %vm2061_vm10 = vcmp.lt.s32.totalorder %v5640_v27, 0 }
 0x16d   : > { %v2127_v24 = vclz %v2602_v46  ;;  %v2145_v4 = vsub.s32 4, %v4183_v40  ;;  %vm1804_vm0 = vc.u32 %v4212_v0, %v4224_v35  ;;  %v1546_v28 = vand.u32 8388607, %v1539_v21 }
 0x16e   : > { %v1802_v7 = vmul.u32 %v1795_v44, %v1786_v51  ;;  %v1805_v34 = vadd.s32 1, %v4225_v50  ;;  %v1556_v10 = vshll.u32 %v5583_v52, %v5658_v59  ;;  %v1557_v47 = vshrl.u32 %v5581_v49, %v5659_v19 }
 0x16f   : > { %v2603_v18 = vadd.s32 4294967294, %v2127_v24  ;;  %v1555_v39 = vshrl.u32 %v5583_v52, %v5659_v19  ;;  %v1559_v8 = vshll.u32 %v5581_v49, %v5658_v59  ;;  %v1560_v22 = vshrl.u32 %v5579_v60, %v5659_v19 }
 0x170   : > { %vm1437_vm2 = vcmp.lt.s32.totalorder %v3371_v45, 0  ;;  %v1806_v44 = vsel %vm1804_vm0, %v1805_v34, %v4225_v50  ;;  %v1558_v61 = vor.u32 %v1557_v47, %v1556_v10  ;;  %v1562_v38 = vshll.u32 %v5579_v60, %v5658_v59 }
 0x171   : > { %v1563_v12 = vshrl.u32 %v5584_v41, %v5659_v19  ;;  %v5660_v20 = vand.u32 2147483647, %v5640_v27  ;;  %vm2604_vm15 = vcmp.lt.s32.totalorder %v2603_v18, 0  ;;  %v1807_v23 = vadd.s32 %v1806_v44, %v1802_v7 }
 0x172   : > { %v1547_v57 = vor.u32 8388608, %v1546_v28  ;;  %v1561_v3 = vor.u32 %v1560_v22, %v1559_v8  ;;  %v2130_v46 = vsel %vm2604_vm15, 0, %v2603_v18  ;;  %vm1571_vm7 = vcmp.lt.s32.totalorder %v3583_v13, 1 }
 0x173   : > { %vm4265_vm5 = vcmp.le.f32.partialorder %v5660_v20, 0.7853982  ;;  %v1564_v51 = vor.u32 %v1563_v12, %v1562_v38  ;;  %vm1572_vm8 = vcmp.lt.s32.totalorder %v3583_v13, 2  ;;  %v2131_v50 = vsub.s32 32, %v2130_v46  ;;  %v5667_v12 = vld [vmem:[#allocation29_spill] sm:$0xff] }
 0x174   : > { %v2135_v24 = vsub.s32 4294967266, %v2130_v46  ;;  %v1808_v34 = vadd.s32 536870912, %v1807_v23  ;;  %vm1573_vm12 = vcmp.lt.s32.totalorder %v3583_v13, 3  ;;  %v2132_v59 = vshll.u32 %v4203_v15, %v2130_v46 }
 0x175   : > { %v1576_v10 = vsel %vm1574_vm9, %v1564_v51, 2102212464  ;;  %v1579_v28 = vsel %vm1571_vm7, %v1558_v61, %v1561_v3  ;;  %v1581_v7 = vsel %vm1573_vm12, %v1564_v51, %v3689_v5  ;;  %v5663_v19 = vand.u32 2147483647, %v3371_v45  ;;  %v5666_v5 = vld [vmem:[#allocation35_spill] sm:$0xff] }
 0x176   : > { %v2133_v18 = vshrl.u32 %v2115_v37, %v2131_v50  ;;  %v2136_v8 = vadd.s32 127, %v2135_v24  ;;  %v1809_v22 = vshrl.u32 %v1808_v34, 30  ;;  %v1583_v15 = vsel %vm1571_vm7, %v1561_v3, %v1564_v51 }
 0x177   : > { %vm4282_vm3 = vcmp.le.f32.partialorder %v5663_v19, 0.7853982  ;;  %v2146_v44 = vsel %vm2061_vm10, %v2145_v4, %v4183_v40  ;;  %v1582_v38 = vsel %vm1572_vm8, %v1579_v28, %v1581_v7  ;;  %v1585_v20 = vsel %vm1573_vm12, %v5667_v12, %v5666_v5 }
 0x178   : > { %v1587_v46 = vshll.u32 %v1547_v57, 8  ;;  %vm1749_vm9 = vcmp.lt.s32.totalorder %v5648_v14, 0  ;;  %vm1742_vm6 = vcmp.eq.s32.totalorder %v4214_v63, 2  ;;  %v2134_v37 = vor.u32 %v2133_v18, %v2132_v59  ;;  %v2875_v40 = vpop.eup %2874  ;;  %v2217_v59 = vpop.permute.xlu0 %2216 }
 0x179   : > { %v2137_v50 = vshll.u32 %v2136_v8, 23  ;;  %v1810_v51 = vshll.u32 %v1809_v22, 30  ;;  %v1575_v24 = vsel %vm1571_vm7, %v1555_v39, %v1558_v61  ;;  %vm1739_vm0 = vcmp.eq.s32.totalorder %v4214_v63, 0  ;;  %v2877_v7 = vpop.eup %2876 }
 0x17a   : > { %v1577_v4 = vsel %vm1573_vm12, %v1561_v3, %v1576_v10  ;;  %v1586_v34 = vsel %vm1572_vm8, %v1583_v15, %v1585_v20  ;;  %v4306_v57 = vmul.u32.u64.low %v1587_v46, %v1582_v38  ;;  %v4307_v28 = vmul.u32.u64.high %v1587_v46, %v1582_v38, %v4306_v57 }
 0x17b   : > { %v1522_v19 = vsel %vm1437_vm2, %v1521_v26, %v4066_v6  ;;  %vm614_vm15 = vcmp.gt.s32.totalorder %v4222_v54, 0  ;;  %v2138_v39 = vor.u32 4788187, %v2137_v50  ;;  %v4314_v61 = vsub.s32 %v1807_v23, %v1810_v51 }
 0x17c   : > { %v1519_v3 = vxor.u32 2147483648, %v4235_v36  ;;  %v2148_v10 = vsel %vm4265_vm5, 0, %v2146_v44  ;;  %v4319_v18 = vmul.u32.u64.low %v1587_v46, %v1586_v34  ;;  %v4320_v8 = vmul.u32.u64.high %v1587_v46, %v1586_v34, %v4319_v18 }
 0x17d   : > { %v2139_v15 = vand.u32 2147483647, %v2138_v39  ;;  %v2141_v38 = vcvt.s32.f32 %v2134_v37  ;;  %v1813_v5 = vsub.s32 0, %v4314_v61  ;;  %v1578_v6 = vsel %vm1572_vm8, %v1575_v24, %v1577_v4 }
 0x17e   : > { %v4326_v26 = vmul.f32 %v2217_v59, %v4230_v1  ;;  %v1743_v23 = vxor.u32 2147483648, %v2875_v40  ;;  %v1833_v12 = vsub.s32 4, %v1809_v22  ;;  %v1597_v20 = vadd.s32 1, %v4307_v28 }
 0x17f   : > { %v1740_v50 = vxor.u32 2147483648, %v2877_v7  ;;  %v4332_v44 = vsel %vm614_vm15, %v4222_v54, 0  ;;  %v2142_v51 = vmul.f32 %v2141_v38, %v2139_v15  ;;  %v2590_v37 = vmin.u32 %v1813_v5, %v4314_v61  ;;  %v5671_v15 = vld [vmem:[#allocation15_spill] sm:$0xff] }
 0x180   : > { %v1524_v13 = vsel %vm4282_vm3, 0, %v1522_v19  ;;  %v2152_v24 = vadd.s32 3, %v2148_v10  ;;  %v1594_v4 = vmul.u32 %v1587_v46, %v1578_v6  ;;  %vm1596_vm7 = vc.u32 %v4320_v8, %v4306_v57 }
 0x181   : > { %v1520_v1 = vsel %vm1437_vm2, %v1519_v3, %v4235_v36  ;;  %v2143_v34 = vxor.u32 2147483648, %v2142_v51  ;;  %v1815_v59 = vclz %v2590_v37  ;;  %v1598_v54 = vsel %vm1596_vm7, %v1597_v20, %v4307_v28  ;;  %v5672_v20 = vld [vmem:[#allocation31_spill] sm:$0xff] }
 0x182   : > { %vm1738_vm8 = vcmp.lt.s32.totalorder %v4214_v63, 2  ;;  %v1744_v39 = vsel %vm1742_vm6, %v1743_v23, %v2877_v7  ;;  %v5668_v19 = vand.u32 2147483647, %v5648_v14  ;;  %v1834_v10 = vsel %vm1749_vm9, %v1833_v12, %v1809_v22 }
 0x183   : > { %v1599_v18 = vadd.s32 %v1598_v54, %v1594_v4  ;;  %v1741_v36 = vsel %vm1739_vm0, %v2875_v40, %v1740_v50  ;;  %v2144_v28 = vsel %vm2061_vm10, %v2143_v34, %v2142_v51  ;;  %v2591_v3 = vadd.s32 4294967294, %v1815_v59 }
 0x184   : > { %vm4348_vm12 = vcmp.le.f32.partialorder %v5668_v19, 0.7853982  ;;  %v5558_v38 = vand.u32 2147483647, %v5671_v15  ;;  %v4362_v7 = vsel %vm4282_vm3, %v3371_v45, %v1520_v1  ;;  %v2147_v5 = vsel %vm4265_vm5, %v5640_v27, %v2144_v28 }
 0x185   : > { %v4367_v22 = vand.u32 3, %v2152_v24  ;;  %v1600_v6 = vadd.s32 536870912, %v1599_v18  ;;  %2878 = vcosq.f32 %v2147_v5  ;;  %v1803_v40 = vadd.s32 %v4224_v35, %v4212_v0  ;;  %v5673_v24 = vld [vmem:[#allocation28_spill] sm:$0xff] }
 0x186   : > { %vm2592_vm10 = vcmp.lt.s32.totalorder %v2591_v3, 0  ;;  %v1836_v23 = vsel %vm4348_vm12, 0, %v1834_v10  ;;  %2880 = vsinq.f32 %v2147_v5  ;;  %v1245_v50 = vshrl.u32 %v5581_v49, %v5672_v20 }
 0x187   : > { %v1818_v12 = vsel %vm2592_vm10, 0, %v2591_v3  ;;  %v4373_v47 = vshrl.u32 %v1600_v6, 30  ;;  %v1234_v37 = vand.u32 8388607, %v5558_v38  ;;  %v1244_v4 = vshll.u32 %v5583_v52, %v5673_v24 }
 0x188   : > { %v1819_v2 = vsub.s32 32, %v1818_v12  ;;  %v1823_v51 = vsub.s32 4294967266, %v1818_v12  ;;  %v1820_v0 = vshll.u32 %v4314_v61, %v1818_v12  ;;  %v1247_v1 = vshll.u32 %v5581_v49, %v5673_v24 }
 0x189   : > { %v1602_v35 = vshll.u32 %v4373_v47, 30  ;;  %v1248_v34 = vshrl.u32 %v5579_v60, %v5672_v20  ;;  %v1250_v19 = vshll.u32 %v5579_v60, %v5673_v24  ;;  %v1251_v10 = vshrl.u32 %v5584_v41, %v5672_v20 }
 0x18a   : > { %v1821_v59 = vshrl.u32 %v1803_v40, %v1819_v2  ;;  %v1824_v54 = vadd.s32 127, %v1823_v51  ;;  %v4391_v28 = vadd.s32 3, %v1524_v13  ;;  %v1246_v61 = vor.u32 %v1245_v50, %v1244_v4  ;;  %v5674_v50 = vld [vmem:[#allocation36_spill] sm:$0xff] }
 0x18b   : > { %v4393_v3 = vsub.s32 %v1599_v18, %v1602_v35  ;;  %v1249_v5 = vor.u32 %v1248_v34, %v1247_v1  ;;  %v4397_v6 = vsel %vm1738_vm8, %v1741_v36, %v1744_v39  ;;  %v1252_v40 = vor.u32 %v1251_v10, %v1250_v19 }
 0x18c   : > { %v1822_v12 = vor.u32 %v1821_v59, %v1820_v0  ;;  %v1825_v38 = vshll.u32 %v1824_v54, 23  ;;  %2882 = vcosq.f32 %v4362_v7  ;;  %vm2158_vm2 = vcmp.eq.s32.totalorder %v4367_v22, 2  ;;  %v5676_v59 = vld [vmem:[#allocation40_spill] sm:$0xff]  ;;  %v5677_v54 = vld [vmem:[#allocation37_spill] sm:$0xff] }
 0x18d   : > { %v1840_v2 = vadd.s32 3, %v1836_v23  ;;  %v1605_v51 = vsub.s32 0, %v4393_v3  ;;  %vm2155_vm5 = vcmp.eq.s32.totalorder %v4367_v22, 0  ;;  %v1235_v18 = vor.u32 8388608, %v1234_v37  ;;  %v5675_v23 = vld [vmem:[#allocation38_spill] sm:$0xff] }
 0x18e   : > { %v1826_v13 = vor.u32 4788187, %v1825_v38  ;;  %vm1259_vm3 = vcmp.lt.s32.totalorder %v5674_v50, 1  ;;  %vm1261_vm6 = vcmp.lt.s32.totalorder %v5674_v50, 3  ;;  %vm2154_vm0 = vcmp.lt.s32.totalorder %v4367_v22, 2 }
 0x18f   : > { %v1595_v63 = vadd.s32 %v4306_v57, %v4320_v8  ;;  %v2582_v39 = vmin.u32 %v1605_v51, %v4393_v3  ;;  %v1267_v36 = vsel %vm1259_vm3, %v1246_v61, %v1249_v5  ;;  %v1269_v24 = vsel %vm1261_vm6, %v1252_v40, %v5675_v23 }
 0x190   : > { %vm2151_vm15 = vweird.f32 %v5640_v27  ;;  %v1827_v38 = vand.u32 2147483647, %v1826_v13  ;;  %v1829_v37 = vcvt.s32.f32 %v1822_v12  ;;  %v1264_v4 = vsel %vm1262_vm14, %v1252_v40, 2102212464 }
 0x191   : > { %v1271_v0 = vsel %vm1259_vm3, %v1249_v5, %v1252_v40  ;;  %v1607_v57 = vclz %v2582_v39  ;;  %v1625_v8 = vsub.s32 4, %v4373_v47  ;;  %v1243_v35 = vshrl.u32 %v5583_v52, %v5672_v20 }
 0x192   : > { %vm1260_vm7 = vcmp.lt.s32.totalorder %v5674_v50, 2  ;;  %vm1541_vm8 = vcmp.lt.s32.totalorder %v5657_v25, 0  ;;  %v1830_v1 = vmul.f32 %v1829_v37, %v1827_v38  ;;  %v1273_v19 = vsel %vm1261_vm6, %v5677_v54, %v5676_v59  ;;  %v2879_v12 = vpop.eup %2878 }
 0x193   : > { %v1270_v34 = vsel %vm1260_vm7, %v1267_v36, %v1269_v24  ;;  %v1275_v10 = vshll.u32 %v1235_v18, 8  ;;  %v2583_v40 = vadd.s32 4294967294, %v1607_v57  ;;  %v1263_v51 = vsel %vm1259_vm3, %v1243_v35, %v1246_v61  ;;  %v2881_v39 = vpop.eup %2880  ;;  %v2225_v57 = vpop.permute.xlu1 %2224 }
 0x194   : > { %v1265_v20 = vsel %vm1261_vm6, %v1249_v5, %v1264_v4  ;;  %v1274_v13 = vsel %vm1260_vm7, %v1271_v0, %v1273_v19  ;;  %v2159_v23 = vxor.u32 2147483648, %v2879_v12  ;;  %v1831_v36 = vxor.u32 2147483648, %v1830_v1  ;;  %v5678_v19 = vld [vmem:[#allocation16_spill] sm:$0xff] }
 0x195   : > { %v4436_v24 = vmul.u32.u64.low %v1275_v10, %v1274_v13  ;;  %v4437_v38 = vmul.u32.u64.high %v1275_v10, %v1274_v13, %v4436_v24  ;;  %v2156_v37 = vxor.u32 2147483648, %v2881_v39  ;;  %vm2584_vm14 = vcmp.lt.s32.totalorder %v2583_v40, 0 }
 0x196   : > { %v4439_v18 = vmul.u32.u64.low %v1275_v10, %v1270_v34  ;;  %v4440_v59 = vmul.u32.u64.high %v1275_v10, %v1270_v34, %v4439_v18  ;;  %vm1735_vm10 = vweird.f32 %v3356_v9  ;;  %v2160_v61 = vsel %vm2158_vm2, %v2159_v23, %v2881_v39 }
 0x197   : > { %v1832_v5 = vsel %vm1749_vm9, %v1831_v36, %v1830_v1  ;;  %v1610_v4 = vsel %vm2584_vm14, 0, %v2583_v40  ;;  %v1266_v0 = vsel %vm1260_vm7, %v1263_v51, %v1265_v20  ;;  %v2157_v35 = vsel %vm2155_vm5, %v2879_v12, %v2156_v37 }
 0x198   : > { %v1835_v34 = vsel %vm4348_vm12, %v5648_v14, %v1832_v5  ;;  %v1611_v54 = vsub.s32 32, %v1610_v4  ;;  %v1331_v13 = vand.u32 2147483647, %v5678_v19  ;;  %v2161_v39 = vsel %vm2154_vm0, %v2157_v35, %v2160_v61  ;;  %v5679_v61 = vld [vmem:[#allocation34_spill] sm:$0xff] }
 0x199   : > { %2884 = vcosq.f32 %v1835_v34  ;;  %v1612_v1 = vshll.u32 %v4393_v3, %v1610_v4  ;;  %v1615_v40 = vsub.s32 4294967266, %v1610_v4  ;;  %v2162_v50 = vsel %vm2151_vm15, nan, %v2161_v39  ;;  %v4463_v46 = vpop.eup %2882 }
 0x19a   : > { %2886 = vsinq.f32 %v1835_v34  ;;  %v1613_v51 = vshrl.u32 %v1595_v63, %v1611_v54  ;;  %vm1284_vm9 = vc.u32 %v4437_v38, %v4439_v18  ;;  %v2242_v12 = vmul.f32 %v2225_v57, %v2162_v50 }
 0x19b   : > { %2888 = vsinq.f32 %v4362_v7  ;;  %v1616_v20 = vadd.s32 127, %v1615_v40  ;;  %v1285_v22 = vadd.s32 1, %v4440_v59  ;;  %v4467_v23 = vand.u32 3, %v1840_v2  ;;  %v5680_v2 = vld [vmem:[#allocation32_spill] sm:$0xff] }
 0x19c   : > { %v1614_v3 = vor.u32 %v1613_v51, %v1612_v1  ;;  %v1626_v27 = vsel %vm1541_vm8, %v1625_v8, %v4373_v47  ;;  %v1282_v36 = vmul.u32 %v1275_v10, %v1266_v0  ;;  %v2266_v63 = vpack.c.bf16 %v2242_v12, %v4044_v58 }
 0x19d   : > { %v1617_v24 = vshll.u32 %v1616_v20, 23  ;;  %v1286_v37 = vsel %vm1284_vm9, %v1285_v22, %v4440_v59  ;;  %v1349_v7 = vshrl.u32 %v5581_v49, %v5679_v61  ;;  %v1338_v4 = vand.u32 8388607, %v1331_v13 }
 0x19e   : > { %v1287_v5 = vadd.s32 %v1286_v37, %v1282_v36  ;;  %v1348_v57 = vshll.u32 %v5583_v52, %v5680_v2  ;;  %v1351_v35 = vshll.u32 %v5581_v49, %v5680_v2  ;;  %2635 = vmatprep.subr.bf16.mxu0 %v2266_v63  ;;  %2667 = vmatprep.subr.bf16.mxu1 %v2266_v63  ;;  %v1746_v59 = vsel %vm1735_vm10, nan, %v4397_v6 }
 0x19f   : > { %v1618_v47 = vor.u32 4788187, %v1617_v24  ;;  %v1352_v58 = vshrl.u32 %v5579_v60, %v5679_v61  ;;  %v1354_v8 = vshll.u32 %v5579_v60, %v5680_v2  ;;  %v1355_v10 = vshrl.u32 %v5584_v41, %v5679_v61  ;;  %2636 = vmatpush3.bf16.msra.mxu0 %v2266_v63  ;;  %2675 = vmatpush3.bf16.msra.mxu1 %v2266_v63  ;;  %v5683_v63 = vld [vmem:[#allocation41_spill] sm:$0xff] }
 0x1a0   : > { %vm4493_vm12 = vcmp.le.f32.partialorder %v1539_v21, 0.7853982  ;;  %v1621_v34 = vcvt.s32.f32 %v1614_v3  ;;  %v1288_v54 = vadd.s32 536870912, %v1287_v5  ;;  %vm1843_vm2 = vcmp.eq.s32.totalorder %v4467_v23, 0 }
 0x1a1   : > { %v1619_v39 = vand.u32 2147483647, %v1618_v47  ;;  %v1350_v1 = vor.u32 %v1349_v7, %v1348_v57  ;;  %v1353_v40 = vor.u32 %v1352_v58, %v1351_v35  ;;  %v1356_v50 = vor.u32 %v1355_v10, %v1354_v8 }
 0x1a2   : > { %vm1842_vm5 = vcmp.lt.s32.totalorder %v4467_v23, 2  ;;  %vm1846_vm3 = vcmp.eq.s32.totalorder %v4467_v23, 2  ;;  %v1628_v9 = vsel %vm4493_vm12, 0, %v1626_v27  ;;  %v4502_v6 = vshrl.u32 %v1288_v54, 30 }
 0x1a3   : > { %vm1365_vm6 = vcmp.lt.s32.totalorder %v3706_v11, 3  ;;  %vm1839_vm0 = vweird.f32 %v5648_v14  ;;  %v1622_v21 = vmul.f32 %v1621_v34, %v1619_v39  ;;  %v1339_v51 = vor.u32 8388608, %v1338_v4 }
 0x1a4   : > { %v1347_v12 = vshrl.u32 %v5583_v52, %v5679_v61  ;;  %v1377_v20 = vsel %vm1365_vm6, %v3736_v31, %v3876_v29  ;;  %v1290_v22 = vshll.u32 %v4502_v6, 30  ;;  %vm1363_vm15 = vcmp.lt.s32.totalorder %v3706_v11, 1 }
 0x1a5   : > { %vm1364_vm7 = vcmp.lt.s32.totalorder %v3706_v11, 2  ;;  %v1368_v3 = vsel %vm1366_vm1, %v1356_v50, 2102212464  ;;  %v1623_v27 = vxor.u32 2147483648, %v1622_v21  ;;  %v1371_v36 = vsel %vm1363_vm15, %v1350_v1, %v1353_v40 }
 0x1a6   : > { %v1373_v24 = vsel %vm1365_vm6, %v1356_v50, %v5683_v63  ;;  %v1375_v37 = vsel %vm1363_vm15, %v1353_v40, %v1356_v50  ;;  %v2885_v61 = vpop.eup %2884  ;;  %v1632_v7 = vadd.s32 3, %v1628_v9  ;;  %v4520_v4 = vsub.s32 %v1287_v5, %v1290_v22  ;;  %v2213_v9 = vpop.permute.xlu1 %2212 }
 0x1a7   : > { %v1367_v31 = vsel %vm1363_vm15, %v1347_v12, %v1350_v1  ;;  %v1378_v29 = vsel %vm1364_vm7, %v1375_v37, %v1377_v20  ;;  %v2887_v2 = vpop.eup %2886  ;;  %v1847_v57 = vxor.u32 2147483648, %v2885_v61  ;;  %v1624_v35 = vsel %vm1541_vm8, %v1623_v27, %v1622_v21 }
 0x1a8   : > { %v1369_v47 = vsel %vm1365_vm6, %v1353_v40, %v1368_v3  ;;  %v1379_v58 = vshll.u32 %v1339_v51, 8  ;;  %v4528_v8 = vpop.eup %2888  ;;  %v1844_v10 = vxor.u32 2147483648, %v2887_v2  ;;  %v1627_v5 = vsel %vm4493_vm12, %v5657_v25, %v1624_v35  ;;  %v2209_v40 = vpop.permute.xlu0 %2208  ;;  %v5684_v3 = vld [vmem:[#allocation26_spill] sm:$0xff] }
 0x1a9   : > { %v1293_v34 = vsub.s32 0, %v4520_v4  ;;  %v1374_v54 = vsel %vm1364_vm7, %v1371_v36, %v1373_v24  ;;  %v1848_v39 = vsel %vm1846_vm3, %v1847_v57, %v2887_v2  ;;  %2890 = vcosq.f32 %v1627_v5 }
 0x1aa   : > { %v4538_v1 = vmul.u32.u64.low %v1379_v58, %v1378_v29  ;;  %v4539_v50 = vmul.u32.u64.high %v1379_v58, %v1378_v29, %v4538_v1  ;;  %v1845_v21 = vsel %vm1843_vm2, %v2885_v61, %v1844_v10  ;;  %2892 = vsinq.f32 %v1627_v5 }
 0x1ab   : > { %v2570_v0 = vmin.u32 %v1293_v34, %v4520_v4  ;;  %v1370_v51 = vsel %vm1364_vm7, %v1367_v31, %v1369_v47  ;;  %v1849_v12 = vsel %vm1842_vm5, %v1845_v21, %v1848_v39  ;;  %v1019_v27 = vand.u32 2147483647, %v5684_v3 }
 0x1ac   : > { %v4548_v20 = vmul.u32.u64.low %v1379_v58, %v1374_v54  ;;  %v4549_v22 = vmul.u32.u64.high %v1379_v58, %v1374_v54, %v4548_v20  ;;  %v4554_v36 = vand.u32 3, %v4391_v28  ;;  %v4557_v63 = vand.u32 31, %v4332_v44 }
 0x1ad   : > { %v1850_v24 = vsel %vm1839_vm0, nan, %v1849_v12  ;;  %v1295_v11 = vclz %v2570_v0  ;;  %v4561_v37 = vmul.f32 %v2209_v40, %v1746_v59  ;;  %v1532_v23 = vxor.u32 2147483648, %v4528_v8 }
 0x1ae   : > { %v1535_v61 = vxor.u32 2147483648, %v4463_v46  ;;  %v2239_v31 = vmul.f32 %v2213_v9, %v1850_v24  ;;  %v4565_v29 = vand.u32 3, %v1632_v7  ;;  %v1386_v57 = vmul.u32 %v1379_v58, %v1370_v51 }
 0x1af   : > { %v2571_v2 = vadd.s32 4294967294, %v1295_v11  ;;  %vm1388_vm1 = vc.u32 %v4539_v50, %v4548_v20  ;;  %v1389_v14 = vadd.s32 1, %v4549_v22  ;;  %v1026_v59 = vand.u32 8388607, %v1019_v27 }
 0x1b0   : > { %v2265_v28 = vpack.c.bf16 %v4326_v26, %v2239_v31  ;;  %v1037_v35 = vshrl.u32 %v5581_v49, %v3806_v48  ;;  %v1036_v7 = vshll.u32 %v5583_v52, %v3780_v53  ;;  %v1040_v47 = vshrl.u32 %v5579_v60, %v3806_v48 }
 0x1b1   : > { %vm2572_vm8 = vcmp.lt.s32.totalorder %v2571_v2, 0  ;;  %v1043_v58 = vshrl.u32 %v5584_v41, %v3806_v48  ;;  %v1390_v10 = vsel %vm1388_vm1, %v1389_v14, %v4549_v22  ;;  %v1039_v5 = vshll.u32 %v5581_v49, %v3780_v53  ;;  %v5685_v14 = vld [vmem:[#allocation47_spill] sm:$0xff] }
 0x1b2   : > { %2637 = vmatprep.subr.bf16.mxu0 %v2265_v28  ;;  %2668 = vmatprep.subr.bf16.mxu1 %v2265_v28  ;;  %v1298_v26 = vsel %vm2572_vm8, 0, %v2571_v2  ;;  %v1042_v34 = vshll.u32 %v5579_v60, %v3780_v53  ;;  %vm1634_vm14 = vcmp.lt.s32.totalorder %v4565_v29, 2  ;;  %vm1635_vm10 = vcmp.eq.s32.totalorder %v4565_v29, 0 }
 0x1b3   : > { %2638 = vmatpush3.bf16.msra.mxu0 %v2265_v28  ;;  %2676 = vmatpush3.bf16.msra.mxu1 %v2265_v28  ;;  %v1299_v54 = vsub.s32 32, %v1298_v26  ;;  %v1303_v39 = vsub.s32 4294967266, %v1298_v26  ;;  %v1391_v1 = vadd.s32 %v1390_v10, %v1386_v57  ;;  %vm1631_vm9 = vweird.f32 %v5657_v25 }
 0x1b4   : > { %v1283_v40 = vadd.s32 %v4439_v18, %v4437_v38  ;;  %v1038_v9 = vor.u32 %v1037_v35, %v1036_v7  ;;  %v1041_v21 = vor.u32 %v1040_v47, %v1039_v5  ;;  %v1044_v0 = vor.u32 %v1043_v58, %v1042_v34  ;;  %v2205_v34 = vpop.permute.xlu1 %2204 }
 0x1b5   : > { %vm1638_vm12 = vcmp.eq.s32.totalorder %v4565_v29, 2  ;;  %v1304_v53 = vadd.s32 127, %v1303_v39  ;;  %v1392_v51 = vadd.s32 536870912, %v1391_v1  ;;  %v1027_v12 = vor.u32 8388608, %v1026_v59 }
 0x1b6   : > { %vm1531_vm2 = vcmp.eq.s32.totalorder %v4554_v36, 0  ;;  %vm1534_vm5 = vcmp.eq.s32.totalorder %v4554_v36, 2  ;;  %v1300_v22 = vshll.u32 %v4520_v4, %v1298_v26  ;;  %v1301_v24 = vshrl.u32 %v1283_v40, %v1299_v54  ;;  %v2891_v38 = vpop.eup %2890 }
 0x1b7   : > { %vm1051_vm3 = vcmp.lt.s32.totalorder %v3788_v33, 1  ;;  %vm1052_vm6 = vcmp.lt.s32.totalorder %v3788_v33, 2  ;;  %v1305_v18 = vshll.u32 %v1304_v53, 23  ;;  %v4597_v11 = vshrl.u32 %v1392_v51, 30  ;;  %v2893_v2 = vpop.eup %2892 }
 0x1b8   : > { %vm1053_vm0 = vcmp.lt.s32.totalorder %v3788_v33, 3  ;;  %v1063_v31 = vsel %vm1051_vm3, %v1041_v21, %v1044_v0  ;;  %v1639_v57 = vxor.u32 2147483648, %v2891_v38  ;;  %v1059_v28 = vsel %vm1051_vm3, %v1038_v9, %v1041_v21 }
 0x1b9   : > { %v1061_v4 = vsel %vm1053_vm0, %v1044_v0, %v3899_v56  ;;  %v1065_v59 = vsel %vm1053_vm0, %v5685_v14, %v3903_v55  ;;  %v1636_v35 = vxor.u32 2147483648, %v2893_v2  ;;  %v1306_v7 = vor.u32 4788187, %v1305_v18 }
 0x1ba   : > { %v1394_v47 = vshll.u32 %v4597_v11, 30  ;;  %v1056_v58 = vsel %vm1054_vm11, %v1044_v0, 2102212464  ;;  %vm1229_vm15 = vcmp.lt.s32.totalorder %v5671_v15, 0  ;;  %v1640_v26 = vsel %vm1638_vm12, %v1639_v57, %v2893_v2 }
 0x1bb   : > { %v1302_v10 = vor.u32 %v1301_v24, %v1300_v22  ;;  %v1066_v56 = vsel %vm1052_vm6, %v1063_v31, %v1065_v59  ;;  %v1067_v5 = vshll.u32 %v1027_v12, 8  ;;  %v1637_v55 = vsel %vm1635_vm10, %v2891_v38, %v1636_v35 }
 0x1bc   : > { %v4621_v54 = vsub.s32 %v1391_v1, %v1394_v47  ;;  %v1035_v39 = vshrl.u32 %v5583_v52, %v3806_v48  ;;  %v1062_v40 = vsel %vm1052_vm6, %v1059_v28, %v1061_v4  ;;  %v1641_v0 = vsel %vm1634_vm14, %v1637_v55, %v1640_v26 }
 0x1bd   : > { %v1307_v53 = vand.u32 2147483647, %v1306_v7  ;;  %v4629_v51 = vmul.u32.u64.low %v1067_v5, %v1066_v56  ;;  %v4630_v22 = vmul.u32.u64.high %v1067_v5, %v1066_v56, %v4629_v51  ;;  %v1642_v12 = vsel %vm1631_vm9, nan, %v1641_v0  ;;  %v5692_v56 = vld [vmem:[#allocation39_spill] sm:$0xff] }
 0x1be   : > { %v1397_v24 = vsub.s32 0, %v4621_v54  ;;  %v1055_v1 = vsel %vm1051_vm3, %v1035_v39, %v1038_v9  ;;  %v1057_v48 = vsel %vm1053_vm0, %v1041_v21, %v1056_v58  ;;  %v2237_v38 = vmul.f32 %v2205_v34, %v1642_v12 }
 0x1bf   : > { %v1309_v18 = vcvt.s32.f32 %v1302_v10  ;;  %v4639_v31 = vmul.u32.u64.low %v1067_v5, %v1062_v40  ;;  %v4640_v29 = vmul.u32.u64.high %v1067_v5, %v1062_v40, %v4639_v31  ;;  %vm1333_vm11 = vcmp.lt.s32.totalorder %v5678_v19, 0 }
 0x1c0   : > { %v1533_v25 = vsel %vm1531_vm2, %v4463_v46, %v1532_v23  ;;  %v1536_v9 = vsel %vm1534_vm5, %v1535_v61, %v4528_v8  ;;  %v1313_v21 = vsub.s32 4, %v4502_v6  ;;  %v2574_v2 = vmin.u32 %v1397_v24, %v4621_v54 }
 0x1c1   : > { %v4658_v57 = vshll.u32 %v5585_v43, %v4144_v30  ;;  %v4662_v28 = vshrl.u32 %v5582_v32, %v4171_v62  ;;  %v2264_v23 = vpack.c.bf16 %v4561_v37, %v2237_v38  ;;  %v1310_v4 = vmul.f32 %v1309_v18, %v1307_v53  ;;  %v5686_v37 = vld [vmem:[#allocation22_spill] sm:$0xff] }
 0x1c2   : > { %v4667_v46 = vor.u32 %v4218_v16, %v4175_v17  ;;  %vm1530_vm7 = vcmp.lt.s32.totalorder %v4554_v36, 2  ;;  %v1399_v8 = vclz %v2574_v2  ;;  %v1058_v61 = vsel %vm1052_vm6, %v1055_v1, %v1057_v48 }
 0x1c3   : > { %v4672_v14 = vsel %vm1530_vm7, %v1533_v25, %v1536_v9  ;;  %v4675_v59 = vsub.s32 32, %v4557_v63  ;;  %2639 = vmatprep.subr.bf16.mxu0 %v2264_v23  ;;  %2669 = vmatprep.subr.bf16.mxu1 %v2264_v23  ;;  %vm1076_vm1 = vc.u32 %v4630_v22, %v4639_v31  ;;  %v1123_v35 = vand.u32 2147483647, %v5686_v37 }
 0x1c4   : > { %v5687_v17 = vand.u32 2147483647, %v5671_v15  ;;  %v4689_v33 = vsel %vm1229_vm15, %v1313_v21, %v4502_v6  ;;  %2640 = vmatpush3.bf16.msra.mxu0 %v2264_v23  ;;  %2677 = vmatpush3.bf16.msra.mxu1 %v2264_v23  ;;  %v2575_v36 = vadd.s32 4294967294, %v1399_v8  ;;  %v1417_v7 = vsub.s32 4, %v4597_v11  ;;  %v5693_v6 = vld [vmem:[#allocation44_spill] sm:$0xff] }
 0x1c5   : > { %v1077_v47 = vadd.s32 1, %v4640_v29  ;;  %v1311_v58 = vxor.u32 2147483648, %v1310_v4  ;;  %vm4695_vm14 = vcmp.le.f32.partialorder %v1331_v13, 0.7853982  ;;  %v1074_v10 = vmul.u32 %v1067_v5, %v1058_v61  ;;  %v5694_v61 = vld [vmem:[#allocation42_spill] sm:$0xff] }
 0x1c6   : > { %vm4682_vm8 = vcmp.le.f32.partialorder %v5687_v17, 0.7853982  ;;  %v1140_v34 = vshll.u32 %v5583_v52, %v5692_v56  ;;  %v1141_v55 = vshrl.u32 %v5581_v49, %v5693_v6  ;;  %vm2576_vm10 = vcmp.lt.s32.totalorder %v2575_v36, 0 }
 0x1c7   : > { %v1078_v39 = vsel %vm1076_vm1, %v1077_v47, %v4640_v29  ;;  %v1143_v40 = vshll.u32 %v5581_v49, %v5692_v56  ;;  %v1144_v0 = vshrl.u32 %v5579_v60, %v5693_v6  ;;  %v1387_v13 = vadd.s32 %v4548_v20, %v4539_v50 }
 0x1c8   : > { %v1402_v53 = vsel %vm2576_vm10, 0, %v2575_v36  ;;  %v1079_v5 = vadd.s32 %v1078_v39, %v1074_v10  ;;  %v1130_v51 = vand.u32 8388607, %v1123_v35  ;;  %v1142_v1 = vor.u32 %v1141_v55, %v1140_v34  ;;  %v5697_v10 = vld [vmem:[#allocation46_spill] sm:$0xff] }
 0x1c9   : > { %v1403_v12 = vsub.s32 32, %v1402_v53  ;;  %v1407_v24 = vsub.s32 4294967266, %v1402_v53  ;;  %v1145_v48 = vor.u32 %v1144_v0, %v1143_v40  ;;  %v1418_v38 = vsel %vm1333_vm11, %v1417_v7, %v4597_v11  ;;  %v5695_v7 = vld [vmem:[#allocation48_spill] sm:$0xff] }
 0x1ca   : > { %v1080_v18 = vadd.s32 536870912, %v1079_v5  ;;  %v1146_v29 = vshll.u32 %v5579_v60, %v5692_v56  ;;  %v1147_v50 = vshrl.u32 %v5584_v41, %v5693_v6  ;;  %v1312_v20 = vsel %vm1229_vm15, %v1311_v58, %v1310_v4  ;;  %v5696_v58 = vld [vmem:[#allocation49_spill] sm:$0xff] }
 0x1cb   : > { %v1404_v25 = vshll.u32 %v4621_v54, %v1402_v53  ;;  %v1405_v9 = vshrl.u32 %v1387_v13, %v1403_v12  ;;  %v1408_v21 = vadd.s32 127, %v1407_v24  ;;  %v1131_v23 = vor.u32 8388608, %v1130_v51 }
 0x1cc   : > { %v4722_v2 = vshrl.u32 %v1080_v18, 30  ;;  %v1148_v8 = vor.u32 %v1147_v50, %v1146_v29  ;;  %vm1155_vm9 = vcmp.lt.s32.totalorder %v5694_v61, 1  ;;  %vm1157_vm12 = vcmp.lt.s32.totalorder %v5694_v61, 3 }
 0x1cd   : > { %v1406_v11 = vor.u32 %v1405_v9, %v1404_v25  ;;  %v1409_v17 = vshll.u32 %v1408_v21, 23  ;;  %v1163_v36 = vsel %vm1155_vm9, %v1142_v1, %v1145_v48  ;;  %v1316_v4 = vsel %vm4682_vm8, 0, %v4689_v33 }
 0x1ce   : > { %v1082_v54 = vshll.u32 %v4722_v2, 30  ;;  %v1165_v47 = vsel %vm1157_vm12, %v1148_v8, %v5695_v7  ;;  %v1169_v56 = vsel %vm1157_vm12, %v5697_v10, %v5696_v58  ;;  %v1315_v34 = vsel %vm4682_vm8, %v5671_v15, %v1312_v20 }
 0x1cf   : > { %v1410_v55 = vor.u32 4788187, %v1409_v17  ;;  %v1420_v39 = vsel %vm4695_vm14, 0, %v1418_v38  ;;  %vm1156_vm2 = vcmp.lt.s32.totalorder %v5694_v61, 2  ;;  %v1167_v0 = vsel %vm1155_vm9, %v1145_v48, %v1148_v8 }
 0x1d0   : > { %v4745_v33 = vsub.s32 %v1079_v5, %v1082_v54  ;;  %v1166_v40 = vsel %vm1156_vm2, %v1163_v36, %v1165_v47  ;;  %v1171_v13 = vshll.u32 %v1131_v23, 8  ;;  %v1413_v51 = vcvt.s32.f32 %v1406_v11 }
 0x1d1   : > { %v1411_v53 = vand.u32 2147483647, %v1410_v55  ;;  %vm5698_vm5 = vcmp.lt.s32.totalorder %v5694_v61, 4  ;;  %v1170_v12 = vsel %vm1156_vm2, %v1167_v0, %v1169_v56  ;;  %v1139_v5 = vshrl.u32 %v5583_v52, %v5693_v6  ;;  %v5699_v61 = vld [vmem:[#allocation30_spill] sm:$0xff]  ;;  %v2201_v0 = vpop.permute.xlu0 %2200 }
 0x1d2   : > { %v1160_v16 = vsel %vm5698_vm5, %v1148_v8, 2102212464  ;;  %v1085_v24 = vsub.s32 0, %v4745_v33  ;;  %v4758_v38 = vmul.u32.u64.low %v1171_v13, %v1170_v12  ;;  %v4759_v18 = vmul.u32.u64.high %v1171_v13, %v1170_v12, %v4758_v38 }
 0x1d3   : > { %2894 = vcosq.f32 %v1315_v34  ;;  %v1414_v29 = vmul.f32 %v1413_v51, %v1411_v53  ;;  %v4761_v50 = vmul.u32.u64.low %v1171_v13, %v1166_v40  ;;  %v4762_v20 = vmul.u32.u64.high %v1171_v13, %v1166_v40, %v4761_v50  ;;  %v5700_v51 = vld [vmem:[#allocation50_spill] sm:$0xff] }
 0x1d4   : > { %v1424_v25 = vadd.s32 3, %v1420_v39  ;;  %v2562_v9 = vmin.u32 %v1085_v24, %v4745_v33  ;;  %v1159_v21 = vsel %vm1155_vm9, %v1139_v5, %v1142_v1  ;;  %v1161_v23 = vsel %vm1157_vm12, %v1145_v48, %v1160_v16 }
 0x1d5   : > { %vm1527_vm3 = vweird.f32 %v3371_v45  ;;  %v4772_v6 = vshrl.u32 %v4332_v44, 5  ;;  %v4776_v8 = vshll.u32 %v5584_v41, %v4557_v63  ;;  %v1415_v11 = vxor.u32 2147483648, %v1414_v29 }
 0x1d6   : > { %v4780_v17 = vshrl.u32 %v5585_v43, %v4675_v59  ;;  %v4784_v1 = vshll.u32 %v5585_v43, %v4557_v63  ;;  %2896 = vsinq.f32 %v1315_v34  ;;  %v1087_v48 = vclz %v2562_v9 }
 0x1d7   : > { %v1538_v45 = vsel %vm1527_vm3, nan, %v4672_v14  ;;  %v1320_v36 = vadd.s32 3, %v1316_v4  ;;  %v1416_v44 = vsel %vm1333_vm11, %v1415_v11, %v1414_v29  ;;  %v1162_v54 = vsel %vm1156_vm2, %v1159_v21, %v1161_v23 }
 0x1d8   : > { %vm1021_vm6 = vcmp.lt.s32.totalorder %v5684_v3, 0  ;;  %v1419_v7 = vsel %vm4695_vm14, %v5678_v19, %v1416_v44  ;;  %v4795_v47 = vand.u32 3, %v1424_v25  ;;  %v2563_v58 = vadd.s32 4294967294, %v1087_v48 }
 0x1d9   : > { %vm1180_vm0 = vc.u32 %v4759_v18, %v4761_v50  ;;  %2898 = vcosq.f32 %v1419_v7  ;;  %v1075_v14 = vadd.s32 %v4639_v31, %v4630_v22  ;;  %v1181_v4 = vadd.s32 1, %v4762_v20 }
 0x1da   : > { %v915_v10 = vand.u32 2147483647, %v5699_v61  ;;  %2900 = vsinq.f32 %v1419_v7  ;;  %vm2564_vm15 = vcmp.lt.s32.totalorder %v2563_v58, 0  ;;  %v1105_v56 = vsub.s32 4, %v4722_v2 }
 0x1db   : > { %v1178_v26 = vmul.u32 %v1171_v13, %v1162_v54  ;;  %v1090_v34 = vsel %vm2564_vm15, 0, %v2563_v58  ;;  %v1182_v55 = vsel %vm1180_vm0, %v1181_v4, %v4762_v20  ;;  %v933_v39 = vshrl.u32 %v5581_v49, %v3925_v42 }
 0x1dc   : > { %v936_v40 = vshrl.u32 %v5579_v60, %v3925_v42  ;;  %v1091_v22 = vsub.s32 32, %v1090_v34  ;;  %v1095_v31 = vsub.s32 4294967266, %v1090_v34  ;;  %v932_v16 = vshll.u32 %v5583_v52, %v5700_v51 }
 0x1dd   : > { %v1183_v53 = vadd.s32 %v1182_v55, %v1178_v26  ;;  %v1092_v12 = vshll.u32 %v4745_v33, %v1090_v34  ;;  %v922_v13 = vand.u32 8388607, %v915_v10  ;;  %v935_v24 = vshll.u32 %v5581_v49, %v5700_v51  ;;  %v5704_v34 = vld [vmem:[#allocation10_spill] sm:$0xff]  ;;  %v5705_v55 = vld [vmem:[#allocation55_spill] sm:$0xff] }
 0x1de   : > { %v938_v5 = vshll.u32 %v5579_v60, %v5700_v51  ;;  %v1093_v38 = vshrl.u32 %v1075_v14, %v1091_v22  ;;  %v1096_v29 = vadd.s32 127, %v1095_v31  ;;  %v939_v25 = vshrl.u32 %v5584_v41, %v3925_v42  ;;  %v5703_v14 = vld [vmem:[#allocation52_spill] sm:$0xff] }
 0x1df   : > { %v1184_v20 = vadd.s32 536870912, %v1183_v53  ;;  %v4820_v9 = vmul.f32 %v2201_v0, %v1538_v45  ;;  %v4822_v21 = vand.u32 3, %v1320_v36  ;;  %v934_v33 = vor.u32 %v933_v39, %v932_v16 }
 0x1e0   : > { %v937_v23 = vor.u32 %v936_v40, %v935_v24  ;;  %v4824_v11 = vpop.eup %2894  ;;  %v1094_v48 = vor.u32 %v1093_v38, %v1092_v12  ;;  %v1097_v44 = vshll.u32 %v1096_v29, 23  ;;  %v940_v7 = vor.u32 %v939_v25, %v938_v5  ;;  %v5706_v40 = vld [vmem:[#allocation57_spill] sm:$0xff] }
 0x1e1   : > { %v4826_v54 = vshrl.u32 %v1184_v20, 30  ;;  %vm1430_vm11 = vcmp.eq.s32.totalorder %v4795_v47, 2  ;;  %vm4831_vm7 = vcmp.le.f32.partialorder %v1019_v27, 0.7853982  ;;  %v1106_v45 = vsel %vm1021_vm6, %v1105_v56, %v4722_v2 }
 0x1e2   : > { %v923_v36 = vor.u32 8388608, %v922_v13  ;;  %vm949_vm1 = vcmp.lt.s32.totalorder %v5703_v14, 3  ;;  %vm1426_vm8 = vcmp.lt.s32.totalorder %v4795_v47, 2  ;;  %v1098_v4 = vor.u32 4788187, %v1097_v44 }
 0x1e3   : > { %v1186_v26 = vshll.u32 %v4826_v54, 30  ;;  %vm947_vm14 = vcmp.lt.s32.totalorder %v5703_v14, 1  ;;  %v961_v27 = vsel %vm949_vm1, %v5705_v55, %v5704_v34  ;;  %v2897_v39 = vpop.eup %2896  ;;  %vm1323_vm10 = vcmp.eq.s32.totalorder %v4822_v21, 0 }
 0x1e4   : > { %vm1326_vm9 = vcmp.eq.s32.totalorder %v4822_v21, 2  ;;  %v1327_v2 = vxor.u32 2147483648, %v4824_v11  ;;  %vm1423_vm12 = vweird.f32 %v5678_v19  ;;  %v955_v56 = vsel %vm947_vm14, %v934_v33, %v937_v23 }
 0x1e5   : > { %v957_v0 = vsel %vm949_vm1, %v940_v7, %v5706_v40  ;;  %v959_v22 = vsel %vm947_vm14, %v937_v23, %v940_v7  ;;  %v1099_v31 = vand.u32 2147483647, %v1098_v4  ;;  %v1101_v51 = vcvt.s32.f32 %v1094_v48 }
 0x1e6   : > { %v4857_v16 = vsub.s32 %v1183_v53, %v1186_v26  ;;  %vm948_vm2 = vcmp.lt.s32.totalorder %v5703_v14, 2  ;;  %vm1125_vm5 = vcmp.lt.s32.totalorder %v5686_v37, 0  ;;  %v931_v12 = vshrl.u32 %v5583_v52, %v3925_v42  ;;  %v2899_v38 = vpop.eup %2898 }
 0x1e7   : > { %v952_v13 = vsel %vm950_vm13, %v940_v7, 2102212464  ;;  %v962_v24 = vsel %vm948_vm2, %v959_v22, %v961_v27  ;;  %v963_v5 = vshll.u32 %v923_v36, 8  ;;  %vm1322_vm3 = vcmp.lt.s32.totalorder %v4822_v21, 2  ;;  %v2901_v48 = vpop.eup %2900 }
 0x1e8   : > { %v1324_v29 = vxor.u32 2147483648, %v2897_v39  ;;  %v1102_v53 = vmul.f32 %v1101_v51, %v1099_v31  ;;  %v1189_v20 = vsub.s32 0, %v4857_v16  ;;  %v958_v25 = vsel %vm948_vm2, %v955_v56, %v957_v0 }
 0x1e9   : > { %v1431_v44 = vxor.u32 2147483648, %v2899_v38  ;;  %v951_v42 = vsel %vm947_vm14, %v931_v12, %v934_v33  ;;  %v4873_v7 = vmul.u32.u64.low %v963_v5, %v962_v24  ;;  %v4874_v4 = vmul.u32.u64.high %v963_v5, %v962_v24, %v4873_v7  ;;  %v2197_v33 = vpop.permute.xlu1 %2196 }
 0x1ea   : > { %v1428_v26 = vxor.u32 2147483648, %v2901_v48  ;;  %v1103_v36 = vxor.u32 2147483648, %v1102_v53  ;;  %v2566_v34 = vmin.u32 %v1189_v20, %v4857_v16  ;;  %v953_v55 = vsel %vm949_vm1, %v937_v23, %v952_v13 }
 0x1eb   : > { %vm1427_vm13 = vcmp.eq.s32.totalorder %v4795_v47, 0  ;;  %v1432_v27 = vsel %vm1430_vm11, %v1431_v44, %v2901_v48  ;;  %v4882_v56 = vmul.u32.u64.low %v963_v5, %v958_v25  ;;  %v4883_v40 = vmul.u32.u64.high %v963_v5, %v958_v25, %v4882_v56 }
 0x1ec   : > { %v1429_v0 = vsel %vm1427_vm13, %v2899_v38, %v1428_v26  ;;  %v1108_v22 = vsel %vm4831_vm7, 0, %v1106_v45  ;;  %v1191_v31 = vclz %v2566_v34  ;;  %v1209_v51 = vsub.s32 4, %v4826_v54 }
 0x1ed   : > { %v1433_v23 = vsel %vm1426_vm8, %v1429_v0, %v1432_v27  ;;  %v1104_v12 = vsel %vm1021_vm6, %v1103_v36, %v1102_v53  ;;  %vm4895_vm0 = vcmp.le.f32.partialorder %v1123_v35, 0.7853982  ;;  %v954_v24 = vsel %vm948_vm2, %v951_v42, %v953_v55 }
 0x1ee   : > { %v1325_v45 = vsel %vm1323_vm10, %v4824_v11, %v1324_v29  ;;  %v1328_v47 = vsel %vm1326_vm9, %v1327_v2, %v2897_v39  ;;  %v1434_v38 = vsel %vm1423_vm12, nan, %v1433_v23  ;;  %v2567_v53 = vadd.s32 4294967294, %v1191_v31 }
 0x1ef   : > { %v2235_v20 = vmul.f32 %v2197_v33, %v1434_v38  ;;  %v1112_v25 = vadd.s32 3, %v1108_v22  ;;  %vm972_vm6 = vc.u32 %v4874_v4, %v4882_v56  ;;  %v973_v35 = vadd.s32 1, %v4883_v40  ;;  %v5710_v33 = vld [vmem:[#allocation54_spill] sm:$0xff] }
 0x1f0   : > { %v1107_v14 = vsel %vm4831_vm7, %v5684_v3, %v1104_v12  ;;  %vm2568_vm15 = vcmp.lt.s32.totalorder %v2567_v53, 0  ;;  %v1210_v11 = vsel %vm1125_vm5, %v1209_v51, %v4826_v54  ;;  %v970_v39 = vmul.u32 %v963_v5, %v954_v24  ;;  %v5709_v54 = vld [vmem:[#allocation33_spill] sm:$0xff] }
 0x1f1   : > { %v1329_v19 = vsel %vm1322_vm3, %v1325_v45, %v1328_v47  ;;  %v2263_v2 = vpack.c.bf16 %v4820_v9, %v2235_v20  ;;  %v1194_v29 = vsel %vm2568_vm15, 0, %v2567_v53  ;;  %v974_v48 = vsel %vm972_vm6, %v973_v35, %v4883_v40  ;;  %v5711_v45 = vld [vmem:[#allocation51_spill] sm:$0xff] }
 0x1f2   : > { %v1179_v44 = vadd.s32 %v4761_v50, %v4759_v18  ;;  %v1195_v42 = vsub.s32 32, %v1194_v29  ;;  %v1199_v58 = vsub.s32 4294967266, %v1194_v29  ;;  %v975_v7 = vadd.s32 %v974_v48, %v970_v39 }
 0x1f3   : > { %vm1319_vm11 = vweird.f32 %v5671_v15  ;;  %2641 = vmatprep.subr.bf16.mxu0 %v2263_v2  ;;  %2670 = vmatprep.subr.bf16.mxu1 %v2263_v2  ;;  %2902 = vcosq.f32 %v1107_v14  ;;  %v1212_v21 = vsel %vm4895_vm0, 0, %v1210_v11  ;;  %v811_v5 = vand.u32 2147483647, %v5709_v54 }
 0x1f4   : > { %2642 = vmatpush3.bf16.msra.mxu0 %v2263_v2  ;;  %2678 = vmatpush3.bf16.msra.mxu1 %v2263_v2  ;;  %v1196_v9 = vshll.u32 %v4857_v16, %v1194_v29  ;;  %v1197_v26 = vshrl.u32 %v1179_v44, %v1195_v42  ;;  %v1200_v36 = vadd.s32 127, %v1199_v58  ;;  %v976_v18 = vadd.s32 536870912, %v975_v7 }
 0x1f5   : > { %v4930_v50 = vshrl.u32 %v5582_v32, %v4675_v59  ;;  %v4932_v15 = vsel %vm1319_vm11, nan, %v1329_v19  ;;  %2904 = vsinq.f32 %v1107_v14  ;;  %v4934_v34 = vand.u32 3, %v1112_v25 }
 0x1f6   : > { %vm917_vm7 = vcmp.lt.s32.totalorder %v5699_v61, 0  ;;  %v1198_v55 = vor.u32 %v1197_v26, %v1196_v9  ;;  %v1201_v27 = vshll.u32 %v1200_v36, 23  ;;  %v977_v40 = vshrl.u32 %v976_v18, 30  ;;  %v5714_v9 = vld [vmem:[#allocation53_spill] sm:$0xff] }
 0x1f7   : > { %v838_v16 = vshrl.u32 %v5585_v43, %v5710_v33  ;;  %v1216_v0 = vadd.s32 3, %v1212_v21  ;;  %v818_v22 = vand.u32 8388607, %v811_v5  ;;  %v832_v31 = vshrl.u32 %v5579_v60, %v5710_v33 }
 0x1f8   : > { %v841_v51 = vshrl.u32 %v5582_v32, %v5710_v33  ;;  %v1202_v23 = vor.u32 4788187, %v1201_v27  ;;  %v978_v12 = vshll.u32 %v977_v40, 30  ;;  %v835_v24 = vshrl.u32 %v5584_v41, %v5710_v33 }
 0x1f9   : > { %v837_v47 = vshll.u32 %v5584_v41, %v5711_v45  ;;  %vm4951_vm1 = vcmp.le.f32.partialorder %v915_v10, 0.7853982  ;;  %v829_v53 = vshrl.u32 %v5581_v49, %v5710_v33  ;;  %v831_v32 = vshll.u32 %v5581_v49, %v5711_v45 }
 0x1fa   : > { %v834_v20 = vshll.u32 %v5579_v60, %v5711_v45  ;;  %v840_v25 = vshll.u32 %v5585_v43, %v5711_v45  ;;  %v1203_v35 = vand.u32 2147483647, %v1202_v23  ;;  %v1205_v14 = vcvt.s32.f32 %v1198_v55  ;;  %v2858_v23 = vld [vmem:[%s5460_s2] sm:$0xff]  }
 0x1fb   : > { %v4963_v11 = vsub.s32 %v975_v7, %v978_v12  ;;  %v839_v10 = vor.u32 %v838_v16, %v837_v47  ;;  %v4965_v39 = vand.u32 3, %v1216_v0  ;;  %v1001_v19 = vsub.s32 4, %v977_v40  ;;  %v2859_v12 = vld [vmem:[%s5460_s2 + $0x20] sm:$0xff]   ;;  %2651 = vmatprep.mubr.bf16.mxu0 %v2858_v23 }
 0x1fc   : > { %v828_v2 = vshll.u32 %v5583_v52, %v5711_v45  ;;  %v842_v29 = vor.u32 %v841_v51, %v840_v25  ;;  %v1206_v48 = vmul.f32 %v1205_v14, %v1203_v35  ;;  %v833_v42 = vor.u32 %v832_v31, %v831_v32  ;;  %2659 = vmatprep.mubr.bf16.mxu1 %v2859_v12  ;;  %v5715_v14 = vld [vmem:[#allocation43_spill] sm:$0xff] }
 0x1fd   : > { %v981_v44 = vsub.s32 0, %v4963_v11  ;;  %v836_v58 = vor.u32 %v835_v24, %v834_v20  ;;  %v971_v43 = vadd.s32 %v4882_v56, %v4874_v4  ;;  %v827_v7 = vshrl.u32 %v5583_v52, %v5710_v33 }
 0x1fe   : > { %v830_v21 = vor.u32 %v829_v53, %v828_v2  ;;  %vm846_vm8 = vcmp.lt.s32.totalorder %v5714_v9, 4  ;;  %v1207_v26 = vxor.u32 2147483648, %v1206_v48  ;;  %v819_v18 = vor.u32 8388608, %v818_v22 }
 0x1ff   : > { %v2558_v36 = vmin.u32 %v981_v44, %v4963_v11  ;;  %v852_v55 = vsel %vm846_vm8, %v839_v10, 920167782  ;;  %v1002_v27 = vsel %vm917_vm7, %v1001_v19, %v977_v40  ;;  %vm843_vm14 = vcmp.lt.s32.totalorder %v5714_v9, 1 }
 0x200   : > { %vm844_vm10 = vcmp.lt.s32.totalorder %v5714_v9, 2  ;;  %v856_v4 = vsel %vm846_vm8, %v842_v29, 1326507024  ;;  %v2903_v56 = vpop.eup %2902  ;;  %vm1118_vm9 = vcmp.eq.s32.totalorder %v4934_v34, 2  ;;  %v1208_v33 = vsel %vm1125_vm5, %v1207_v26, %v1206_v48 }
 0x201   : > { %v983_v16 = vclz %v2558_v36  ;;  %vm845_vm12 = vcmp.lt.s32.totalorder %v5714_v9, 3  ;;  %v855_v0 = vsel %vm843_vm14, %v833_v42, %v836_v58  ;;  %v1211_v40 = vsel %vm4895_vm0, %v5686_v37, %v1208_v33 }
 0x202   : > { %v847_v22 = vsel %vm843_vm14, %v827_v7, %v830_v21  ;;  %v851_v31 = vsel %vm843_vm14, %v830_v21, %v833_v42  ;;  %v853_v51 = vsel %vm845_vm12, %v836_v58, %v852_v55  ;;  %v2905_v24 = vpop.eup %2904  ;;  %2906 = vcosq.f32 %v1211_v40  ;;  %v5716_v21 = vld [vmem:[#allocation27_spill] sm:$0xff] }
 0x203   : > { %v2559_v45 = vadd.s32 4294967294, %v983_v16  ;;  %v1004_v13 = vsel %vm4951_vm1, 0, %v1002_v27  ;;  %v857_v47 = vsel %vm845_vm12, %v839_v10, %v856_v4  ;;  %vm1115_vm2 = vcmp.eq.s32.totalorder %v4934_v34, 0  ;;  %v5717_v27 = vld [vmem:[#allocation56_spill] sm:$0xff] }
 0x204   : > { %2908 = vsinq.f32 %v1211_v40  ;;  %v848_v53 = vsel %vm846_vm8, %v836_v58, 2102212464  ;;  %v858_v32 = vsel %vm844_vm10, %v855_v0, %v857_v47  ;;  %v859_v20 = vshll.u32 %v819_v18, 8 }
 0x205   : > { %v1119_v25 = vxor.u32 2147483648, %v2903_v56  ;;  %vm2560_vm5 = vcmp.lt.s32.totalorder %v2559_v45, 0  ;;  %v854_v35 = vsel %vm844_vm10, %v851_v31, %v853_v51  ;;  %v707_v19 = vand.u32 2147483647, %v5715_v14 }
 0x206   : > { %v1116_v10 = vxor.u32 2147483648, %v2905_v24  ;;  %v986_v2 = vsel %vm2560_vm5, 0, %v2559_v45  ;;  %v5011_v29 = vmul.u32.u64.low %v859_v20, %v858_v32  ;;  %v5012_v48 = vmul.u32.u64.high %v859_v20, %v858_v32, %v5011_v29 }
 0x207   : > { %v987_v44 = vsub.s32 32, %v986_v2  ;;  %v991_v58 = vsub.s32 4294967266, %v986_v2  ;;  %v849_v7 = vsel %vm845_vm12, %v833_v42, %v848_v53  ;;  %v724_v26 = vshll.u32 %v5583_v52, %v5716_v21 }
 0x208   : > { %v988_v36 = vshll.u32 %v4963_v11, %v986_v2  ;;  %v5019_v18 = vmul.u32.u64.low %v859_v20, %v854_v35  ;;  %v5020_v55 = vmul.u32.u64.high %v859_v20, %v854_v35, %v5019_v18  ;;  %v725_v4 = vshrl.u32 %v5581_v49, %v5717_v27  ;;  %v5718_v2 = vld [vmem:[#allocation58_spill] sm:$0xff] }
 0x209   : > { %v989_v33 = vshrl.u32 %v971_v43, %v987_v44  ;;  %v992_v16 = vadd.s32 127, %v991_v58  ;;  %v714_v0 = vand.u32 8388607, %v707_v19  ;;  %v728_v42 = vshrl.u32 %v5579_v60, %v5717_v27 }
 0x20a   : > { %v5031_v40 = vsel %vm1118_vm9, %v1119_v25, %v2905_v24  ;;  %vm1222_vm3 = vcmp.eq.s32.totalorder %v4965_v39, 2  ;;  %v5034_v11 = vadd.s32 3, %v1004_v13  ;;  %v850_v31 = vsel %vm844_vm10, %v847_v22, %v849_v7  ;;  %v5719_v7 = vld [vmem:[#allocation12_spill] sm:$0xff] }
 0x20b   : > { %v727_v43 = vshll.u32 %v5581_v49, %v5716_v21  ;;  %vm1219_vm13 = vcmp.eq.s32.totalorder %v4965_v39, 0  ;;  %v990_v51 = vor.u32 %v989_v33, %v988_v36  ;;  %v993_v23 = vshll.u32 %v992_v16, 23  ;;  %v5721_v36 = vld [vmem:[#allocation6_spill] sm:$0xff] }
 0x20c   : > { %vm868_vm0 = vc.u32 %v5012_v48, %v5019_v18  ;;  %v726_v12 = vor.u32 %v725_v4, %v724_v26  ;;  %vm1218_vm6 = vcmp.lt.s32.totalorder %v4965_v39, 2  ;;  %v869_v24 = vadd.s32 1, %v5020_v55 }
 0x20d   : > { %v729_v45 = vor.u32 %v728_v42, %v727_v43  ;;  %v730_v9 = vshll.u32 %v5579_v60, %v5716_v21  ;;  %v731_v22 = vshrl.u32 %v5584_v41, %v5717_v27  ;;  %v1117_v13 = vsel %vm1115_vm2, %v2903_v56, %v1116_v10  ;;  %v5720_v21 = vld [vmem:[#allocation13_spill] sm:$0xff] }
 0x20e   : > { %vm1215_vm15 = vweird.f32 %v5686_v37  ;;  %v994_v47 = vor.u32 4788187, %v993_v23  ;;  %v866_v53 = vmul.u32 %v859_v20, %v850_v31  ;;  %v715_v32 = vor.u32 8388608, %v714_v0  ;;  %v5722_v31 = vld [vmem:[#allocation20_spill] sm:$0xff] }
 0x20f   : > { %v870_v25 = vsel %vm868_vm0, %v869_v24, %v5020_v55  ;;  %v732_v35 = vor.u32 %v731_v22, %v730_v9  ;;  %vm739_vm11 = vcmp.lt.s32.totalorder %v5718_v2, 1  ;;  %vm741_vm8 = vcmp.lt.s32.totalorder %v5718_v2, 3  ;;  %v2907_v10 = vpop.eup %2906 }
 0x210   : > { %vm1114_vm14 = vcmp.lt.s32.totalorder %v4934_v34, 2  ;;  %v995_v29 = vand.u32 2147483647, %v994_v47  ;;  %v997_v44 = vcvt.s32.f32 %v990_v51  ;;  %v871_v58 = vadd.s32 %v870_v25, %v866_v53  ;;  %v2193_v53 = vpop.permute.xlu0 %2192  ;;  %v2189_v25 = vpop.permute.xlu1 %2188 }
 0x211   : > { %v753_v56 = vsel %vm741_vm8, %v5720_v21, %v5719_v7  ;;  %v723_v20 = vshrl.u32 %v5583_v52, %v5717_v27  ;;  %v747_v26 = vsel %vm739_vm11, %v726_v12, %v729_v45  ;;  %v749_v55 = vsel %vm741_vm8, %v732_v35, %v5721_v36  ;;  %v2909_v33 = vpop.eup %2908 }
 0x212   : > { %v751_v4 = vsel %vm739_vm11, %v729_v45, %v732_v35  ;;  %v1223_v16 = vxor.u32 2147483648, %v2907_v10  ;;  %v998_v0 = vmul.f32 %v997_v44, %v995_v29  ;;  %v872_v42 = vadd.s32 536870912, %v871_v58 }
 0x213   : > { %vm740_vm10 = vcmp.lt.s32.totalorder %v5718_v2, 2  ;;  %vm534_vm9 = vcmp.lt.s32.totalorder %v5722_v31, 4  ;;  %v1220_v43 = vxor.u32 2147483648, %v2909_v33  ;;  %v744_v27 = vsel %vm742_vm4, %v732_v35, 2102212464 }
 0x214   : > { %v754_v51 = vsel %vm740_vm10, %v751_v4, %v753_v56  ;;  %v755_v23 = vshll.u32 %v715_v32, 8  ;;  %v1224_v24 = vsel %vm1222_vm3, %v1223_v16, %v2909_v33  ;;  %v999_v9 = vxor.u32 2147483648, %v998_v0  ;;  %v2185_v2 = vpop.permute.xlu0 %2184 }
 0x215   : > { %v5077_v22 = vshrl.u32 %v872_v42, 30  ;;  %v750_v47 = vsel %vm740_vm10, %v747_v26, %v749_v55  ;;  %v1221_v29 = vsel %vm1219_vm13, %v2907_v10, %v1220_v43  ;;  %v743_v35 = vsel %vm739_vm11, %v723_v20, %v726_v12 }
 0x216   : > { %v5085_v44 = vmul.u32.u64.low %v755_v23, %v754_v51  ;;  %v5086_v7 = vmul.u32.u64.high %v755_v23, %v754_v51, %v5085_v44  ;;  %v1225_v32 = vsel %vm1218_vm6, %v1221_v29, %v1224_v24  ;;  %v1000_v21 = vsel %vm917_vm7, %v999_v9, %v998_v0 }
 0x217   : > { %v874_v56 = vshll.u32 %v5077_v22, 30  ;;  %v745_v26 = vsel %vm741_vm8, %v729_v45, %v744_v27  ;;  %v1226_v10 = vsel %vm1215_vm15, nan, %v1225_v32  ;;  %v1003_v12 = vsel %vm4951_vm1, %v5699_v61, %v1000_v21 }
 0x218   : > { %v5100_v20 = vmul.u32.u64.low %v755_v23, %v750_v47  ;;  %v5101_v36 = vmul.u32.u64.high %v755_v23, %v750_v47, %v5100_v20  ;;  %v2234_v39 = vmul.f32 %v2193_v53, %v4932_v15  ;;  %v2233_v55 = vmul.f32 %v2189_v25, %v1226_v10 }
 0x219   : > { %2910 = vcosq.f32 %v1003_v12  ;;  %v5105_v4 = vsub.s32 %v871_v58, %v874_v56  ;;  %v5109_v45 = vor.u32 %v4780_v17, %v4776_v8  ;;  %v634_v37 = vor.u32 %v4930_v50, %v4784_v1  ;;  %v5723_v50 = vld [vmem:[#allocation24_spill] sm:$0xff] }
 0x21a   : > { %v1121_v38 = vsel %vm1114_vm14, %v1117_v13, %v5031_v40  ;;  %2912 = vsinq.f32 %v1003_v12  ;;  %v2262_v33 = vpack.c.bf16 %v2234_v39, %v2233_v55  ;;  %v746_v15 = vsel %vm740_vm10, %v743_v35, %v745_v26 }
 0x21b   : > { %v877_v16 = vsub.s32 0, %v5105_v4  ;;  %vm764_vm4 = vc.u32 %v5086_v7, %v5100_v20  ;;  %v530_v8 = vor.u32 %v4662_v28, %v4658_v57  ;;  %v5124_v17 = vand.u32 3, %v5034_v11 }
 0x21c   : > { %v765_v1 = vadd.s32 1, %v5101_v36  ;;  %v603_v34 = vand.u32 2147483647, %v5723_v50  ;;  %v5131_v40 = vsel %vm534_vm9, %v4667_v46, 920167782  ;;  %vm638_vm7 = vcmp.lt.s32.totalorder %v4772_v6, 4  ;;  %2643 = vmatprep.subr.bf16.mxu0 %v2262_v33  ;;  %2671 = vmatprep.subr.bf16.mxu1 %v2262_v33 }
 0x21d   : > { %vm1111_vm1 = vweird.f32 %v5684_v3  ;;  %v2554_v13 = vmin.u32 %v877_v16, %v5105_v4  ;;  %2644 = vmatpush3.bf16.msra.mxu0 %v2262_v33  ;;  %2679 = vmatpush3.bf16.msra.mxu1 %v2262_v33  ;;  %v762_v58 = vmul.u32 %v755_v23, %v746_v15  ;;  %v621_v42 = vshrl.u32 %v5581_v49, %v4675_v59 }
 0x21e   : > { %v1122_v11 = vsel %vm1111_vm1, nan, %v1121_v38  ;;  %v766_v0 = vsel %vm764_vm4, %v765_v1, %v5101_v36  ;;  %v644_v3 = vsel %vm638_vm7, %v5109_v45, 920167782  ;;  %v648_v43 = vsel %vm638_vm7, %v634_v37, 1326507024 }
 0x21f   : > { %v879_v27 = vclz %v2554_v13  ;;  %v624_v51 = vshrl.u32 %v5579_v60, %v4675_v59  ;;  %vm1014_vm12 = vcmp.eq.s32.totalorder %v5124_v17, 2  ;;  %v767_v23 = vadd.s32 %v766_v0, %v762_v58 }
 0x220   : > { %v610_v24 = vand.u32 8388607, %v603_v34  ;;  %v620_v9 = vshll.u32 %v5583_v52, %v4557_v63  ;;  %v627_v47 = vshrl.u32 %v5584_v41, %v4675_v59  ;;  %v2232_v53 = vmul.f32 %v2185_v2, %v1122_v11 }
 0x221   : > { %vm1011_vm2 = vcmp.eq.s32.totalorder %v5124_v17, 0  ;;  %v2555_v25 = vadd.s32 4294967294, %v879_v27  ;;  %v623_v29 = vshll.u32 %v5581_v49, %v4557_v63  ;;  %v626_v35 = vshll.u32 %v5579_v60, %v4557_v63 }
 0x222   : > { %vm1010_vm5 = vcmp.lt.s32.totalorder %v5124_v17, 2  ;;  %v867_v44 = vadd.s32 %v5019_v18, %v5012_v48  ;;  %v897_v32 = vsub.s32 4, %v5077_v22  ;;  %v768_v21 = vadd.s32 536870912, %v767_v23 }
 0x223   : > { %v622_v56 = vor.u32 %v621_v42, %v620_v9  ;;  %vm1007_vm3 = vweird.f32 %v5699_v61  ;;  %vm2556_vm13 = vcmp.lt.s32.totalorder %v2555_v25, 0  ;;  %v619_v26 = vshrl.u32 %v5583_v52, %v4675_v59 }
 0x224   : > { %v625_v10 = vor.u32 %v624_v51, %v623_v29  ;;  %v628_v12 = vor.u32 %v627_v47, %v626_v35  ;;  %v882_v36 = vsel %vm2556_vm13, 0, %v2555_v25  ;;  %v5168_v39 = vshrl.u32 %v768_v21, 30  ;;  %v5724_v35 = vld [vmem:[#allocation45_spill] sm:$0xff]  ;;  %v2181_v21 = vpop.permute.xlu1 %2180 }
 0x225   : > { %v611_v63 = vor.u32 8388608, %v610_v24  ;;  %vm635_vm0 = vcmp.lt.s32.totalorder %v4772_v6, 1  ;;  %v883_v55 = vsub.s32 32, %v882_v36  ;;  %v887_v48 = vsub.s32 4294967266, %v882_v36 }
 0x226   : > { %vm636_vm6 = vcmp.lt.s32.totalorder %v4772_v6, 2  ;;  %vm637_vm15 = vcmp.lt.s32.totalorder %v4772_v6, 3  ;;  %v2911_v18 = vpop.eup %2910  ;;  %v884_v37 = vshll.u32 %v5105_v4, %v882_v36  ;;  %v770_v38 = vshll.u32 %v5168_v39, 30 }
 0x227   : > { %v639_v59 = vsel %vm635_vm0, %v619_v26, %v622_v56  ;;  %v649_v33 = vsel %vm637_vm15, %v5109_v45, %v648_v43  ;;  %v2913_v16 = vpop.eup %2912  ;;  %v1015_v15 = vxor.u32 2147483648, %v2911_v18  ;;  %v885_v1 = vshrl.u32 %v867_v44, %v883_v55 }
 0x228   : > { %v888_v13 = vadd.s32 127, %v887_v48  ;;  %v647_v2 = vsel %vm635_vm0, %v625_v10, %v628_v12  ;;  %v1012_v11 = vxor.u32 2147483648, %v2913_v16  ;;  %v5182_v58 = vsub.s32 %v767_v23, %v770_v38 }
 0x229   : > { %v640_v4 = vsel %vm638_vm7, %v628_v12, 2102212464  ;;  %v643_v0 = vsel %vm635_vm0, %v622_v56, %v625_v10  ;;  %v1016_v42 = vsel %vm1014_vm12, %v1015_v15, %v2913_v16  ;;  %v886_v45 = vor.u32 %v885_v1, %v884_v37 }
 0x22a   : > { %v889_v43 = vshll.u32 %v888_v13, 23  ;;  %v645_v27 = vsel %vm637_vm15, %v628_v12, %v644_v3  ;;  %v1013_v51 = vsel %vm1011_vm2, %v2911_v18, %v1012_v11  ;;  %v773_v23 = vsub.s32 0, %v5182_v58 }
 0x22b   : > { %v650_v24 = vsel %vm636_vm6, %v647_v2, %v649_v33  ;;  %v651_v9 = vshll.u32 %v611_v63, 8  ;;  %v1017_v47 = vsel %vm1010_vm5, %v1013_v51, %v1016_v42  ;;  %v641_v29 = vsel %vm637_vm15, %v625_v10, %v640_v4 }
 0x22c   : > { %v890_v25 = vor.u32 4788187, %v889_v43  ;;  %v499_v44 = vand.u32 2147483647, %v5724_v35  ;;  %v1018_v3 = vsel %vm1007_vm3, nan, %v1017_v47  ;;  %v893_v56 = vcvt.s32.f32 %v886_v45 }
 0x22d   : > { %v2550_v26 = vmin.u32 %v773_v23, %v5182_v58  ;;  %v646_v12 = vsel %vm636_vm6, %v643_v0, %v645_v27  ;;  %v2231_v36 = vmul.f32 %v2181_v21, %v1018_v3  ;;  %v544_v10 = vsel %vm534_vm9, %v530_v8, 1326507024 }
 0x22e   : > { %v891_v63 = vand.u32 2147483647, %v890_v25  ;;  %v5207_v17 = vmul.u32.u64.low %v651_v9, %v650_v24  ;;  %v5208_v55 = vmul.u32.u64.high %v651_v9, %v650_v24, %v5207_v17  ;;  %vm813_vm11 = vcmp.lt.s32.totalorder %v5709_v54, 0 }
 0x22f   : > { %v775_v61 = vclz %v2550_v26  ;;  %v642_v48 = vsel %vm636_vm6, %v639_v59, %v641_v29  ;;  %v2261_v18 = vpack.c.bf16 %v2232_v53, %v2231_v36  ;;  %vm5224_vm8 = vcmp.le.f32.partialorder %v811_v5, 0.7853982 }
 0x230   : > { %v894_v37 = vmul.f32 %v893_v56, %v891_v63  ;;  %v5218_v38 = vmul.u32.u64.low %v651_v9, %v646_v12  ;;  %v5219_v33 = vmul.u32.u64.high %v651_v9, %v646_v12, %v5218_v38  ;;  %v5231_v57 = vsel %vm813_vm11, %v897_v32, %v5077_v22 }
 0x231   : > { %v763_v28 = vadd.s32 %v5100_v20, %v5086_v7  ;;  %v2551_v6 = vadd.s32 4294967294, %v775_v61  ;;  %v658_v53 = vmul.u32 %v651_v9, %v642_v48  ;;  %v506_v59 = vand.u32 8388607, %v499_v44  ;;  %2645 = vmatprep.subr.bf16.mxu0 %v2261_v18  ;;  %2672 = vmatprep.subr.bf16.mxu1 %v2261_v18 }
 0x232   : > { %v895_v8 = vxor.u32 2147483648, %v894_v37  ;;  %v517_v5 = vshrl.u32 %v5581_v49, %v4171_v62  ;;  %vm660_vm10 = vc.u32 %v5208_v55, %v5218_v38  ;;  %v516_v22 = vshll.u32 %v5583_v52, %v4144_v30  ;;  %2646 = vmatpush3.bf16.msra.mxu0 %v2261_v18  ;;  %2680 = vmatpush3.bf16.msra.mxu1 %v2261_v18 }
 0x233   : > { %vm2552_vm14 = vcmp.lt.s32.totalorder %v2551_v6, 0  ;;  %v520_v7 = vshrl.u32 %v5579_v60, %v4171_v62  ;;  %v661_v15 = vadd.s32 1, %v5219_v33  ;;  %v519_v1 = vshll.u32 %v5581_v49, %v4144_v30 }
 0x234   : > { %v896_v20 = vsel %vm813_vm11, %v895_v8, %v894_v37  ;;  %v778_v32 = vsel %vm2552_vm14, 0, %v2551_v6  ;;  %v518_v11 = vor.u32 %v517_v5, %v516_v22  ;;  %v522_v4 = vshll.u32 %v5579_v60, %v4144_v30 }
 0x235   : > { %v779_v13 = vsub.s32 32, %v778_v32  ;;  %v783_v2 = vsub.s32 4294967266, %v778_v32  ;;  %v899_v0 = vsel %vm5224_vm8, %v5709_v54, %v896_v20  ;;  %v662_v42 = vsel %vm660_vm10, %v661_v15, %v5219_v33 }
 0x236   : > { %v521_v45 = vor.u32 %v520_v7, %v519_v1  ;;  %v523_v43 = vshrl.u32 %v5584_v41, %v4171_v62  ;;  %v780_v27 = vshll.u32 %v5182_v58, %v778_v32  ;;  %v663_v23 = vadd.s32 %v662_v42, %v658_v53 }
 0x237   : > { %v781_v51 = vshrl.u32 %v763_v28, %v779_v13  ;;  %v784_v49 = vadd.s32 127, %v783_v2  ;;  %v507_v24 = vor.u32 8388608, %v506_v59  ;;  %v515_v9 = vshrl.u32 %v5583_v52, %v4171_v62 }
 0x238   : > { %v524_v60 = vor.u32 %v523_v43, %v522_v4  ;;  %vm531_vm4 = vcmp.lt.s32.totalorder %v5722_v31, 1  ;;  %v664_v25 = vadd.s32 536870912, %v663_v23  ;;  %vm533_vm7 = vcmp.lt.s32.totalorder %v5722_v31, 3 }
 0x239   : > { %v782_v30 = vor.u32 %v781_v51, %v780_v27  ;;  %v785_v47 = vshll.u32 %v784_v49, 23  ;;  %2914 = vcosq.f32 %v899_v0  ;;  %v539_v41 = vsel %vm531_vm4, %v518_v11, %v521_v45 }
 0x23a   : > { %v541_v58 = vsel %vm533_vm7, %v524_v60, %v5131_v40  ;;  %v543_v29 = vsel %vm531_vm4, %v521_v45, %v524_v60  ;;  %2916 = vsinq.f32 %v899_v0  ;;  %v5270_v62 = vshrl.u32 %v664_v25, 30 }
 0x23b   : > { %v786_v52 = vor.u32 4788187, %v785_v47  ;;  %vm532_vm1 = vcmp.lt.s32.totalorder %v5722_v31, 2  ;;  %v536_v21 = vsel %vm534_vm9, %v524_v60, 2102212464  ;;  %v545_v56 = vsel %vm533_vm7, %v4667_v46, %v544_v10 }
 0x23c   : > { %v542_v3 = vsel %vm532_vm1, %v539_v41, %v541_v58  ;;  %v547_v40 = vshll.u32 %v507_v24, 8  ;;  %v789_v12 = vcvt.s32.f32 %v782_v30  ;;  %v666_v36 = vshll.u32 %v5270_v62, 30 }
 0x23d   : > { %v787_v26 = vand.u32 2147483647, %v786_v52  ;;  %v546_v63 = vsel %vm532_vm1, %v543_v29, %v545_v56  ;;  %v535_v46 = vsel %vm531_vm4, %v515_v9, %v518_v11  ;;  %v537_v10 = vsel %vm533_vm7, %v521_v45, %v536_v21 }
 0x23e   : > { %v5283_v17 = vmul.u32.u64.low %v547_v40, %v546_v63  ;;  %v5284_v61 = vmul.u32.u64.high %v547_v40, %v546_v63, %v5283_v17  ;;  %v5286_v48 = vmul.u32.u64.low %v547_v40, %v542_v3  ;;  %v5287_v18 = vmul.u32.u64.high %v547_v40, %v542_v3, %v5286_v48 }
 0x23f   : > { %v790_v37 = vmul.f32 %v789_v12, %v787_v26  ;;  %v667_v33 = vsub.s32 %v663_v23, %v666_v36  ;;  %vm709_vm9 = vcmp.lt.s32.totalorder %v5715_v14, 0  ;;  %v900_v28 = vsel %vm5224_vm8, 0, %v5231_v57 }
 0x240   : > { %v793_v53 = vsub.s32 4, %v5168_v39  ;;  %v538_v59 = vsel %vm532_vm1, %v535_v46, %v537_v10  ;;  %vm556_vm12 = vc.u32 %v5284_v61, %v5286_v48  ;;  %v557_v5 = vadd.s32 1, %v5287_v18 }
 0x241   : > { %v791_v6 = vxor.u32 2147483648, %v790_v37  ;;  %v669_v8 = vsub.s32 0, %v667_v33  ;;  %vm5306_vm2 = vcmp.le.f32.partialorder %v707_v19, 0.7853982  ;;  %v904_v7 = vadd.s32 3, %v900_v28 }
 0x242   : > { %v558_v20 = vsel %vm556_vm12, %v557_v5, %v5287_v18  ;;  %v554_v15 = vmul.u32 %v547_v40, %v538_v59  ;;  %v794_v19 = vsel %vm709_vm9, %v793_v53, %v5168_v39  ;;  %v659_v43 = vadd.s32 %v5218_v38, %v5208_v55  ;;  %v2177_v53 = vpop.permute.xlu0 %2176  ;;  %v2173_v59 = vpop.permute.xlu1 %2172 }
 0x243   : > { %v792_v16 = vsel %vm709_vm9, %v791_v6, %v790_v37  ;;  %v2546_v57 = vmin.u32 %v669_v8, %v667_v33  ;;  %v905_v4 = vand.u32 3, %v904_v7  ;;  %v796_v0 = vsel %vm5306_vm2, 0, %v794_v19 }
 0x244   : > { %v795_v31 = vsel %vm5306_vm2, %v5715_v14, %v792_v16  ;;  %v559_v2 = vadd.s32 %v558_v20, %v554_v15  ;;  %v800_v24 = vadd.s32 3, %v796_v0  ;;  %vm903_vm6 = vweird.f32 %v5709_v54 }
 0x245   : > { %2918 = vcosq.f32 %v795_v31  ;;  %v671_v32 = vclz %v2546_v57  ;;  %vm910_vm3 = vcmp.eq.s32.totalorder %v905_v4, 2  ;;  %vm907_vm13 = vcmp.eq.s32.totalorder %v905_v4, 0 }
 0x246   : > { %2920 = vsinq.f32 %v795_v31  ;;  %v2915_v1 = vpop.eup %2914  ;;  %v560_v42 = vadd.s32 536870912, %v559_v2  ;;  %v801_v55 = vand.u32 3, %v800_v24  ;;  %vm906_vm0 = vcmp.lt.s32.totalorder %v905_v4, 2 }
 0x247   : > { %v2547_v13 = vadd.s32 4294967294, %v671_v32  ;;  %v2917_v11 = vpop.eup %2916  ;;  %v911_v45 = vxor.u32 2147483648, %v2915_v1  ;;  %vm799_vm14 = vweird.f32 %v5715_v14  ;;  %vm605_vm10 = vcmp.lt.s32.totalorder %v5723_v50, 0 }
 0x248   : > { %v908_v51 = vxor.u32 2147483648, %v2917_v11  ;;  %v5323_v39 = vshrl.u32 %v560_v42, 30  ;;  %vm806_vm15 = vcmp.eq.s32.totalorder %v801_v55, 2  ;;  %vm803_vm11 = vcmp.eq.s32.totalorder %v801_v55, 0 }
 0x249   : > { %vm2548_vm5 = vcmp.lt.s32.totalorder %v2547_v13, 0  ;;  %v912_v25 = vsel %vm910_vm3, %v911_v45, %v2917_v11  ;;  %vm802_vm8 = vcmp.lt.s32.totalorder %v801_v55, 2  ;;  %v555_v31 = vadd.s32 %v5286_v48, %v5284_v61 }
 0x24a   : > { %v674_v27 = vsel %vm2548_vm5, 0, %v2547_v13  ;;  %v562_v47 = vshll.u32 %v5323_v39, 30  ;;  %v909_v41 = vsel %vm907_vm13, %v2915_v1, %v908_v51  ;;  %vm5335_vm7 = vcmp.le.f32.partialorder %v603_v34, 0.7853982 }
 0x24b   : > { %v675_v49 = vsub.s32 32, %v674_v27  ;;  %v679_v23 = vsub.s32 4294967266, %v674_v27  ;;  %v676_v9 = vshll.u32 %v667_v33, %v674_v27  ;;  %v913_v56 = vsel %vm906_vm0, %v909_v41, %v912_v25 }
 0x24c   : > { %v563_v52 = vsub.s32 %v559_v2, %v562_v47  ;;  %v914_v46 = vsel %vm903_vm6, nan, %v913_v56  ;;  %v689_v34 = vsub.s32 4, %v5270_v62  ;;  %vm501_vm1 = vcmp.lt.s32.totalorder %v5724_v35, 0 }
 0x24d   : > { %v677_v60 = vshrl.u32 %v659_v43, %v675_v49  ;;  %v680_v30 = vadd.s32 127, %v679_v23  ;;  %v2230_v54 = vmul.f32 %v2177_v53, %v914_v46  ;;  %v585_v27 = vsub.s32 4, %v5323_v39  ;;  %v2863_v46 = vld [vmem:[%s5460_s2 + $0x30] sm:$0xff]  }
 0x24e   : > { %v565_v21 = vsub.s32 0, %v563_v52  ;;  %v690_v0 = vsel %vm605_vm10, %v689_v34, %v5270_v62  ;;  %vm500_vm9 = vcmp.le.f32.partialorder %v499_v44, 0.7853982  ;;  %vm695_vm3 = vweird.f32 %v5723_v50 }
 0x24f   : > { %v678_v58 = vor.u32 %v677_v60, %v676_v9  ;;  %v681_v29 = vshll.u32 %v680_v30, 23  ;;  %v692_v43 = vsel %vm5335_vm7, 0, %v690_v0  ;;  %v586_v62 = vsel %vm501_vm1, %v585_v27, %v5323_v39 }
 0x250   : > { %v2542_v63 = vmin.u32 %v565_v21, %v563_v52  ;;  %v696_v23 = vadd.s32 3, %v692_v43  ;;  %v588_v30 = vsel %vm500_vm9, 0, %v586_v62 }
 0x251   : > { %v682_v38 = vor.u32 4788187, %v681_v29  ;;  %v685_v36 = vcvt.s32.f32 %v678_v58  ;;  %v592_v41 = vadd.s32 3, %v588_v30 }
 0x252   : > { %v2919_v3 = vpop.eup %2918  ;;  %v567_v33 = vclz %v2542_v63  ;;  %v697_v60 = vand.u32 3, %v696_v23  ;;  %v2165_v63 = vpop.permute.xlu1 %2164 }
 0x253   : > { %v2921_v40 = vpop.eup %2920  ;;  %v807_v26 = vxor.u32 2147483648, %v2919_v3  ;;  %v683_v12 = vand.u32 2147483647, %v682_v38  ;;  %v593_v44 = vand.u32 3, %v592_v41 }
 0x254   : > { %v804_v17 = vxor.u32 2147483648, %v2921_v40  ;;  %v2543_v8 = vadd.s32 4294967294, %v567_v33  ;;  %vm699_vm12 = vcmp.eq.s32.totalorder %v697_v60, 0  ;;  %vm702_vm2 = vcmp.eq.s32.totalorder %v697_v60, 2  ;;  %v2861_v33 = vld [vmem:[%s5460_s2 + $0x28] sm:$0xff]  }
 0x255   : > { %v808_v18 = vsel %vm806_vm15, %v807_v26, %v2921_v40  ;;  %v686_v37 = vmul.f32 %v685_v36, %v683_v12  ;;  %vm698_vm5 = vcmp.lt.s32.totalorder %v697_v60, 2  ;;  %vm598_vm13 = vcmp.eq.s32.totalorder %v593_v44, 2  ;;  %v2169_v40 = vpop.permute.xlu0 %2168 }
 0x256   : > { %v805_v10 = vsel %vm803_vm11, %v2919_v3, %v804_v17  ;;  %vm2544_vm4 = vcmp.lt.s32.totalorder %v2543_v8, 0  ;;  %vm595_vm0 = vcmp.eq.s32.totalorder %v593_v44, 0  ;;  %vm594_vm6 = vcmp.lt.s32.totalorder %v593_v44, 2 }
 0x257   : > { %v809_v28 = vsel %vm802_vm8, %v805_v10, %v808_v18  ;;  %v687_v6 = vxor.u32 2147483648, %v686_v37  ;;  %v570_v57 = vsel %vm2544_vm4, 0, %v2543_v8  ;;  %vm591_vm15 = vweird.f32 %v5724_v35  ;;  %v2864_v10 = vld [vmem:[%s5460_s2 + $0x18] sm:$0xff]  }
 0x258   : > { %v810_v5 = vsel %vm799_vm14, nan, %v809_v28  ;;  %v571_v14 = vsub.s32 32, %v570_v57  ;;  %v575_v32 = vsub.s32 4294967266, %v570_v57  ;;  %v572_v1 = vshll.u32 %v563_v52, %v570_v57  ;;  %v2865_v28 = vld [vmem:[%s5460_s2 + $0x38] sm:$0xff]  }
 0x259   : > { %v2229_v22 = vmul.f32 %v2173_v59, %v810_v5  ;;  %v688_v16 = vsel %vm605_vm10, %v687_v6, %v686_v37 }
 0x25a   : > { %v691_v15 = vsel %vm5335_vm7, %v5723_v50, %v688_v16  ;;  %v573_v19 = vshrl.u32 %v555_v31, %v571_v14  ;;  %v576_v13 = vadd.s32 127, %v575_v32  ;;  %v2860_v50 = vld [vmem:[%s5460_s2 + $0x8] sm:$0xff]  }
 0x25b   : > { %v2260_v7 = vpack.c.bf16 %v2230_v54, %v2229_v22  ;;  %2922 = vcosq.f32 %v691_v15 }
 0x25c   : > { %v574_v61 = vor.u32 %v573_v19, %v572_v1  ;;  %v577_v48 = vshll.u32 %v576_v13, 23  ;;  %2924 = vsinq.f32 %v691_v15 }
 0x25d   : > { %2647 = vmatprep.subr.bf16.mxu0 %v2260_v7  ;;  %2673 = vmatprep.subr.bf16.mxu1 %v2260_v7 }
 0x25e   : > { %2648 = vmatpush3.bf16.msra.mxu0 %v2260_v7  ;;  %2681 = vmatpush3.bf16.msra.mxu1 %v2260_v7  ;;  %v578_v2 = vor.u32 4788187, %v577_v48  ;;  %v581_v4 = vcvt.s32.f32 %v574_v61 }
 0x260   : > { %v579_v11 = vand.u32 2147483647, %v578_v2 }
 0x262   : > { %v582_v42 = vmul.f32 %v581_v4, %v579_v11 }
 0x264   : > { %v583_v45 = vxor.u32 2147483648, %v582_v42 }
 0x266   : > { %v584_v51 = vsel %vm501_vm1, %v583_v45, %v582_v42 }
 0x267   : > { %v587_v49 = vsel %vm500_vm9, %v5724_v35, %v584_v51  ;;  %v2862_v35 = vld [vmem:[%s5460_s2 + $0x10] sm:$0xff]  }
 0x268   : > { %2926 = vcosq.f32 %v587_v49  ;;  %v2923_v24 = vpop.eup %2922 }
 0x269   : > { %2928 = vsinq.f32 %v587_v49  ;;  %v2925_v9 = vpop.eup %2924  ;;  %v703_v25 = vxor.u32 2147483648, %v2923_v24 }
 0x26a   : > { %v700_v47 = vxor.u32 2147483648, %v2925_v9 }
 0x26b   : > { %v704_v29 = vsel %vm702_vm2, %v703_v25, %v2925_v9 }
 0x26c   : > { %v701_v58 = vsel %vm699_vm12, %v2923_v24, %v700_v47 }
 0x26d   : > { %v705_v52 = vsel %vm698_vm5, %v701_v58, %v704_v29 }
 0x26e   : > { %v706_v39 = vsel %vm695_vm3, nan, %v705_v52 }
 0x26f   : > { %v2228_v12 = vmul.f32 %v2169_v40, %v706_v39 }
 0x275   : > { %v2927_v55 = vpop.eup %2926 }
 0x276   : > { %v2929_v38 = vpop.eup %2928  ;;  %v599_v21 = vxor.u32 2147483648, %v2927_v55 }
 0x277   : > { %v596_v3 = vxor.u32 2147483648, %v2929_v38 }
 0x278   : > { %v600_v56 = vsel %vm598_vm13, %v599_v21, %v2929_v38 }
 0x279   : > { %v597_v26 = vsel %vm595_vm0, %v2927_v55, %v596_v3 }
 0x27a   : > { %v601_v36 = vsel %vm594_vm6, %v597_v26, %v600_v56 }
 0x27b   : > { %v602_v17 = vsel %vm591_vm15, nan, %v601_v36 }
 0x27c   : > { %v2227_v18 = vmul.f32 %v2165_v63, %v602_v17 }
 0x27e   : > { %v2259_v37 = vpack.c.bf16 %v2228_v12, %v2227_v18 }
 0x280   : > { %2649 = vmatprep.subr.bf16.mxu0 %v2259_v37  ;;  %2674 = vmatprep.subr.bf16.mxu1 %v2259_v37 }
 0x281   : > { %2650 = vmatpush3.bf16.msra.mxu0 %v2259_v37  ;;  %2682 = vmatpush3.bf16.msra.mxu1 %v2259_v37 }
 0x284   : > { %2652 = vmatmul.mubr.bf16.vlgmr.msra.gmra.mxu0 %v2860_v50  ;;  %2660 = vmatmul.mubr.bf16.vlgmr.msra.gmra.mxu1 %v2861_v33 }
 0x285   : > { %2655 = vmatprep.mubr.bf16.mxu0 %v2862_v35  ;;  %2663 = vmatprep.mubr.bf16.mxu1 %v2863_v46 }
 0x28c   : > { %2656 = vmatmul.mubr.bf16.gmra.mxu0 %v2864_v10  ;;  %2664 = vmatmul.mubr.bf16.gmra.mxu1 %v2865_v28 }
 0x344   : > { %v2653_v6 = vpop.f32.mrf.mxu0  ;;  %v2661_v8 = vpop.f32.mrf.mxu1 }
 0x345   : > { %2414 = vst [vmem:[%s5377_s4 + $0x10] sm:$0xff] %v2653_v6  ;;  %2422 = vst [vmem:[%s5377_s4 + $0x50] sm:$0xff] %v2661_v8 }
 0x346   : > { %v2349_v53 = vpop.f32.mrf.mxu0  ;;  %v2381_v59 = vpop.f32.mrf.mxu1 }
 0x347   : > { %2412 = vst [vmem:[%s5377_s4] sm:$0xff] %v2349_v53  ;;  %2420 = vst [vmem:[%s5377_s4 + $0x40] sm:$0xff] %v2381_v59 }
 0x348   : > { %v2654_v5 = vpop.f32.mrf.mxu0  ;;  %v2662_v54 = vpop.f32.mrf.mxu1 }
 0x349   : > { %2415 = vst [vmem:[%s5377_s4 + $0x18] sm:$0xff] %v2654_v5  ;;  %2423 = vst [vmem:[%s5377_s4 + $0x58] sm:$0xff] %v2662_v54 }
 0x34a   : > { %v2352_v22 = vpop.f32.mrf.mxu0  ;;  %v2384_v16 = vpop.f32.mrf.mxu1 }
 0x34b   : > { %2413 = vst [vmem:[%s5377_s4 + $0x8] sm:$0xff] %v2352_v22  ;;  %2421 = vst [vmem:[%s5377_s4 + $0x48] sm:$0xff] %v2384_v16 }
 0x34c   : > { %v2657_v57 = vpop.f32.mrf.mxu0  ;;  %v2665_v7 = vpop.f32.mrf.mxu1 }
 0x34d   : > { %2418 = vst [vmem:[%s5377_s4 + $0x30] sm:$0xff] %v2657_v57  ;;  %2426 = vst [vmem:[%s5377_s4 + $0x70] sm:$0xff] %v2665_v7 }
 0x34e   : > { %v2365_v31 = vpop.f32.mrf.mxu0  ;;  %v2397_v14 = vpop.f32.mrf.mxu1 }
 0x34f   : > { %2416 = vst [vmem:[%s5377_s4 + $0x20] sm:$0xff] %v2365_v31  ;;  %2424 = vst [vmem:[%s5377_s4 + $0x60] sm:$0xff] %v2397_v14 }
 0x350   : > { %v2658_v20 = vpop.f32.mrf.mxu0  ;;  %v2666_v32 = vpop.f32.mrf.mxu1 }
 0x351   : > { %2419 = vst [vmem:[%s5377_s4 + $0x38] sm:$0xff] %v2658_v20  ;;  %2427 = vst [vmem:[%s5377_s4 + $0x78] sm:$0xff] %v2666_v32 }
 0x352   : > { %v2368_v15 = vpop.f32.mrf.mxu0  ;;  %v2400_v19 = vpop.f32.mrf.mxu1 }
 0x353   : > { %2417 = vst [vmem:[%s5377_s4 + $0x28] sm:$0xff] %v2368_v15  ;;  %2425 = vst [vmem:[%s5377_s4 + $0x68] sm:$0xff] %v2400_v19 }
 0x354   : > { %2944 = shalt.err (!%p2941_p7)
}
 0x355   : > { %s2945_s27 = scalar_lea.hbm %s5399_s9, 2048  ;;  %s2949_s4 = scalar_lea.hbm %s5461_s3, 8192 }
 0x356   : > { %p2946_p9 = scmp.ne.s32.totalorder %s5399_s9, %s2945_s27  ;;  %p2950_p12 = scmp.lt.s32.totalorder %s5399_s9, %s5461_s3 }
 0x357   : > { %p2951_p13 = scmp.lt.s32.totalorder %s2949_s4, %s2945_s27 }
 0x358   : > { %p2947_p10 = pnand %p2946_p9, %p3110_p3 }
 0x359   : > { %p2952_p0 = por %p2951_p13, %p2950_p12 }
 0x35a   : > { %p2948_p11 = pneg %p2947_p10 }
 0x35c   : > { %p2953_p1 = pnand %p2952_p0, %p2948_p11 }
 0x35e   : > { %2956 = shalt.err (!%p2953_p1)
}
 0x35f   : > { %s3036_s16 = smov 128   ;;  %s3037_s15 = smov 256  }
 0x360   : > { %s3038_s8 = smov 8  }
 0x361   : > { %2747 = dma.vmem_to_hbm [thread:$0]  (%p3110_p3), %s5394_s7, 2048, %s5399_s9, %s5407_s10, %s3036_s16, %s3037_s15, %s3038_s8  }
 0x362 PF: > { %p2753_p2 = scmp.ge.s32.totalorder %s3023_s19, 2  ;;  %s2458_s11 = sand.u32 1, %s2995_s12  }
 0x363   : > { %s2459_s20 = scalar_lea.sflag [#allocation3], %s2458_s11 }
 0x364   : > { %p2750_p4 = pnand %p2753_p2, %p3119_p8 }
 0x366   : > { %p2751_p5 = pneg %p2750_p4 }
 0x368   : > { %2990 = dma.done.wait (%p2751_p5), %s2459_s20, 2048  }
 0x369   : > { %2992 = vsyncadd (%p2751_p5), %s2459_s20, 4294965248  ;;  %s16_s19 = sadd.s32 1, %s3023_s19   ;;  %s5731_s12 = smov %s2999_s13 }
 0x36a   : > { %p13_p6 = scmp.ge.s32.totalorder %s16_s19, 6   ;;  %s5732_s13 = smov %s3003_s14 }
 0x36b   : > { %s5733_s14 = smov %s3128_s30  ;;  %s5734_s15 = smov %s3015_s17 }
 0x36c   : > { %s5735_s16 = smov %s3019_s18  ;;  %s5736_s17 = smov %s5739_s22 }
 0x36d   : > { %s5737_s18 = smov %s5743_s23  ;;  %15 = sbr.rel (!%p13_p6) target bundleno = 5 (0x5), region = 70 }
 0x372   :  { %2464 = vsyncpa [#allocation3], 1 }
 0x373   :  { %2466 = vsyncpa [#allocation3 + $0x1], 1 }

</bundles_post_ra>
